<compile_context>
chip_gen: v5e
topology: v5e:2x2
jax: 0.10.0
libtpu: 0.0.40
codegen_flags: <defaults>
</compile_context>

<pallas_src>
import functools

import jax
import jax.numpy as jnp
from jax.experimental import pallas as pl
from jax.experimental.pallas import tpu as pltpu

NUM_CLASSES = 21
MULTIBOX_300 = [4, 6, 6, 6, 4, 4]
RES_CH = [128, 256, 512]      # res_Stride8 / res_Stride16 / res_Stride32
EXTRA_CH = [256, 256, 256]    # extra_Stride64 / extra_Stride128 / extra_Stride256
BN_EPS = 1e-5


def _round_up(x, m):
    return (x + m - 1) // m * m


# ---------------------------------------------------------------------------
# Kernel 1: fused loc+conf 3x3 stride-1 head conv with in-kernel im2col.
# ---------------------------------------------------------------------------
def _head_conv_kernel(x_ref, w_ref, shift_ref, o_ref, *, tap_offsets):
    # x_ref:     (R_in, Cin)      bf16, flattened zero-padded image rows
    # w_ref:     (9, Cin, Cp)     bf16, per-tap weight matrices (Cp = padded Cout)
    # shift_ref: (1, Cp)          f32,  fused bias
    # o_ref:     (R_out, Cp)      f32,  "wide" output rows (Wp columns per image row)
    r_out = o_ref.shape[0]
    acc = None
    for t, off in enumerate(tap_offsets):          # static 9-tap unrolled loop
        lhs = x_ref[pl.ds(off, r_out), :]          # contiguous row slice (no stride)
        part = jnp.dot(lhs, w_ref[t], preferred_element_type=jnp.float32)
        acc = part if acc is None else acc + part
    acc = acc + shift_ref[...]
    o_ref[...] = acc.astype(o_ref.dtype)


def fused_head_conv(x, w_fused, b_fused):
    """3x3 conv, stride 1, pad 1, NHWC input; w_fused: (Cout, Cin, 3, 3)."""
    N, H, W, Cin = x.shape
    cout = w_fused.shape[0]
    Ho, Wo = H, W
    Wp = W + 2
    Hp = H + 3                     # 1 top pad + 1 bottom pad + 1 guard row (wide-row trick)
    Cp = _round_up(cout, 128)      # lane-dense output channels

    # per-tap weight matrices, zero-padded along Cout; bias folded as shift
    wtaps = jnp.transpose(w_fused, (2, 3, 1, 0)).reshape(9, Cin, cout)
    wtaps = jnp.pad(wtaps, ((0, 0), (0, 0), (0, Cp - cout))).astype(jnp.bfloat16)
    shift = jnp.pad(b_fused, (0, Cp - cout)).reshape(1, Cp).astype(jnp.float32)

    xp = jnp.pad(x.astype(jnp.bfloat16), ((0, 0), (1, 2), (1, 1), (0, 0)))
    R_img = Hp * Wp

    fold_batch = (Ho * Wo < 64)    # tiny tail maps: one call, batch folded into rows
    if fold_batch:
        xin = xp.reshape(1, N * R_img, Cin)
        R_out = (N - 1) * R_img + Ho * Wp
        NB = 1
    else:
        xin = xp.reshape(N, R_img, Cin)
        R_out = Ho * Wp
        NB = N
    R_in = xin.shape[1]

    tap_offsets = tuple(ky * Wp + kx for ky in range(3) for kx in range(3))

    out = pl.pallas_call(
        functools.partial(_head_conv_kernel, tap_offsets=tap_offsets),
        out_shape=jax.ShapeDtypeStruct((NB, R_out, Cp), jnp.float32),
        grid=(NB,),
        in_specs=[
            pl.BlockSpec((None, R_in, Cin), lambda n: (n, 0, 0)),
            pl.BlockSpec((9, Cin, Cp), lambda n: (0, 0, 0)),
            pl.BlockSpec((1, Cp), lambda n: (0, 0)),
        ],
        out_specs=pl.BlockSpec((None, R_out, Cp), lambda n: (n, 0, 0)),
        compiler_params=pltpu.CompilerParams(dimension_semantics=("parallel",)),
    )(xin, wtaps, shift)

    if fold_batch:
        wide = out[0]
        wide = jnp.pad(wide, ((0, N * R_img - R_out), (0, 0)))
        out4 = wide.reshape(N, Hp, Wp, Cp)
    else:
        out4 = out.reshape(N, Ho, Wp, Cp)
    # drop wide-row garbage columns and the zero-padded output channels
    return out4[:, :Ho, :Wo, :cout]


# ---------------------------------------------------------------------------
# Kernel 2: matmul + shift (+ReLU) for the extras conv (stride-2, tiny spatial).
# ---------------------------------------------------------------------------
def _matmul_shift_kernel(p_ref, w_ref, shift_ref, o_ref, *, apply_relu):
    acc = jnp.dot(p_ref[...], w_ref[...], preferred_element_type=jnp.float32)
    acc = acc + shift_ref[...]
    if apply_relu:
        acc = jnp.maximum(acc, 0.0)
    o_ref[...] = acc.astype(o_ref.dtype)


def conv3x3_s2_bn_relu(x, w, b, bn):
    """3x3 conv, stride 2, pad 1 + eval-mode BatchNorm + ReLU.  NHWC input.

    Spatial dims here are <= 4x4, so im2col stays in XLA glue (its footprint is
    negligible); the BN/bias scale is folded into the weight matrix.
    """
    N, H, W, Cin = x.shape
    Cout = w.shape[0]
    Ho = (H - 1) // 2 + 1
    Wo = (W - 1) // 2 + 1

    xp = jnp.pad(x, ((0, 0), (1, 1), (1, 1), (0, 0)))
    taps = []
    for ky in range(3):
        for kx in range(3):
            taps.append(xp[:, ky:ky + 2 * (Ho - 1) + 1:2,
                            kx:kx + 2 * (Wo - 1) + 1:2, :])
    # batch folded into the row axis -> one single-block call
    patches = jnp.stack(taps, axis=3).reshape(N * Ho * Wo, 9 * Cin).astype(jnp.bfloat16)

    # TODO(synk): PyTorch BN would use batch statistics in training mode; eval-mode
    # running stats are used here (mean=0, var=1 at init).
    gamma, beta, mean, var = bn
    scale = gamma * jax.lax.rsqrt(var + BN_EPS)
    shift = ((b - mean) * scale + beta).reshape(1, Cout).astype(jnp.float32)
    wmat = (jnp.transpose(w, (2, 3, 1, 0)).reshape(9 * Cin, Cout)
            * scale[None, :]).astype(jnp.bfloat16)

    R, K = patches.shape
    out = pl.pallas_call(
        functools.partial(_matmul_shift_kernel, apply_relu=True),
        out_shape=jax.ShapeDtypeStruct((R, Cout), jnp.float32),
        grid=(1,),
        in_specs=[
            pl.BlockSpec((R, K), lambda i: (0, 0)),
            pl.BlockSpec((K, Cout), lambda i: (0, 0)),
            pl.BlockSpec((1, Cout), lambda i: (0, 0)),
        ],
        out_specs=pl.BlockSpec((R, Cout), lambda i: (0, 0)),
        compiler_params=pltpu.CompilerParams(dimension_semantics=("arbitrary",)),
    )(patches, wmat, shift)
    return out.reshape(N, Ho, Wo, Cout)


# ---------------------------------------------------------------------------
# Parameters & forward pass (matches resSSD.__init__ / forward, phase != 'test').
# ---------------------------------------------------------------------------
def xavier_normal(key, cout, cin, kh=3, kw=3):
    fan_in = cin * kh * kw
    fan_out = cout * kh * kw
    std = (2.0 / (fan_in + fan_out)) ** 0.5
    return std * jax.random.normal(key, (cout, cin, kh, kw), jnp.float32)


def init_params(key):
    params = {"extras": [], "loc": [], "conf": []}
    extra_in = [RES_CH[-1]] + EXTRA_CH[:-1]
    for cin, cout in zip(extra_in, EXTRA_CH):
        key, sub = jax.random.split(key)
        w = xavier_normal(sub, cout, cin)
        b = jnp.zeros((cout,), jnp.float32)
        gamma = jnp.ones((cout,), jnp.float32)
        beta = jnp.zeros((cout,), jnp.float32)
        mean = jnp.zeros((cout,), jnp.float32)
        var = jnp.ones((cout,), jnp.float32)
        params["extras"].append((w, b, gamma, beta, mean, var))
    all_ch = RES_CH + EXTRA_CH
    for ch, mb in zip(all_ch, MULTIBOX_300):
        key, k1, k2 = jax.random.split(key, 3)
        params["loc"].append((xavier_normal(k1, mb * 4, ch),
                              jnp.zeros((mb * 4,), jnp.float32)))
        params["conf"].append((xavier_normal(k2, mb * NUM_CLASSES, ch),
                               jnp.zeros((mb * NUM_CLASSES,), jnp.float32)))
    return params


def res_ssd_forward(res_feats, params):
    """resSSD.forward (phase != 'test' branch).

    res_feats: [stride8, stride16, stride32] backbone feature maps in NHWC.
    TODO(synk): the fbresnet18 backbone is not provided in the reference code;
    its three output feature maps are taken as inputs here.
    """
    # extraFeats: three Conv(3x3, stride=2, pad=1) + BN + ReLU stages
    x = res_feats[-1]
    all_feats = list(res_feats)
    for (w, b, gamma, beta, mean, var) in params["extras"]:
        x = conv3x3_s2_bn_relu(x, w, b, (gamma, beta, mean, var))
        all_feats.append(x)

    # multibox heads: loc and conf fused into one conv per feature map
    loc_parts, conf_parts = [], []
    for feat, (lw, lb), (cw, cb) in zip(all_feats, params["loc"], params["conf"]):
        n_loc = lw.shape[0]
        wf = jnp.concatenate([lw, cw], axis=0)
        bf = jnp.concatenate([lb, cb], axis=0)
        out = fused_head_conv(feat, wf, bf)           # (N, H, W, n_loc + n_conf), NHWC
        l = out[..., :n_loc]
        c = out[..., n_loc:]
        loc_parts.append(l.reshape(l.shape[0], -1))
        conf_parts.append(c.reshape(c.shape[0], -1))
    loc = jnp.concatenate(loc_parts, axis=1)
    conf = jnp.concatenate(conf_parts, axis=1)

    n = loc.shape[0]
    num_priors = loc.shape[1] // 4
    # TODO(synk): PriorBox / Detect are not provided in the reference; deterministic
    # zero placeholder priors.
    priors = jnp.zeros((num_priors, 4), jnp.float32)
    return loc.reshape(n, -1, 4), conf.reshape(n, -1, NUM_CLASSES), priors


if __name__ == "__main__":
    key = jax.random.PRNGKey(0)
    kp, k0, k1, k2 = jax.random.split(key, 4)
    params = init_params(kp)

    N = 2
    # small synthetic backbone feature maps (NHWC), channels fixed by RES_SSD_CONFIG['300']
    res_feats = [
        jax.random.normal(k0, (N, 16, 16, RES_CH[0]), jnp.float32),
        jax.random.normal(k1, (N, 8, 8, RES_CH[1]), jnp.float32),
        jax.random.normal(k2, (N, 4, 4, RES_CH[2]), jnp.float32),
    ]

    loc, conf, priors = res_ssd_forward(res_feats, params)
    jax.block_until_ready((loc, conf, priors))

    num_priors = sum(h * w * mb for (h, w), mb in
                     zip([(16, 16), (8, 8), (4, 4), (2, 2), (1, 1), (1, 1)], MULTIBOX_300))
    assert loc.shape == (N, num_priors, 4), loc.shape
    assert conf.shape == (N, num_priors, NUM_CLASSES), conf.shape
    assert priors.shape == (num_priors, 4), priors.shape
    print("KERNEL_OK")
</pallas_src>

<mosaic_0001>
module attributes {stable_mosaic.version = 11 : i64} {
  func.func @_matmul_shift_kernel(%arg0: i32, %arg1: memref<8x4608xbf16, #tpu.memory_space<vmem>>, %arg2: memref<4608x256xbf16, #tpu.memory_space<vmem>>, %arg3: memref<1x256xf32, #tpu.memory_space<vmem>>, %arg4: memref<8x256xf32, #tpu.memory_space<vmem>>) attributes {dimension_semantics = [#tpu.dimension_semantics<arbitrary>], iteration_bounds = array<i64: 1>, scalar_prefetch = 0 : i64, scratch_operands = 0 : i64, tpu.core_type = #tpu.core_type<tc>, window_params = [{pipeline_mode = #tpu.pipeline_mode<synchronous>, transform_indices = @transform_0, window_bounds = array<i64: 8, 4608>}, {pipeline_mode = #tpu.pipeline_mode<synchronous>, transform_indices = @transform_1, window_bounds = array<i64: 4608, 256>}, {pipeline_mode = #tpu.pipeline_mode<synchronous>, transform_indices = @transform_2, window_bounds = array<i64: 1, 256>}, {pipeline_mode = #tpu.pipeline_mode<synchronous>, transform_indices = @transform_3, window_bounds = array<i64: 8, 256>}]} {
    %c0 = arith.constant 0 : index
    %c0_0 = arith.constant 0 : index
    %0 = vector.load %arg1[%c0, %c0_0] : memref<8x4608xbf16, #tpu.memory_space<vmem>>, vector<8x4608xbf16>
    %c0_1 = arith.constant 0 : index
    %c0_2 = arith.constant 0 : index
    %1 = vector.load %arg2[%c0_1, %c0_2] : memref<4608x256xbf16, #tpu.memory_space<vmem>>, vector<4608x256xbf16>
    %cst = arith.constant dense<0.000000e+00> : vector<8x256xf32>
    %2 = tpu.matmul %0, %1, %cst {dimension_numbers = #tpu.dot_dimension_numbers<[1], [0], [0], [1], [0, 0, 1, 1], [], []>} : vector<8x4608xbf16>, vector<4608x256xbf16>, vector<8x256xf32> -> vector<8x256xf32>
    %c0_3 = arith.constant 0 : index
    %c0_4 = arith.constant 0 : index
    %3 = vector.load %arg3[%c0_3, %c0_4] : memref<1x256xf32, #tpu.memory_space<vmem>>, vector<1x256xf32>
    %4 = vector.broadcast %3 : vector<1x256xf32> to vector<8x256xf32>
    %5 = arith.addf %2, %4 : vector<8x256xf32>
    %cst_5 = arith.constant 0.000000e+00 : f32
    %6 = vector.broadcast %cst_5 : f32 to vector<8x256xf32>
    %7 = arith.maximumf %5, %6 : vector<8x256xf32>
    %c0_6 = arith.constant 0 : index
    %c0_7 = arith.constant 0 : index
    %8 = vector.load %arg4[%c0_6, %c0_7] : memref<8x256xf32, #tpu.memory_space<vmem>>, vector<8x256xf32>
    tpu.vector_store %arg4[%c0_6, %c0_7], %7 {strides = array<i32>} : memref<8x256xf32, #tpu.memory_space<vmem>>, vector<8x256xf32>,
    return
  }
  func.func @transform_0(%arg0: i32) -> (i32, i32) {
    %c0_i32 = arith.constant 0 : i32
    %c0_i32_0 = arith.constant 0 : i32
    %c0_i32_1 = arith.constant 0 : i32
    return %c0_i32, %c0_i32_0 : i32, i32
  }
  func.func @transform_1(%arg0: i32) -> (i32, i32) {
    %c0_i32 = arith.constant 0 : i32
    %c0_i32_0 = arith.constant 0 : i32
    %c0_i32_1 = arith.constant 0 : i32
    return %c0_i32, %c0_i32_0 : i32, i32
  }
  func.func @transform_2(%arg0: i32) -> (i32, i32) {
    %c0_i32 = arith.constant 0 : i32
    %c0_i32_0 = arith.constant 0 : i32
    %c0_i32_1 = arith.constant 0 : i32
    return %c0_i32, %c0_i32_0 : i32, i32
  }
  func.func @transform_3(%arg0: i32) -> (i32, i32) {
    %c0_i32 = arith.constant 0 : i32
    %c0_i32_0 = arith.constant 0 : i32
    %c0_i32_1 = arith.constant 0 : i32
    return %c0_i32, %c0_i32_0 : i32, i32
  }
}

</mosaic_0001>

<bundles_post_ra>
// kernel: tpu_custom_call.1
= control target key start
LH: loop header
LB: loop body
LE: loop exit
PB: predicated region body
PF: predicated region fallthrough
CT: control target
= control target key end

     0   :  { %8 = vsyncpa [#allocation3], 0  ;;  %s7844_s0 = inlined_call_operand.hbm [shape: bf16[8,4608], index: 0, kind: input, shape index: {}]   ;;  %s7845_s1 = inlined_call_operand.hbm [shape: bf16[4608,256], index: 1, kind: input, shape index: {}]   ;;  %s7846_s2 = inlined_call_operand.hbm [shape: f32[1,256], index: 2, kind: input, shape index: {}]   ;;  %s7847_s3 = inlined_call_operand.hbm [shape: f32[8,256], index: 3, kind: output, shape index: {}]  }
   0x1   :  { %9 = vsyncpa [#allocation6], 0  ;;  %s26_s14 = sshll.u32 %s7845_s1, 4  ;;  %s27_s14 = int_to_ptr.hbm [resolvable:$true] %s26_s14 }
   0x2   :  { %10 = vsyncpa [#allocation4], 0  ;;  %s7611_s15 = smov [#allocation5]   ;;  %s16_s19 = sshll.u32 %s7844_s0, 4  ;;  %s17_s19 = int_to_ptr.hbm [resolvable:$true] %s16_s19 }
   0x3   :  { %s28_s16 = sshll.u32 %s7611_s15, 4  ;;  %s7612_s20 = smov 128   ;;  %s29_s16 = int_to_ptr.vmem [resolvable:$true] %s28_s16 }
   0x4   :  { %s7613_s21 = smov 8   ;;  %s7614_s22 = smov [#allocation2]  }
   0x5   :  { %34 = dma.hbm_to_vmem [thread:$0]  %s27_s14, 73728, %s29_s16, [#allocation6], %s7612_s20, %s7612_s20, %s7613_s21  }
   0x6   :  { %s18_s23 = sshll.u32 %s7614_s22, 4  ;;  %s40_s26 = sshll.u32 %s7846_s2, 4  ;;  %s19_s23 = int_to_ptr.vmem [resolvable:$true] %s18_s23  ;;  %s41_s26 = int_to_ptr.hbm [resolvable:$true] %s40_s26 }
   0x7   :  { %21 = dma.hbm_to_vmem [thread:$0]  %s17_s19, 2304, %s19_s23, [#allocation3]  }
   0x8   :  { %s7615_s1 = smov [#allocation7]  }
   0x9   :  { %s42_s27 = sshll.u32 %s7615_s1, 4  ;;  %s43_s27 = int_to_ptr.vmem [resolvable:$true] %s42_s27 }
   0xa   :  { %45 = dma.hbm_to_vmem [thread:$0]  %s41_s26, 32, %s43_s27, [#allocation6]  }
   0xb   :  { %7605 = dma.done.wait [#allocation3], 2304  }
   0xc   :  { %7606 = vsyncadd [#allocation3], 4294964992 }
   0xd   :  { %7607 = dma.done.wait [#allocation6], 73760  }
   0xe   :  { %7608 = vsyncadd [#allocation6], 4294893536  ;;  %v4680_v0 = vld [vmem:[#allocation5 + $0x70] sm:$0xf]  ;;  %v6941_v1 = vld [vmem:[#allocation5 + $0x74] sm:$0xf0] }
   0xf   :  { %v4744_v2 = vld [vmem:[#allocation5 + $0xf0] sm:$0xf]  ;;  %v4681_v3 = vor.u32 %v6941_v1, %v4680_v0  ;;  %v6957_v4 = vld [vmem:[#allocation5 + $0xf4] sm:$0xf0]  ;;  %v4672_v11 = vld [vmem:[#allocation5 + $0x60] sm:$0xf] }
  0x10   :  { %v4808_v5 = vld [vmem:[#allocation5 + $0x170] sm:$0xf]  ;;  %v6973_v6 = vld [vmem:[#allocation5 + $0x174] sm:$0xf0]  ;;  %v4745_v7 = vor.u32 %v6957_v4, %v4744_v2  ;;  %v6939_v13 = vld [vmem:[#allocation5 + $0x64] sm:$0xf0] }
  0x11   :  { %v4809_v8 = vor.u32 %v6973_v6, %v4808_v5  ;;  %v4872_v9 = vld [vmem:[#allocation5 + $0x1f0] sm:$0xf]  ;;  %v6989_v10 = vld [vmem:[#allocation5 + $0x1f4] sm:$0xf0]  ;;  %3664 = vmatpush.bf16.msra.mxu0 %v4681_v3  ;;  %v4736_v14 = vld [vmem:[#allocation5 + $0xe0] sm:$0xf]  ;;  %v4673_v16 = vor.u32 %v6939_v13, %v4672_v11 }
  0x12   :  { %v4873_v12 = vor.u32 %v6989_v10, %v4872_v9  ;;  %v6955_v15 = vld [vmem:[#allocation5 + $0xe4] sm:$0xf0]  ;;  %3677 = vmatpush.bf16.msra.mxu1 %v4745_v7  ;;  %v4800_v18 = vld [vmem:[#allocation5 + $0x160] sm:$0xf]  ;;  %v4664_v23 = vld [vmem:[#allocation5 + $0x50] sm:$0xf] }
  0x13   :  { %3690 = vmatpush.bf16.msra.mxu2 %v4809_v8  ;;  %v4737_v17 = vor.u32 %v6955_v15, %v4736_v14  ;;  %v6971_v19 = vld [vmem:[#allocation5 + $0x164] sm:$0xf0]  ;;  %v4864_v20 = vld [vmem:[#allocation5 + $0x1e0] sm:$0xf]  ;;  %v6937_v24 = vld [vmem:[#allocation5 + $0x54] sm:$0xf0] }
  0x14   :  { %3703 = vmatpush.bf16.msra.mxu3 %v4873_v12  ;;  %v4801_v21 = vor.u32 %v6971_v19, %v4800_v18  ;;  %v6987_v22 = vld [vmem:[#allocation5 + $0x1e4] sm:$0xf0]  ;;  %v4728_v26 = vld [vmem:[#allocation5 + $0xd0] sm:$0xf]  ;;  %v6953_v27 = vld [vmem:[#allocation5 + $0xd4] sm:$0xf0]  ;;  %v4665_v29 = vor.u32 %v6937_v24, %v4664_v23 }
  0x15   :  { %v4865_v25 = vor.u32 %v6987_v22, %v4864_v20  ;;  %v4792_v28 = vld [vmem:[#allocation5 + $0x150] sm:$0xf]  ;;  %3665 = vmatpush.bf16.msra.mxu0 %v4673_v16  ;;  %v6969_v30 = vld [vmem:[#allocation5 + $0x154] sm:$0xf0]  ;;  %v4729_v33 = vor.u32 %v6953_v27, %v4728_v26  ;;  %v4656_v35 = vld [vmem:[#allocation5 + $0x40] sm:$0xf] }
  0x16   :  { %v4856_v31 = vld [vmem:[#allocation5 + $0x1d0] sm:$0xf]  ;;  %v6985_v32 = vld [vmem:[#allocation5 + $0x1d4] sm:$0xf0]  ;;  %3678 = vmatpush.bf16.msra.mxu1 %v4737_v17  ;;  %v4793_v34 = vor.u32 %v6969_v30, %v4792_v28  ;;  %v6935_v36 = vld [vmem:[#allocation5 + $0x44] sm:$0xf0] }
  0x17   :  { %3691 = vmatpush.bf16.msra.mxu2 %v4801_v21  ;;  %v4720_v37 = vld [vmem:[#allocation5 + $0xc0] sm:$0xf]  ;;  %v4857_v38 = vor.u32 %v6985_v32, %v4856_v31  ;;  %v6951_v39 = vld [vmem:[#allocation5 + $0xc4] sm:$0xf0]  ;;  %v4657_v44 = vor.u32 %v6935_v36, %v4656_v35  ;;  %v4648_v47 = vld [vmem:[#allocation5 + $0x30] sm:$0xf] }
  0x18   :  { %3704 = vmatpush.bf16.msra.mxu3 %v4865_v25  ;;  %v4784_v40 = vld [vmem:[#allocation5 + $0x140] sm:$0xf]  ;;  %v6967_v41 = vld [vmem:[#allocation5 + $0x144] sm:$0xf0]  ;;  %v4721_v45 = vor.u32 %v6951_v39, %v4720_v37  ;;  %v6933_v48 = vld [vmem:[#allocation5 + $0x34] sm:$0xf0] }
  0x19   :  { %v4848_v42 = vld [vmem:[#allocation5 + $0x1c0] sm:$0xf]  ;;  %v6983_v43 = vld [vmem:[#allocation5 + $0x1c4] sm:$0xf0]  ;;  %3666 = vmatpush.bf16.msra.mxu0 %v4665_v29  ;;  %v4785_v46 = vor.u32 %v6967_v41, %v4784_v40  ;;  %v4712_v49 = vld [vmem:[#allocation5 + $0xb0] sm:$0xf]  ;;  %v4649_v56 = vor.u32 %v6933_v48, %v4648_v47 }
  0x1a   :  { %3679 = vmatpush.bf16.msra.mxu1 %v4729_v33  ;;  %v4849_v50 = vor.u32 %v6983_v43, %v4848_v42  ;;  %v6949_v51 = vld [vmem:[#allocation5 + $0xb4] sm:$0xf0]  ;;  %v4776_v52 = vld [vmem:[#allocation5 + $0x130] sm:$0xf]  ;;  %v4640_v59 = vld [vmem:[#allocation5 + $0x20] sm:$0xf] }
  0x1b   :  { %3692 = vmatpush.bf16.msra.mxu2 %v4793_v34  ;;  %v6965_v53 = vld [vmem:[#allocation5 + $0x134] sm:$0xf0]  ;;  %v4840_v54 = vld [vmem:[#allocation5 + $0x1b0] sm:$0xf]  ;;  %v4713_v57 = vor.u32 %v6949_v51, %v4712_v49  ;;  %v6931_v60 = vld [vmem:[#allocation5 + $0x24] sm:$0xf0] }
  0x1c   :  { %3705 = vmatpush.bf16.msra.mxu3 %v4857_v38  ;;  %v6981_v55 = vld [vmem:[#allocation5 + $0x1b4] sm:$0xf0]  ;;  %v4777_v58 = vor.u32 %v6965_v53, %v4776_v52  ;;  %v4704_v61 = vld [vmem:[#allocation5 + $0xa0] sm:$0xf]  ;;  %v6947_v63 = vld [vmem:[#allocation5 + $0xa4] sm:$0xf0]  ;;  %v4641_v4 = vor.u32 %v6931_v60, %v4640_v59 }
  0x1d   :  { %3667 = vmatpush.bf16.msra.mxu0 %v4657_v44  ;;  %v4841_v62 = vor.u32 %v6981_v55, %v4840_v54  ;;  %v4768_v0 = vld [vmem:[#allocation5 + $0x120] sm:$0xf]  ;;  %v6963_v1 = vld [vmem:[#allocation5 + $0x124] sm:$0xf0]  ;;  %v4705_v5 = vor.u32 %v6947_v63, %v4704_v61  ;;  %v4632_v7 = vld [vmem:[#allocation5 + $0x10] sm:$0xf] }
  0x1e   :  { %3680 = vmatpush.bf16.msra.mxu1 %v4721_v45  ;;  %v4832_v2 = vld [vmem:[#allocation5 + $0x1a0] sm:$0xf]  ;;  %v6979_v3 = vld [vmem:[#allocation5 + $0x1a4] sm:$0xf0]  ;;  %v4769_v6 = vor.u32 %v6963_v1, %v4768_v0  ;;  %v6929_v8 = vld [vmem:[#allocation5 + $0x14] sm:$0xf0] }
  0x1f   :  { %3693 = vmatpush.bf16.msra.mxu2 %v4785_v46  ;;  %v4696_v9 = vld [vmem:[#allocation5 + $0x90] sm:$0xf]  ;;  %v4833_v10 = vor.u32 %v6979_v3, %v4832_v2  ;;  %v6945_v11 = vld [vmem:[#allocation5 + $0x94] sm:$0xf0]  ;;  %v4633_v16 = vor.u32 %v6929_v8, %v4632_v7  ;;  %v4624_v17 = vld [vmem:[#allocation5] sm:$0xf] }
  0x20   :  { %3706 = vmatpush.bf16.msra.mxu3 %v4849_v50  ;;  %v4760_v12 = vld [vmem:[#allocation5 + $0x110] sm:$0xf]  ;;  %v6961_v13 = vld [vmem:[#allocation5 + $0x114] sm:$0xf0]  ;;  %v6927_v18 = vld [vmem:[#allocation5 + $0x4] sm:$0xf0]  ;;  %v4697_v19 = vor.u32 %v6945_v11, %v4696_v9 }
  0x21   :  { %3668 = vmatpush.bf16.msra.mxu0 %v4649_v56  ;;  %v4824_v14 = vld [vmem:[#allocation5 + $0x190] sm:$0xf]  ;;  %v6977_v15 = vld [vmem:[#allocation5 + $0x194] sm:$0xf0]  ;;  %v4761_v20 = vor.u32 %v6961_v13, %v4760_v12  ;;  %v4688_v21 = vld [vmem:[#allocation5 + $0x80] sm:$0xf]  ;;  %v4625_v31 = vor.u32 %v6927_v18, %v4624_v17 }
  0x22   :  { %3681 = vmatpush.bf16.msra.mxu1 %v4713_v57  ;;  %v6943_v22 = vld [vmem:[#allocation5 + $0x84] sm:$0xf0]  ;;  %v4752_v23 = vld [vmem:[#allocation5 + $0x100] sm:$0xf]  ;;  %v4825_v24 = vor.u32 %v6977_v15, %v4824_v14  ;;  %v4936_v28 = vld [vmem:[#allocation5 + $0x270] sm:$0xf] }
  0x23   :  { %3694 = vmatpush.bf16.msra.mxu2 %v4777_v58  ;;  %v6959_v25 = vld [vmem:[#allocation5 + $0x104] sm:$0xf0]  ;;  %v4816_v26 = vld [vmem:[#allocation5 + $0x180] sm:$0xf]  ;;  %v7005_v29 = vld [vmem:[#allocation5 + $0x274] sm:$0xf0]  ;;  %v4689_v35 = vor.u32 %v6943_v22, %v4688_v21 }
  0x24   :  { %3707 = vmatpush.bf16.msra.mxu3 %v4841_v62  ;;  %v6975_v27 = vld [vmem:[#allocation5 + $0x184] sm:$0xf0]  ;;  %v5000_v30 = vld [vmem:[#allocation5 + $0x2f0] sm:$0xf]  ;;  %v7021_v32 = vld [vmem:[#allocation5 + $0x2f4] sm:$0xf0]  ;;  %v4753_v36 = vor.u32 %v6959_v25, %v4752_v23  ;;  %v4937_v40 = vor.u32 %v7005_v29, %v4936_v28 }
  0x25   :  { %3669 = vmatpush.bf16.msra.mxu0 %v4641_v4  ;;  %v5064_v33 = vld [vmem:[#allocation5 + $0x370] sm:$0xf]  ;;  %v7037_v34 = vld [vmem:[#allocation5 + $0x374] sm:$0xf0]  ;;  %v4817_v39 = vor.u32 %v6975_v27, %v4816_v26  ;;  %v5001_v41 = vor.u32 %v7021_v32, %v5000_v30  ;;  %v4928_v43 = vld [vmem:[#allocation5 + $0x260] sm:$0xf] }
  0x26   :  { %3682 = vmatpush.bf16.msra.mxu1 %v4705_v5  ;;  %v5128_v37 = vld [vmem:[#allocation5 + $0x3f0] sm:$0xf]  ;;  %v7053_v38 = vld [vmem:[#allocation5 + $0x3f4] sm:$0xf0]  ;;  %v5065_v42 = vor.u32 %v7037_v34, %v5064_v33  ;;  %v7003_v44 = vld [vmem:[#allocation5 + $0x264] sm:$0xf0] }
  0x27   :  { %3695 = vmatpush.bf16.msra.mxu2 %v4769_v6  ;;  %v4992_v45 = vld [vmem:[#allocation5 + $0x2e0] sm:$0xf]  ;;  %v5129_v46 = vor.u32 %v7053_v38, %v5128_v37  ;;  %v7019_v47 = vld [vmem:[#allocation5 + $0x2e4] sm:$0xf0]  ;;  %v4929_v52 = vor.u32 %v7003_v44, %v4928_v43  ;;  %v4920_v53 = vld [vmem:[#allocation5 + $0x250] sm:$0xf] }
  0x28   :  { %3708 = vmatpush.bf16.msra.mxu3 %v4833_v10  ;;  %v5056_v48 = vld [vmem:[#allocation5 + $0x360] sm:$0xf]  ;;  %v7035_v49 = vld [vmem:[#allocation5 + $0x364] sm:$0xf0]  ;;  %v4993_v54 = vor.u32 %v7019_v47, %v4992_v45  ;;  %v7001_v56 = vld [vmem:[#allocation5 + $0x254] sm:$0xf0] }
  0x29   :  { %3670 = vmatpush.bf16.msra.mxu0 %v4633_v16  ;;  %v5120_v50 = vld [vmem:[#allocation5 + $0x3e0] sm:$0xf]  ;;  %v7051_v51 = vld [vmem:[#allocation5 + $0x3e4] sm:$0xf0]  ;;  %v5057_v55 = vor.u32 %v7035_v49, %v5056_v48  ;;  %v4984_v57 = vld [vmem:[#allocation5 + $0x2d0] sm:$0xf]  ;;  %v4921_v3 = vor.u32 %v7001_v56, %v4920_v53 }
  0x2a   :  { %3683 = vmatpush.bf16.msra.mxu1 %v4697_v19  ;;  %v59_v58 = vld [vmem:[#allocation2 + $0x8] sm:$0xff]  ;;  %v5121_v59 = vor.u32 %v7051_v51, %v5120_v50  ;;  %v5048_v61 = vld [vmem:[#allocation5 + $0x350] sm:$0xf]  ;;  %v4912_v9 = vld [vmem:[#allocation5 + $0x240] sm:$0xf]  ;;  %s7616_s0 = smov [#allocation8]  }
  0x2b   :  { %3696 = vmatpush.bf16.msra.mxu2 %v4761_v20  ;;  %v7017_v60 = vld [vmem:[#allocation5 + $0x2d4] sm:$0xf0]  ;;  %v678_v63 = vunpack.c.l.b16 %v59_v58  ;;  %v679_v0 = vunpack.c.h.b16 %v59_v58  ;;  %v5112_v1 = vld [vmem:[#allocation5 + $0x3d0] sm:$0xf]  ;;  %v6999_v10 = vld [vmem:[#allocation5 + $0x244] sm:$0xf0] }
  0x2c   :  { %3709 = vmatpush.bf16.msra.mxu3 %v4825_v24  ;;  %v7033_v62 = vld [vmem:[#allocation5 + $0x354] sm:$0xf0]  ;;  %v58_v5 = vld [vmem:[#allocation2] sm:$0xff]  ;;  %v4985_v7 = vor.u32 %v7017_v60, %v4984_v57  ;;  %v4976_v11 = vld [vmem:[#allocation5 + $0x2c0] sm:$0xf]  ;;  %v4913_v22 = vor.u32 %v6999_v10, %v4912_v9  ;;  %s4609_s2 = sshll.u32 %s7616_s0, 4  ;;  %s4610_s2 = int_to_ptr.vmem [resolvable:$true] %s4609_s2 }
  0x2d   :  { %3671 = vmatpush.bf16.msra.mxu0 %v4625_v31  ;;  %v7049_v2 = vld [vmem:[#allocation5 + $0x3d4] sm:$0xf0]  ;;  %v7646_v4 = vpack.c.b16 %v678_v63, %v678_v63  ;;  %v7648_v6 = vpack.c.b16 %v679_v0, %v679_v0  ;;  %v5049_v8 = vor.u32 %v7033_v62, %v5048_v61  ;;  %v676_v12 = vunpack.c.l.b16 %v58_v5  ;;  %v7015_v15 = vld [vmem:[#allocation5 + $0x2c4] sm:$0xf0]  ;;  %v5040_v16 = vld [vmem:[#allocation5 + $0x340] sm:$0xf] }
  0x2e   :  { %3684 = vmatpush.bf16.msra.mxu1 %v4689_v35  ;;  %v677_v13 = vunpack.c.h.b16 %v58_v5  ;;  %v5113_v14 = vor.u32 %v7049_v2, %v5112_v1  ;;  %v7031_v17 = vld [vmem:[#allocation5 + $0x344] sm:$0xf0]  ;;  %v5104_v18 = vld [vmem:[#allocation5 + $0x3c0] sm:$0xf]  ;;  %v4977_v23 = vor.u32 %v7015_v15, %v4976_v11  ;;  %v4904_v25 = vld [vmem:[#allocation5 + $0x230] sm:$0xf] }
  0x2f   :  { %3697 = vmatpush.bf16.msra.mxu2 %v4753_v36  ;;  %v7047_v19 = vld [vmem:[#allocation5 + $0x3c4] sm:$0xf0]  ;;  %v7651_v20 = vpack.c.b16 %v676_v12, %v676_v12  ;;  %v5041_v24 = vor.u32 %v7031_v17, %v5040_v16  ;;  %v6997_v26 = vld [vmem:[#allocation5 + $0x234] sm:$0xf0]  ;;  %v4968_v27 = vld [vmem:[#allocation5 + $0x2b0] sm:$0xf] }
  0x30   :  { %3710 = vmatpush.bf16.msra.mxu3 %v4817_v39  ;;  %v7654_v21 = vpack.c.b16 %v677_v13, %v677_v13  ;;  %v5105_v28 = vor.u32 %v7047_v19, %v5104_v18  ;;  %v7013_v29 = vld [vmem:[#allocation5 + $0x2b4] sm:$0xf0]  ;;  %v5032_v30 = vld [vmem:[#allocation5 + $0x330] sm:$0xf]  ;;  %v4905_v34 = vor.u32 %v6997_v26, %v4904_v25  ;;  %v4896_v37 = vld [vmem:[#allocation5 + $0x220] sm:$0xf] }
  0x31   :  { %3716 = vmatpush.bf16.msrb.mxu0 %v4937_v40  ;;  %v7029_v31 = vld [vmem:[#allocation5 + $0x334] sm:$0xf0]  ;;  %v5096_v32 = vld [vmem:[#allocation5 + $0x3b0] sm:$0xf]  ;;  %v4969_v35 = vor.u32 %v7013_v29, %v4968_v27  ;;  %v6995_v38 = vld [vmem:[#allocation5 + $0x224] sm:$0xf0] }
  0x32   :  { %3729 = vmatpush.bf16.msrb.mxu1 %v5001_v41  ;;  %3698 = vmatmul.bf16.vlgmr.msra.gmra.mxu2 %v7646_v4  ;;  %v7045_v33 = vld [vmem:[#allocation5 + $0x3b4] sm:$0xf0]  ;;  %v5033_v36 = vor.u32 %v7029_v31, %v5032_v30  ;;  %v4960_v39 = vld [vmem:[#allocation5 + $0x2a0] sm:$0xf]  ;;  %v7011_v41 = vld [vmem:[#allocation5 + $0x2a4] sm:$0xf0] }
  0x33   :  { %3742 = vmatpush.bf16.msrb.mxu2 %v5065_v42  ;;  %3711 = vmatmul.bf16.vlgmr.msra.gmra.mxu3 %v7648_v6  ;;  %v5097_v40 = vor.u32 %v7045_v33, %v5096_v32  ;;  %v5024_v42 = vld [vmem:[#allocation5 + $0x320] sm:$0xf]  ;;  %v7027_v43 = vld [vmem:[#allocation5 + $0x324] sm:$0xf0]  ;;  %v4961_v47 = vor.u32 %v7011_v41, %v4960_v39  ;;  %v4888_v49 = vld [vmem:[#allocation5 + $0x210] sm:$0xf] }
  0x34   :  { %3755 = vmatpush.bf16.msrb.mxu3 %v5129_v46  ;;  %3672 = vmatmul.bf16.vlgmr.msra.gmra.mxu0 %v7651_v20  ;;  %v5088_v44 = vld [vmem:[#allocation5 + $0x3a0] sm:$0xf]  ;;  %v7043_v45 = vld [vmem:[#allocation5 + $0x3a4] sm:$0xf0]  ;;  %v4897_v46 = vor.u32 %v6995_v38, %v4896_v37  ;;  %v5025_v48 = vor.u32 %v7027_v43, %v5024_v42  ;;  %v6993_v50 = vld [vmem:[#allocation5 + $0x214] sm:$0xf0] }
  0x35   :  { %3717 = vmatpush.bf16.msrb.mxu0 %v4929_v52  ;;  %3685 = vmatmul.bf16.vlgmr.msra.gmra.mxu1 %v7654_v21  ;;  %v4952_v51 = vld [vmem:[#allocation5 + $0x290] sm:$0xf]  ;;  %v5089_v52 = vor.u32 %v7043_v45, %v5088_v44  ;;  %v7009_v53 = vld [vmem:[#allocation5 + $0x294] sm:$0xf0]  ;;  %v4880_v58 = vld [vmem:[#allocation5 + $0x200] sm:$0xf] }
  0x36   :  { %3730 = vmatpush.bf16.msrb.mxu1 %v4993_v54  ;;  %v5016_v54 = vld [vmem:[#allocation5 + $0x310] sm:$0xf]  ;;  %v7041_v57 = vld [vmem:[#allocation5 + $0x394] sm:$0xf0]  ;;  %v6991_v60 = vld [vmem:[#allocation5 + $0x204] sm:$0xf0]  ;;  %v4953_v63 = vor.u32 %v7009_v53, %v4952_v51 }
  0x37   :  { %3743 = vmatpush.bf16.msrb.mxu2 %v5057_v55  ;;  %v7025_v55 = vld [vmem:[#allocation5 + $0x314] sm:$0xf0]  ;;  %v5080_v56 = vld [vmem:[#allocation5 + $0x390] sm:$0xf]  ;;  %v4944_v61 = vld [vmem:[#allocation5 + $0x280] sm:$0xf]  ;;  %v4881_v13 = vor.u32 %v6991_v60, %v4880_v58 }
  0x38   :  { %3756 = vmatpush.bf16.msrb.mxu3 %v5121_v59  ;;  %v4889_v59 = vor.u32 %v6993_v50, %v4888_v49  ;;  %v7007_v62 = vld [vmem:[#allocation5 + $0x284] sm:$0xf0]  ;;  %v5017_v0 = vor.u32 %v7025_v55, %v5016_v54  ;;  %v5008_v1 = vld [vmem:[#allocation5 + $0x300] sm:$0xf]  ;;  %v5081_v5 = vor.u32 %v7041_v57, %v5080_v56  ;;  %v5192_v10 = vld [vmem:[#allocation5 + $0x470] sm:$0xf] }
  0x39   :  { %3718 = vmatpush.bf16.msrb.mxu0 %v4921_v3  ;;  %v7023_v2 = vld [vmem:[#allocation5 + $0x304] sm:$0xf0]  ;;  %v60_v9 = vld [vmem:[#allocation2 + $0x10] sm:$0xff]  ;;  %v7069_v11 = vld [vmem:[#allocation5 + $0x474] sm:$0xf0]  ;;  %v4945_v18 = vor.u32 %v7007_v62, %v4944_v61  ;;  %s4611_s30 = sshll.u32 %s7847_s3, 4  ;;  %s4612_s30 = int_to_ptr.hbm [resolvable:$true] %s4611_s30 }
  0x3a   :  { %3731 = vmatpush.bf16.msrb.mxu1 %v4985_v7  ;;  %v61_v3 = vld [vmem:[#allocation2 + $0x18] sm:$0xff]  ;;  %v5072_v7 = vld [vmem:[#allocation5 + $0x380] sm:$0xf]  ;;  %v5256_v12 = vld [vmem:[#allocation5 + $0x4f0] sm:$0xf]  ;;  %v5009_v19 = vor.u32 %v7023_v2, %v5008_v1  ;;  %v5193_v27 = vor.u32 %v7069_v11, %v5192_v10 }
  0x3b   :  { %3744 = vmatpush.bf16.msrb.mxu2 %v5049_v8  ;;  %v7039_v8 = vld [vmem:[#allocation5 + $0x384] sm:$0xf0]  ;;  %v5320_v15 = vld [vmem:[#allocation5 + $0x570] sm:$0xf]  ;;  %v7101_v16 = vld [vmem:[#allocation5 + $0x574] sm:$0xf0]  ;;  %v682_v17 = vunpack.c.l.b16 %v61_v3  ;;  %v683_v25 = vunpack.c.h.b16 %v61_v3 }
  0x3c   :  { %3757 = vmatpush.bf16.msrb.mxu3 %v5113_v14  ;;  %v7085_v14 = vld [vmem:[#allocation5 + $0x4f4] sm:$0xf0]  ;;  %v5073_v26 = vor.u32 %v7039_v8, %v5072_v7  ;;  %v5321_v30 = vor.u32 %v7101_v16, %v5320_v15  ;;  %v5184_v31 = vld [vmem:[#allocation5 + $0x460] sm:$0xf]  ;;  %v7067_v32 = vld [vmem:[#allocation5 + $0x464] sm:$0xf0] }
  0x3d   :  { %3719 = vmatpush.bf16.msrb.mxu0 %v4913_v22  ;;  %v5384_v22 = vld [vmem:[#allocation5 + $0x5f0] sm:$0xf]  ;;  %v5257_v29 = vor.u32 %v7085_v14, %v5256_v12  ;;  %v5248_v33 = vld [vmem:[#allocation5 + $0x4e0] sm:$0xf]  ;;  %v7099_v37 = vld [vmem:[#allocation5 + $0x564] sm:$0xf0]  ;;  %v7658_v38 = vpack.c.b16 %v682_v17, %v682_v17  ;;  %v7662_v42 = vpack.c.b16 %v683_v25, %v683_v25  ;;  %v5185_v43 = vor.u32 %v7067_v32, %v5184_v31 }
  0x3e   :  { %3732 = vmatpush.bf16.msrb.mxu1 %v4977_v23  ;;  %v7117_v23 = vld [vmem:[#allocation5 + $0x5f4] sm:$0xf0]  ;;  %v5376_v39 = vld [vmem:[#allocation5 + $0x5e0] sm:$0xf]  ;;  %v5240_v49 = vld [vmem:[#allocation5 + $0x4d0] sm:$0xf] }
  0x3f   :  { %3745 = vmatpush.bf16.msrb.mxu2 %v5041_v24  ;;  %v680_v24 = vunpack.c.l.b16 %v60_v9  ;;  %v7081_v51 = vld [vmem:[#allocation5 + $0x4d4] sm:$0xf0]  ;;  %v5368_v54 = vld [vmem:[#allocation5 + $0x5d0] sm:$0xf]  ;;  %v7063_v60 = vld [vmem:[#allocation5 + $0x444] sm:$0xf0] }
  0x40   :  { %3758 = vmatpush.bf16.msrb.mxu3 %v5105_v28  ;;  %v681_v28 = vunpack.c.h.b16 %v60_v9  ;;  %v7097_v53 = vld [vmem:[#allocation5 + $0x554] sm:$0xf0]  ;;  %v5241_v57 = vor.u32 %v7081_v51, %v5240_v49  ;;  %v5232_v61 = vld [vmem:[#allocation5 + $0x4c0] sm:$0xf]  ;;  %v7095_v1 = vld [vmem:[#allocation5 + $0x544] sm:$0xf0] }
  0x41   :  { %3720 = vmatpush.bf16.msrb.mxu0 %v4905_v34  ;;  %v5385_v34 = vor.u32 %v7117_v23, %v5384_v22  ;;  %v7660_v41 = vpack.c.b16 %v680_v24, %v680_v24  ;;  %v7113_v55 = vld [vmem:[#allocation5 + $0x5d4] sm:$0xf0]  ;;  %v5360_v2 = vld [vmem:[#allocation5 + $0x5c0] sm:$0xf]  ;;  %v7111_v3 = vld [vmem:[#allocation5 + $0x5c4] sm:$0xf0] }
  0x42   :  { %3733 = vmatpush.bf16.msrb.mxu1 %v4969_v35  ;;  %v7083_v35 = vld [vmem:[#allocation5 + $0x4e4] sm:$0xf0]  ;;  %v7664_v44 = vpack.c.b16 %v681_v28, %v681_v28  ;;  %v5369_v62 = vor.u32 %v7113_v55, %v5368_v54  ;;  %v5160_v9 = vld [vmem:[#allocation5 + $0x430] sm:$0xf]  ;;  %v7061_v10 = vld [vmem:[#allocation5 + $0x434] sm:$0xf0]  ;;  %v5361_v12 = vor.u32 %v7111_v3, %v5360_v2 }
  0x43   :  { %3746 = vmatpush.bf16.msrb.mxu2 %v5033_v36  ;;  %v5312_v36 = vld [vmem:[#allocation5 + $0x560] sm:$0xf]  ;;  %v5249_v45 = vor.u32 %v7083_v35, %v5248_v33  ;;  %v5224_v11 = vld [vmem:[#allocation5 + $0x4b0] sm:$0xf]  ;;  %v7093_v15 = vld [vmem:[#allocation5 + $0x534] sm:$0xf0] }
  0x44   :  { %3759 = vmatpush.bf16.msrb.mxu3 %v5097_v40  ;;  %v7115_v40 = vld [vmem:[#allocation5 + $0x5e4] sm:$0xf0]  ;;  %v5288_v14 = vld [vmem:[#allocation5 + $0x530] sm:$0xf]  ;;  %v7109_v17 = vld [vmem:[#allocation5 + $0x5b4] sm:$0xf0] }
  0x45   :  { %3721 = vmatpush.bf16.msrb.mxu0 %v4897_v46  ;;  %v5313_v46 = vor.u32 %v7099_v37, %v5312_v36  ;;  %v5377_v50 = vor.u32 %v7115_v40, %v5376_v39  ;;  %v5352_v16 = vld [vmem:[#allocation5 + $0x5b0] sm:$0xf]  ;;  %v5289_v22 = vor.u32 %v7093_v15, %v5288_v14  ;;  %v5152_v23 = vld [vmem:[#allocation5 + $0x420] sm:$0xf]  ;;  %v7059_v24 = vld [vmem:[#allocation5 + $0x424] sm:$0xf0] }
  0x46   :  { %3734 = vmatpush.bf16.msrb.mxu1 %v4961_v47  ;;  %v5176_v47 = vld [vmem:[#allocation5 + $0x450] sm:$0xf]  ;;  %v5216_v25 = vld [vmem:[#allocation5 + $0x4a0] sm:$0xf]  ;;  %v7107_v31 = vld [vmem:[#allocation5 + $0x5a4] sm:$0xf0]  ;;  %v5153_v32 = vor.u32 %v7059_v24, %v5152_v23 }
  0x47   :  { %3747 = vmatpush.bf16.msrb.mxu2 %v5025_v48  ;;  %v7065_v48 = vld [vmem:[#allocation5 + $0x454] sm:$0xf0]  ;;  %v5280_v28 = vld [vmem:[#allocation5 + $0x520] sm:$0xf]  ;;  %v5144_v35 = vld [vmem:[#allocation5 + $0x410] sm:$0xf] }
  0x48   :  { %3760 = vmatpush.bf16.msrb.mxu3 %v5089_v52  ;;  %v5304_v52 = vld [vmem:[#allocation5 + $0x550] sm:$0xf]  ;;  %v5177_v56 = vor.u32 %v7065_v48, %v5176_v47  ;;  %v7057_v36 = vld [vmem:[#allocation5 + $0x414] sm:$0xf0]  ;;  %v5136_v48 = vld [vmem:[#allocation5 + $0x400] sm:$0xf] }
  0x49   :  { %3722 = vmatpush.bf16.msrb.mxu0 %v4889_v59  ;;  %v5305_v58 = vor.u32 %v7097_v53, %v5304_v52  ;;  %v5168_v59 = vld [vmem:[#allocation5 + $0x440] sm:$0xf]  ;;  %v5208_v37 = vld [vmem:[#allocation5 + $0x490] sm:$0xf]  ;;  %v7073_v40 = vld [vmem:[#allocation5 + $0x494] sm:$0xf0]  ;;  %v5145_v49 = vor.u32 %v7057_v36, %v5144_v35 }
  0x4a   :  { %3735 = vmatpush.bf16.msrb.mxu1 %v4953_v63  ;;  %v7079_v63 = vld [vmem:[#allocation5 + $0x4c4] sm:$0xf0]  ;;  %v7105_v47 = vld [vmem:[#allocation5 + $0x594] sm:$0xf0]  ;;  %v5200_v51 = vld [vmem:[#allocation5 + $0x480] sm:$0xf]  ;;  %v5209_v53 = vor.u32 %v7073_v40, %v5208_v37 }
  0x4b   :  { %3748 = vmatpush.bf16.msrb.mxu2 %v5017_v0  ;;  %v5296_v0 = vld [vmem:[#allocation5 + $0x540] sm:$0xf]  ;;  %v5233_v7 = vor.u32 %v7079_v63, %v5232_v61  ;;  %v7071_v52 = vld [vmem:[#allocation5 + $0x484] sm:$0xf0]  ;;  %v63_v61 = vld [vmem:[#allocation2 + $0x28] sm:$0xff] }
  0x4c   :  { %3761 = vmatpush.bf16.msrb.mxu3 %v5081_v5  ;;  %v5169_v5 = vor.u32 %v7063_v60, %v5168_v59  ;;  %v5297_v8 = vor.u32 %v7095_v1, %v5296_v0  ;;  %v5264_v55 = vld [vmem:[#allocation5 + $0x500] sm:$0xf]  ;;  %v7103_v60 = vld [vmem:[#allocation5 + $0x584] sm:$0xf0]  ;;  %v7133_v63 = vld [vmem:[#allocation5 + $0x674] sm:$0xf0] }
  0x4d   :  { %3723 = vmatpush.bf16.msrb.mxu0 %v4881_v13  ;;  %v7077_v13 = vld [vmem:[#allocation5 + $0x4b4] sm:$0xf0]  ;;  %v5328_v59 = vld [vmem:[#allocation5 + $0x580] sm:$0xf]  ;;  %v5512_v0 = vld [vmem:[#allocation5 + $0x6f0] sm:$0xf] }
  0x4e   :  { %3736 = vmatpush.bf16.msrb.mxu1 %v4945_v18  ;;  %v5161_v18 = vor.u32 %v7061_v10, %v5160_v9  ;;  %v7149_v2 = vld [vmem:[#allocation5 + $0x6f4] sm:$0xf0]  ;;  %v5576_v3 = vld [vmem:[#allocation5 + $0x770] sm:$0xf]  ;;  %v5329_v14 = vor.u32 %v7103_v60, %v5328_v59  ;;  %v5504_v23 = vld [vmem:[#allocation5 + $0x6e0] sm:$0xf] }
  0x4f   :  { %3749 = vmatpush.bf16.msrb.mxu2 %v5009_v19  ;;  %v5225_v19 = vor.u32 %v7077_v13, %v5224_v11  ;;  %v5640_v10 = vld [vmem:[#allocation5 + $0x7f0] sm:$0xf]  ;;  %v7181_v11 = vld [vmem:[#allocation5 + $0x7f4] sm:$0xf0]  ;;  %v7159_v59 = vld [vmem:[#allocation5 + $0x744] sm:$0xf0] }
  0x50   :  { %3762 = vmatpush.bf16.msrb.mxu3 %v5073_v26  ;;  %3724 = vmatmul.bf16.vlgmr.msrb.gmra.mxu0 %v7660_v41  ;;  %v5353_v26 = vor.u32 %v7109_v17, %v5352_v16  ;;  %v687_v16 = vunpack.c.h.b16 %v63_v61  ;;  %v5513_v17 = vor.u32 %v7149_v2, %v5512_v0  ;;  %v5641_v24 = vor.u32 %v7181_v11, %v5640_v10  ;;  %v5432_v37 = vld [vmem:[#allocation5 + $0x650] sm:$0xf]  ;;  %v5616_v60 = vld [vmem:[#allocation5 + $0x7c0] sm:$0xf]  ;;  %v7125_v2 = vld [vmem:[#allocation5 + $0x634] sm:$0xf0] }
  0x51   :  { %3768 = vmatpush.bf16.msra.mxu0 %v5193_v27  ;;  %3737 = vmatmul.bf16.vlgmr.msrb.gmra.mxu1 %v7664_v44  ;;  %v7075_v27 = vld [vmem:[#allocation5 + $0x4a4] sm:$0xf0]  ;;  %v5496_v40 = vld [vmem:[#allocation5 + $0x6d0] sm:$0xf]  ;;  %v7173_v11 = vld [vmem:[#allocation5 + $0x7b4] sm:$0xf0] }
  0x52   :  { %3781 = vmatpush.bf16.msra.mxu1 %v5257_v29  ;;  %3750 = vmatmul.bf16.vlgmr.msrb.gmra.mxu2 %v7658_v38  ;;  %v7091_v29 = vld [vmem:[#allocation5 + $0x524] sm:$0xf0]  ;;  %v5217_v33 = vor.u32 %v7075_v27, %v5216_v25  ;;  %v5568_v27 = vld [vmem:[#allocation5 + $0x760] sm:$0xf]  ;;  %v5608_v10 = vld [vmem:[#allocation5 + $0x7b0] sm:$0xf] }
  0x53   :  { %3794 = vmatpush.bf16.msra.mxu2 %v5321_v30  ;;  %3763 = vmatmul.bf16.vlgmr.msrb.gmra.mxu3 %v7662_v42  ;;  %v5344_v30 = vld [vmem:[#allocation5 + $0x5a0] sm:$0xf] }
  0x54   :  { %3807 = vmatpush.bf16.msra.mxu3 %v5385_v34  ;;  %v5281_v34 = vor.u32 %v7091_v29, %v5280_v28  ;;  %v5345_v39 = vor.u32 %v7107_v31, %v5344_v30  ;;  %v7163_v28 = vld [vmem:[#allocation5 + $0x764] sm:$0xf0]  ;;  %v5632_v31 = vld [vmem:[#allocation5 + $0x7e0] sm:$0xf] }
  0x55   :  { %3769 = vmatpush.bf16.msra.mxu0 %v5185_v43  ;;  %v5272_v43 = vld [vmem:[#allocation5 + $0x510] sm:$0xf]  ;;  %v5569_v36 = vor.u32 %v7163_v28, %v5568_v27 }
  0x56   :  { %3782 = vmatpush.bf16.msra.mxu1 %v5249_v45  ;;  %v7089_v45 = vld [vmem:[#allocation5 + $0x514] sm:$0xf0] }
  0x57   :  { %3795 = vmatpush.bf16.msra.mxu2 %v5313_v46  ;;  %v5336_v46 = vld [vmem:[#allocation5 + $0x590] sm:$0xf]  ;;  %v5273_v54 = vor.u32 %v7089_v45, %v5272_v43  ;;  %v7145_v45 = vld [vmem:[#allocation5 + $0x6d4] sm:$0xf0] }
  0x58   :  { %3808 = vmatpush.bf16.msra.mxu3 %v5377_v50  ;;  %v7055_v50 = vld [vmem:[#allocation5 + $0x404] sm:$0xf0] }
  0x59   :  { %3770 = vmatpush.bf16.msra.mxu0 %v5177_v56  ;;  %v7087_v56 = vld [vmem:[#allocation5 + $0x504] sm:$0xf0]  ;;  %v5137_v1 = vor.u32 %v7055_v50, %v5136_v48  ;;  %v5624_v48 = vld [vmem:[#allocation5 + $0x7d0] sm:$0xf] }
  0x5a   :  { %3783 = vmatpush.bf16.msra.mxu1 %v5241_v57  ;;  %v62_v57 = vld [vmem:[#allocation2 + $0x20] sm:$0xff]  ;;  %v5265_v9 = vor.u32 %v7087_v56, %v5264_v55  ;;  %v5488_v55 = vld [vmem:[#allocation5 + $0x6c0] sm:$0xf] }
  0x5b   :  { %3796 = vmatpush.bf16.msra.mxu2 %v5305_v58  ;;  %v5337_v58 = vor.u32 %v7105_v47, %v5336_v46  ;;  %v685_v13 = vunpack.c.h.b16 %v62_v57  ;;  %v5560_v46 = vld [vmem:[#allocation5 + $0x750] sm:$0xf]  ;;  %v7161_v47 = vld [vmem:[#allocation5 + $0x754] sm:$0xf0] }
  0x5c   :  { %3809 = vmatpush.bf16.msra.mxu3 %v5369_v62  ;;  %v5448_v62 = vld [vmem:[#allocation5 + $0x670] sm:$0xf] }
  0x5d   :  { %3771 = vmatpush.bf16.msra.mxu0 %v5169_v5  ;;  %v7165_v5 = vld [vmem:[#allocation5 + $0x774] sm:$0xf0]  ;;  %v5449_v15 = vor.u32 %v7133_v63, %v5448_v62  ;;  %v7674_v30 = vpack.c.b16 %v685_v13, %v685_v13 }
  0x5e   :  { %3784 = vmatpush.bf16.msra.mxu1 %v5233_v7  ;;  %v684_v7 = vunpack.c.l.b16 %v62_v57  ;;  %v7143_v57 = vld [vmem:[#allocation5 + $0x6c4] sm:$0xf0] }
  0x5f   :  { %3797 = vmatpush.bf16.msra.mxu2 %v5297_v8  ;;  %v5201_v8 = vor.u32 %v7071_v52, %v5200_v51  ;;  %v5497_v51 = vor.u32 %v7145_v45, %v5496_v40  ;;  %v5561_v52 = vor.u32 %v7161_v47, %v5560_v46  ;;  %v5489_v63 = vor.u32 %v7143_v57, %v5488_v55  ;;  %v7153_v40 = vld [vmem:[#allocation5 + $0x714] sm:$0xf0]  ;;  %v5392_v46 = vld [vmem:[#allocation5 + $0x600] sm:$0xf] }
  0x60   :  { %3810 = vmatpush.bf16.msra.mxu3 %v5361_v12  ;;  %v686_v12 = vunpack.c.l.b16 %v63_v61  ;;  %v7670_v25 = vpack.c.b16 %v684_v7, %v684_v7  ;;  %v7175_v61 = vld [vmem:[#allocation5 + $0x7c4] sm:$0xf0]  ;;  %v7141_v7 = vld [vmem:[#allocation5 + $0x6b4] sm:$0xf0]  ;;  %v64_v55 = vld [vmem:[#allocation2 + $0x30] sm:$0xff] }
  0x61   :  { %3772 = vmatpush.bf16.msra.mxu0 %v5161_v18  ;;  %v5577_v18 = vor.u32 %v7165_v5, %v5576_v3  ;;  %v5480_v3 = vld [vmem:[#allocation5 + $0x6b0] sm:$0xf]  ;;  %v5617_v5 = vor.u32 %v7175_v61, %v5616_v60  ;;  %v7169_v45 = vld [vmem:[#allocation5 + $0x794] sm:$0xf0]  ;;  %v5584_v57 = vld [vmem:[#allocation5 + $0x780] sm:$0xf] }
  0x62   :  { %3785 = vmatpush.bf16.msra.mxu1 %v5225_v19  ;;  %v5440_v19 = vld [vmem:[#allocation5 + $0x660] sm:$0xf]  ;;  %v7672_v29 = vpack.c.b16 %v686_v12, %v686_v12  ;;  %v5481_v13 = vor.u32 %v7141_v7, %v5480_v3  ;;  %v5704_v60 = vld [vmem:[#allocation5 + $0x870] sm:$0xf]  ;;  %v7197_v61 = vld [vmem:[#allocation5 + $0x874] sm:$0xf0]  ;;  %v688_v3 = vunpack.c.l.b16 %v64_v55 }
  0x63   :  { %3798 = vmatpush.bf16.msra.mxu2 %v5289_v22  ;;  %v7131_v22 = vld [vmem:[#allocation5 + $0x664] sm:$0xf0] }
  0x64   :  { %3811 = vmatpush.bf16.msra.mxu3 %v5353_v26  ;;  %v7147_v26 = vld [vmem:[#allocation5 + $0x6e4] sm:$0xf0] }
  0x65   :  { %3773 = vmatpush.bf16.msra.mxu0 %v5153_v32  ;;  %v7179_v32 = vld [vmem:[#allocation5 + $0x7e4] sm:$0xf0]  ;;  %v5505_v35 = vor.u32 %v7147_v26, %v5504_v23 }
  0x66   :  { %3786 = vmatpush.bf16.msra.mxu1 %v5217_v33  ;;  %v7676_v33 = vpack.c.b16 %v687_v16, %v687_v16  ;;  %v5633_v43 = vor.u32 %v7179_v32, %v5632_v31  ;;  %v7123_v16 = vld [vmem:[#allocation5 + $0x624] sm:$0xf0]  ;;  %v5400_v32 = vld [vmem:[#allocation5 + $0x610] sm:$0xf] }
  0x67   :  { %3799 = vmatpush.bf16.msra.mxu2 %v5281_v34  ;;  %v5441_v34 = vor.u32 %v7131_v22, %v5440_v19  ;;  %v7139_v19 = vld [vmem:[#allocation5 + $0x6a4] sm:$0xf0]  ;;  %v5536_v22 = vld [vmem:[#allocation5 + $0x720] sm:$0xf] }
  0x68   :  { %3812 = vmatpush.bf16.msra.mxu3 %v5345_v39  ;;  %v7129_v39 = vld [vmem:[#allocation5 + $0x654] sm:$0xf0]  ;;  %v7155_v23 = vld [vmem:[#allocation5 + $0x724] sm:$0xf0] }
  0x69   :  { %3774 = vmatpush.bf16.msra.mxu0 %v5145_v49  ;;  %v7177_v49 = vld [vmem:[#allocation5 + $0x7d4] sm:$0xf0]  ;;  %v5433_v50 = vor.u32 %v7129_v39, %v5432_v37  ;;  %v7171_v26 = vld [vmem:[#allocation5 + $0x7a4] sm:$0xf0]  ;;  %v5537_v31 = vor.u32 %v7155_v23, %v5536_v22  ;;  %v5528_v39 = vld [vmem:[#allocation5 + $0x710] sm:$0xf]  ;;  %v7682_v23 = vpack.c.b16 %v688_v3, %v688_v3 }
  0x6a   :  { %3787 = vmatpush.bf16.msra.mxu1 %v5209_v53  ;;  %v5424_v53 = vld [vmem:[#allocation5 + $0x640] sm:$0xf]  ;;  %v5625_v56 = vor.u32 %v7177_v49, %v5624_v48  ;;  %v7137_v37 = vld [vmem:[#allocation5 + $0x694] sm:$0xf0]  ;;  %v7119_v48 = vld [vmem:[#allocation5 + $0x604] sm:$0xf0] }
  0x6b   :  { %3800 = vmatpush.bf16.msra.mxu2 %v5273_v54  ;;  %v7127_v54 = vld [vmem:[#allocation5 + $0x644] sm:$0xf0]  ;;  %v5456_v49 = vld [vmem:[#allocation5 + $0x680] sm:$0xf]  ;;  %v5672_v3 = vld [vmem:[#allocation5 + $0x830] sm:$0xf] }
  0x6c   :  { %3813 = vmatpush.bf16.msra.mxu3 %v5337_v58  ;;  %v5552_v58 = vld [vmem:[#allocation5 + $0x740] sm:$0xf]  ;;  %v5425_v62 = vor.u32 %v7127_v54, %v5424_v53  ;;  %v7151_v54 = vld [vmem:[#allocation5 + $0x704] sm:$0xf0] }
  0x6d   :  { %3775 = vmatpush.bf16.msra.mxu0 %v5137_v1  ;;  %v5553_v0 = vor.u32 %v7159_v59, %v5552_v58  ;;  %v5416_v1 = vld [vmem:[#allocation5 + $0x630] sm:$0xf]  ;;  %v5520_v53 = vld [vmem:[#allocation5 + $0x700] sm:$0xf]  ;;  %v7167_v58 = vld [vmem:[#allocation5 + $0x784] sm:$0xf0] }
  0x6e   :  { %3788 = vmatpush.bf16.msra.mxu1 %v5201_v8  ;;  %v5544_v8 = vld [vmem:[#allocation5 + $0x730] sm:$0xf]  ;;  %v5417_v12 = vor.u32 %v7125_v2, %v5416_v1  ;;  %v65_v59 = vld [vmem:[#allocation2 + $0x38] sm:$0xff]  ;;  %v7229_v2 = vld [vmem:[#allocation5 + $0x974] sm:$0xf0]  ;;  %v5521_v7 = vor.u32 %v7151_v54, %v5520_v53 }
  0x6f   :  { %3801 = vmatpush.bf16.msra.mxu2 %v5265_v9  ;;  %v7157_v9 = vld [vmem:[#allocation5 + $0x734] sm:$0xf0]  ;;  %v5832_v1 = vld [vmem:[#allocation5 + $0x970] sm:$0xf] }
  0x70   :  { %3814 = vmatpush.bf16.msra.mxu3 %v5329_v14  ;;  %3776 = vmatmul.bf16.vlgmr.msra.gmra.mxu0 %v7670_v25  ;;  %v5545_v14 = vor.u32 %v7157_v9, %v5544_v8  ;;  %v5896_v8 = vld [vmem:[#allocation5 + $0x9f0] sm:$0xf]  ;;  %v7245_v9 = vld [vmem:[#allocation5 + $0x9f4] sm:$0xf0] }
  0x71   :  { %3820 = vmatpush.bf16.msrb.mxu0 %v5449_v15  ;;  %3789 = vmatmul.bf16.vlgmr.msra.gmra.mxu1 %v7674_v30  ;;  %v5408_v15 = vld [vmem:[#allocation5 + $0x620] sm:$0xf]  ;;  %v5897_v22 = vor.u32 %v7245_v9, %v5896_v8  ;;  %v7205_v9 = vld [vmem:[#allocation5 + $0x8b4] sm:$0xf0] }
  0x72   :  { %3833 = vmatpush.bf16.msrb.mxu1 %v5513_v17  ;;  %3802 = vmatmul.bf16.vlgmr.msra.gmra.mxu2 %v7672_v29  ;;  %v5472_v17 = vld [vmem:[#allocation5 + $0x6a0] sm:$0xf]  ;;  %v5409_v27 = vor.u32 %v7123_v16, %v5408_v15  ;;  %v5833_v16 = vor.u32 %v7229_v2, %v5832_v1 }
  0x73   :  { %3846 = vmatpush.bf16.msrb.mxu2 %v5577_v18  ;;  %3815 = vmatmul.bf16.vlgmr.msra.gmra.mxu3 %v7676_v33  ;;  %v5609_v18 = vor.u32 %v7173_v11, %v5608_v10  ;;  %v5473_v28 = vor.u32 %v7139_v19, %v5472_v17  ;;  %v690_v10 = vunpack.c.l.b16 %v65_v59  ;;  %v689_v11 = vunpack.c.h.b16 %v64_v55  ;;  %v5696_v17 = vld [vmem:[#allocation5 + $0x860] sm:$0xf] }
  0x74   :  { %3859 = vmatpush.bf16.msrb.mxu3 %v5641_v24  ;;  %v5600_v24 = vld [vmem:[#allocation5 + $0x7a0] sm:$0xf] }
  0x75   :  { %3821 = vmatpush.bf16.msrb.mxu0 %v5441_v34  ;;  %v7121_v34 = vld [vmem:[#allocation5 + $0x614] sm:$0xf0]  ;;  %v5760_v19 = vld [vmem:[#allocation5 + $0x8e0] sm:$0xf] }
  0x76   :  { %3834 = vmatpush.bf16.msrb.mxu1 %v5505_v35  ;;  %v5464_v35 = vld [vmem:[#allocation5 + $0x690] sm:$0xf]  ;;  %v5401_v47 = vor.u32 %v7121_v34, %v5400_v32  ;;  %v5888_v32 = vld [vmem:[#allocation5 + $0x9e0] sm:$0xf]  ;;  %v7243_v34 = vld [vmem:[#allocation5 + $0x9e4] sm:$0xf0] }
  0x77   :  { %3847 = vmatpush.bf16.msrb.mxu2 %v5569_v36  ;;  %v5601_v36 = vor.u32 %v7171_v26, %v5600_v24  ;;  %v7211_v24 = vld [vmem:[#allocation5 + $0x8e4] sm:$0xf0]  ;;  %v5824_v26 = vld [vmem:[#allocation5 + $0x960] sm:$0xf] }
  0x78   :  { %3860 = vmatpush.bf16.msrb.mxu3 %v5633_v43  ;;  %v5592_v43 = vld [vmem:[#allocation5 + $0x790] sm:$0xf]  ;;  %v5680_v55 = vld [vmem:[#allocation5 + $0x840] sm:$0xf] }
  0x79   :  { %3822 = vmatpush.bf16.msrb.mxu0 %v5433_v50  ;;  %v7135_v50 = vld [vmem:[#allocation5 + $0x684] sm:$0xf0] }
  0x7a   :  { %3835 = vmatpush.bf16.msrb.mxu1 %v5497_v51  ;;  %v5465_v51 = vor.u32 %v7137_v37, %v5464_v35  ;;  %v5761_v37 = vor.u32 %v7211_v24, %v5760_v19  ;;  %v5728_v19 = vld [vmem:[#allocation5 + $0x8a0] sm:$0xf]  ;;  %v7203_v24 = vld [vmem:[#allocation5 + $0x8a4] sm:$0xf0] }
  0x7b   :  { %3848 = vmatpush.bf16.msrb.mxu2 %v5561_v52  ;;  %v5529_v52 = vor.u32 %v7153_v40, %v5528_v39  ;;  %v5688_v40 = vld [vmem:[#allocation5 + $0x850] sm:$0xf] }
  0x7c   :  { %3861 = vmatpush.bf16.msrb.mxu3 %v5625_v56  ;;  %v5593_v56 = vor.u32 %v7169_v45, %v5592_v43  ;;  %v7193_v43 = vld [vmem:[#allocation5 + $0x854] sm:$0xf0]  ;;  %v5752_v45 = vld [vmem:[#allocation5 + $0x8d0] sm:$0xf] }
  0x7d   :  { %3823 = vmatpush.bf16.msrb.mxu0 %v5425_v62  ;;  %v5768_v62 = vld [vmem:[#allocation5 + $0x8f0] sm:$0xf] }
  0x7e   :  { %3836 = vmatpush.bf16.msrb.mxu1 %v5489_v63  ;;  %v5393_v63 = vor.u32 %v7119_v48, %v5392_v46  ;;  %v5889_v46 = vor.u32 %v7243_v34, %v5888_v32  ;;  %v5816_v48 = vld [vmem:[#allocation5 + $0x950] sm:$0xf]  ;;  %v5856_v32 = vld [vmem:[#allocation5 + $0x9a0] sm:$0xf]  ;;  %v7235_v34 = vld [vmem:[#allocation5 + $0x9a4] sm:$0xf0] }
  0x7f   :  { %3849 = vmatpush.bf16.msrb.mxu2 %v5553_v0  ;;  %v7213_v0 = vld [vmem:[#allocation5 + $0x8f4] sm:$0xf0] }
  0x80   :  { %3862 = vmatpush.bf16.msrb.mxu3 %v5617_v5  ;;  %v5457_v5 = vor.u32 %v7135_v50, %v5456_v49  ;;  %v5769_v15 = vor.u32 %v7213_v0, %v5768_v62  ;;  %v7225_v49 = vld [vmem:[#allocation5 + $0x954] sm:$0xf0]  ;;  %v5880_v50 = vld [vmem:[#allocation5 + $0x9d0] sm:$0xf]  ;;  %v5872_v62 = vld [vmem:[#allocation5 + $0x9c0] sm:$0xf] }
  0x81   :  { %3824 = vmatpush.bf16.msrb.mxu0 %v5417_v12  ;;  %v5585_v12 = vor.u32 %v7167_v58, %v5584_v57  ;;  %v5817_v54 = vor.u32 %v7225_v49, %v5816_v48  ;;  %v5744_v57 = vld [vmem:[#allocation5 + $0x8c0] sm:$0xf]  ;;  %v5784_v48 = vld [vmem:[#allocation5 + $0x910] sm:$0xf]  ;;  %v7217_v49 = vld [vmem:[#allocation5 + $0x914] sm:$0xf0] }
  0x82   :  { %3837 = vmatpush.bf16.msrb.mxu1 %v5481_v13  ;;  %v5705_v13 = vor.u32 %v7197_v61, %v5704_v60  ;;  %v5808_v60 = vld [vmem:[#allocation5 + $0x940] sm:$0xf]  ;;  %v7223_v61 = vld [vmem:[#allocation5 + $0x944] sm:$0xf0] }
  0x83   :  { %3850 = vmatpush.bf16.msrb.mxu2 %v5545_v14  ;;  %v691_v14 = vunpack.c.h.b16 %v65_v59  ;;  %v7207_v59 = vld [vmem:[#allocation5 + $0x8c4] sm:$0xf0]  ;;  %v5809_v2 = vor.u32 %v7223_v61, %v5808_v60  ;;  %v66_v61 = vld [vmem:[#allocation2 + $0x40] sm:$0xff] }
  0x84   :  { %3863 = vmatpush.bf16.msrb.mxu3 %v5609_v18  ;;  %v7195_v18 = vld [vmem:[#allocation5 + $0x864] sm:$0xf0]  ;;  %v5745_v1 = vor.u32 %v7207_v59, %v5744_v57  ;;  %v5776_v59 = vld [vmem:[#allocation5 + $0x900] sm:$0xf] }
  0x85   :  { %3825 = vmatpush.bf16.msrb.mxu0 %v5409_v27  ;;  %v7227_v27 = vld [vmem:[#allocation5 + $0x964] sm:$0xf0]  ;;  %v7688_v35 = vpack.c.b16 %v691_v14, %v691_v14 }
  0x86   :  { %3838 = vmatpush.bf16.msrb.mxu1 %v5473_v28  ;;  %v7684_v28 = vpack.c.b16 %v690_v10, %v690_v10  ;;  %v5825_v39 = vor.u32 %v7227_v27, %v5824_v26  ;;  %v5800_v10 = vld [vmem:[#allocation5 + $0x930] sm:$0xf]  ;;  %v5792_v26 = vld [vmem:[#allocation5 + $0x920] sm:$0xf]  ;;  %v7219_v27 = vld [vmem:[#allocation5 + $0x924] sm:$0xf0] }
  0x87   :  { %3851 = vmatpush.bf16.msrb.mxu2 %v5537_v31  ;;  %v7686_v31 = vpack.c.b16 %v689_v11, %v689_v11  ;;  %v7221_v11 = vld [vmem:[#allocation5 + $0x934] sm:$0xf0]  ;;  %v7215_v60 = vld [vmem:[#allocation5 + $0x904] sm:$0xf0] }
  0x88   :  { %3864 = vmatpush.bf16.msrb.mxu3 %v5601_v36  ;;  %v5697_v36 = vor.u32 %v7195_v18, %v5696_v17  ;;  %v5664_v17 = vld [vmem:[#allocation5 + $0x820] sm:$0xf]  ;;  %v7187_v18 = vld [vmem:[#allocation5 + $0x824] sm:$0xf0] }
  0x89   :  { %3826 = vmatpush.bf16.msrb.mxu0 %v5401_v47  ;;  %v7209_v47 = vld [vmem:[#allocation5 + $0x8d4] sm:$0xf0] }
  0x8a   :  { %3839 = vmatpush.bf16.msrb.mxu1 %v5465_v51  ;;  %v7241_v51 = vld [vmem:[#allocation5 + $0x9d4] sm:$0xf0]  ;;  %v5753_v53 = vor.u32 %v7209_v47, %v5752_v45  ;;  %v5720_v45 = vld [vmem:[#allocation5 + $0x890] sm:$0xf] }
  0x8b   :  { %3852 = vmatpush.bf16.msrb.mxu2 %v5529_v52  ;;  %v5689_v52 = vor.u32 %v7193_v43, %v5688_v40  ;;  %v5881_v58 = vor.u32 %v7241_v51, %v5880_v50  ;;  %v5656_v40 = vld [vmem:[#allocation5 + $0x810] sm:$0xf]  ;;  %v7185_v43 = vld [vmem:[#allocation5 + $0x814] sm:$0xf0] }
  0x8c   :  { %3865 = vmatpush.bf16.msrb.mxu3 %v5593_v56  ;;  %v7191_v56 = vld [vmem:[#allocation5 + $0x844] sm:$0xf0]  ;;  %v7201_v47 = vld [vmem:[#allocation5 + $0x894] sm:$0xf0]  ;;  %v5848_v50 = vld [vmem:[#allocation5 + $0x990] sm:$0xf] }
  0x8d   :  { %3827 = vmatpush.bf16.msrb.mxu0 %v5393_v63  ;;  %v7239_v63 = vld [vmem:[#allocation5 + $0x9c4] sm:$0xf0]  ;;  %v5681_v0 = vor.u32 %v7191_v56, %v5680_v55  ;;  %v7233_v51 = vld [vmem:[#allocation5 + $0x994] sm:$0xf0]  ;;  %v5712_v55 = vld [vmem:[#allocation5 + $0x880] sm:$0xf]  ;;  %v5721_v57 = vor.u32 %v7201_v47, %v5720_v45 }
  0x8e   :  { %3840 = vmatpush.bf16.msrb.mxu1 %v5457_v5  ;;  %v7189_v5 = vld [vmem:[#allocation5 + $0x834] sm:$0xf0]  ;;  %v5873_v8 = vor.u32 %v7239_v63, %v5872_v62  ;;  %v7199_v56 = vld [vmem:[#allocation5 + $0x884] sm:$0xf0]  ;;  %v5849_v62 = vor.u32 %v7233_v51, %v5848_v50  ;;  %v5840_v63 = vld [vmem:[#allocation5 + $0x980] sm:$0xf] }
  0x8f   :  { %3853 = vmatpush.bf16.msrb.mxu2 %v5521_v7  ;;  %v5736_v7 = vld [vmem:[#allocation5 + $0x8b0] sm:$0xf]  ;;  %v5673_v14 = vor.u32 %v7189_v5, %v5672_v3  ;;  %v7261_v3 = vld [vmem:[#allocation5 + $0xa74] sm:$0xf0]  ;;  %v6144_v47 = vld [vmem:[#allocation5 + $0xbe0] sm:$0xf] }
  0x90   :  { %3866 = vmatpush.bf16.msrb.mxu3 %v5585_v12  ;;  %3828 = vmatmul.bf16.vlgmr.msrb.gmra.mxu0 %v7682_v23  ;;  %v5864_v12 = vld [vmem:[#allocation5 + $0x9b0] sm:$0xf] }
  0x91   :  { %3872 = vmatpush.bf16.msra.mxu0 %v5705_v13  ;;  %3841 = vmatmul.bf16.vlgmr.msrb.gmra.mxu1 %v7686_v31  ;;  %v7237_v13 = vld [vmem:[#allocation5 + $0x9b4] sm:$0xf0]  ;;  %v6024_v5 = vld [vmem:[#allocation5 + $0xaf0] sm:$0xf] }
  0x92   :  { %3885 = vmatpush.bf16.msra.mxu1 %v5769_v15  ;;  %3854 = vmatmul.bf16.vlgmr.msrb.gmra.mxu2 %v7684_v28  ;;  %v5737_v15 = vor.u32 %v7205_v9, %v5736_v7  ;;  %v6088_v9 = vld [vmem:[#allocation5 + $0xb70] sm:$0xf] }
  0x93   :  { %3898 = vmatpush.bf16.msra.mxu2 %v5833_v16  ;;  %3867 = vmatmul.bf16.vlgmr.msrb.gmra.mxu3 %v7688_v35  ;;  %v5801_v16 = vor.u32 %v7221_v11, %v5800_v10  ;;  %v7293_v10 = vld [vmem:[#allocation5 + $0xb74] sm:$0xf0]  ;;  %v692_v11 = vunpack.c.l.b16 %v66_v61 }
  0x94   :  { %3911 = vmatpush.bf16.msra.mxu3 %v5897_v22  ;;  %v5865_v22 = vor.u32 %v7237_v13, %v5864_v12  ;;  %v5713_v12 = vor.u32 %v7199_v56, %v5712_v55  ;;  %v5777_v13 = vor.u32 %v7215_v60, %v5776_v59  ;;  %v6008_v55 = vld [vmem:[#allocation5 + $0xad0] sm:$0xf]  ;;  %v7289_v59 = vld [vmem:[#allocation5 + $0xb54] sm:$0xf0] }
  0x95   :  { %3873 = vmatpush.bf16.msra.mxu0 %v5697_v36  ;;  %v5665_v36 = vor.u32 %v7187_v18, %v5664_v17  ;;  %v693_v17 = vunpack.c.h.b16 %v66_v61  ;;  %v6136_v60 = vld [vmem:[#allocation5 + $0xbd0] sm:$0xf]  ;;  %v7305_v61 = vld [vmem:[#allocation5 + $0xbd4] sm:$0xf0] }
  0x96   :  { %3886 = vmatpush.bf16.msra.mxu1 %v5761_v37  ;;  %v5729_v37 = vor.u32 %v7203_v24, %v5728_v19 }
  0x97   :  { %3899 = vmatpush.bf16.msra.mxu2 %v5825_v39  ;;  %v5793_v39 = vor.u32 %v7219_v27, %v5792_v26  ;;  %v6089_v26 = vor.u32 %v7293_v10, %v6088_v9  ;;  %v5952_v27 = vld [vmem:[#allocation5 + $0xa60] sm:$0xf]  ;;  %v7287_v9 = vld [vmem:[#allocation5 + $0xb44] sm:$0xf0] }
  0x98   :  { %3912 = vmatpush.bf16.msra.mxu3 %v5889_v46  ;;  %v5857_v46 = vor.u32 %v7235_v34, %v5856_v32  ;;  %v7259_v32 = vld [vmem:[#allocation5 + $0xa64] sm:$0xf0]  ;;  %v6016_v34 = vld [vmem:[#allocation5 + $0xae0] sm:$0xf] }
  0x99   :  { %3874 = vmatpush.bf16.msra.mxu0 %v5689_v52  ;;  %v5648_v52 = vld [vmem:[#allocation5 + $0x800] sm:$0xf]  ;;  %v5953_v50 = vor.u32 %v7259_v32, %v5952_v27  ;;  %v6120_v27 = vld [vmem:[#allocation5 + $0xbb0] sm:$0xf]  ;;  %v7301_v32 = vld [vmem:[#allocation5 + $0xbb4] sm:$0xf0] }
  0x9a   :  { %3887 = vmatpush.bf16.msra.mxu1 %v5753_v53  ;;  %v5657_v53 = vor.u32 %v7185_v43, %v5656_v40  ;;  %v6080_v40 = vld [vmem:[#allocation5 + $0xb60] sm:$0xf]  ;;  %v7291_v43 = vld [vmem:[#allocation5 + $0xb64] sm:$0xf0] }
  0x9b   :  { %3900 = vmatpush.bf16.msra.mxu2 %v5817_v54  ;;  %v7183_v54 = vld [vmem:[#allocation5 + $0x804] sm:$0xf0]  ;;  %v6128_v10 = vld [vmem:[#allocation5 + $0xbc0] sm:$0xf] }
  0x9c   :  { %3913 = vmatpush.bf16.msra.mxu3 %v5881_v58  ;;  %v5785_v58 = vor.u32 %v7217_v49, %v5784_v48  ;;  %v5649_v7 = vor.u32 %v7183_v54, %v5648_v52  ;;  %v7307_v48 = vld [vmem:[#allocation5 + $0xbe4] sm:$0xf0]  ;;  %v6081_v52 = vor.u32 %v7291_v43, %v6080_v40  ;;  %v7257_v54 = vld [vmem:[#allocation5 + $0xa54] sm:$0xf0]  ;;  %v5920_v43 = vld [vmem:[#allocation5 + $0xa20] sm:$0xf] }
  0x9d   :  { %3875 = vmatpush.bf16.msra.mxu0 %v5681_v0  ;;  %v7231_v0 = vld [vmem:[#allocation5 + $0x984] sm:$0xf0]  ;;  %v6145_v56 = vor.u32 %v7307_v48, %v6144_v47  ;;  %v5984_v48 = vld [vmem:[#allocation5 + $0xaa0] sm:$0xf] }
  0x9e   :  { %3888 = vmatpush.bf16.msra.mxu1 %v5745_v1  ;;  %v67_v1 = vld [vmem:[#allocation2 + $0x48] sm:$0xff]  ;;  %v5841_v18 = vor.u32 %v7231_v0, %v5840_v63  ;;  %v7251_v47 = vld [vmem:[#allocation5 + $0xa24] sm:$0xf0] }
  0x9f   :  { %3901 = vmatpush.bf16.msra.mxu2 %v5809_v2  ;;  %v5960_v2 = vld [vmem:[#allocation5 + $0xa70] sm:$0xf] }
  0xa0   :  { %3914 = vmatpush.bf16.msra.mxu3 %v5873_v8  ;;  %v7277_v8 = vld [vmem:[#allocation5 + $0xaf4] sm:$0xf0]  ;;  %v5961_v19 = vor.u32 %v7261_v3, %v5960_v2  ;;  %v7255_v2 = vld [vmem:[#allocation5 + $0xa44] sm:$0xf0]  ;;  %v6000_v3 = vld [vmem:[#allocation5 + $0xac0] sm:$0xf] }
  0xa1   :  { %3876 = vmatpush.bf16.msra.mxu0 %v5673_v14  ;;  %v6152_v14 = vld [vmem:[#allocation5 + $0xbf0] sm:$0xf]  ;;  %v6025_v24 = vor.u32 %v7277_v8, %v6024_v5  ;;  %v6137_v5 = vor.u32 %v7305_v61, %v6136_v60  ;;  %v6064_v8 = vld [vmem:[#allocation5 + $0xb40] sm:$0xf] }
  0xa2   :  { %3889 = vmatpush.bf16.msra.mxu1 %v5737_v15  ;;  %v7309_v15 = vld [vmem:[#allocation5 + $0xbf4] sm:$0xf0] }
  0xa3   :  { %3902 = vmatpush.bf16.msra.mxu2 %v5801_v16  ;;  %v694_v16 = vunpack.c.l.b16 %v67_v1 }
  0xa4   :  { %3915 = vmatpush.bf16.msra.mxu3 %v5865_v22  ;;  %v695_v22 = vunpack.c.h.b16 %v67_v1  ;;  %v5936_v1 = vld [vmem:[#allocation5 + $0xa40] sm:$0xf] }
  0xa5   :  { %3877 = vmatpush.bf16.msra.mxu0 %v5665_v36  ;;  %v6153_v36 = vor.u32 %v7309_v15, %v6152_v14  ;;  %v7696_v45 = vpack.c.b16 %v694_v16, %v694_v16  ;;  %v6065_v15 = vor.u32 %v7287_v9, %v6064_v8  ;;  %v7253_v16 = vld [vmem:[#allocation5 + $0xa34] sm:$0xf0] }
  0xa6   :  { %3890 = vmatpush.bf16.msra.mxu1 %v5729_v37  ;;  %v7694_v37 = vpack.c.b16 %v692_v11, %v692_v11  ;;  %v7700_v49 = vpack.c.b16 %v695_v22, %v695_v22  ;;  %v7303_v11 = vld [vmem:[#allocation5 + $0xbc4] sm:$0xf0]  ;;  %v7269_v22 = vld [vmem:[#allocation5 + $0xab4] sm:$0xf0] }
  0xa7   :  { %3903 = vmatpush.bf16.msra.mxu2 %v5793_v39  ;;  %v7275_v39 = vld [vmem:[#allocation5 + $0xae4] sm:$0xf0] }
  0xa8   :  { %3916 = vmatpush.bf16.msra.mxu3 %v5857_v46  ;;  %v7698_v46 = vpack.c.b16 %v693_v17, %v693_v17  ;;  %v6017_v51 = vor.u32 %v7275_v39, %v6016_v34  ;;  %v5992_v17 = vld [vmem:[#allocation5 + $0xab0] sm:$0xf] }
  0xa9   :  { %3878 = vmatpush.bf16.msra.mxu0 %v5657_v53  ;;  %v5944_v53 = vld [vmem:[#allocation5 + $0xa50] sm:$0xf]  ;;  %v5993_v39 = vor.u32 %v7269_v22, %v5992_v17  ;;  %v6032_v22 = vld [vmem:[#allocation5 + $0xb00] sm:$0xf] }
  0xaa   :  { %3891 = vmatpush.bf16.msra.mxu1 %v5721_v57  ;;  %v7273_v57 = vld [vmem:[#allocation5 + $0xad4] sm:$0xf0] }
  0xab   :  { %3904 = vmatpush.bf16.msra.mxu2 %v5785_v58  ;;  %v6072_v58 = vld [vmem:[#allocation5 + $0xb50] sm:$0xf]  ;;  %v6009_v63 = vor.u32 %v7273_v57, %v6008_v55  ;;  %v7299_v55 = vld [vmem:[#allocation5 + $0xba4] sm:$0xf0]  ;;  %v5921_v57 = vor.u32 %v7251_v47, %v5920_v43  ;;  %v7325_v43 = vld [vmem:[#allocation5 + $0xc74] sm:$0xf0] }
  0xac   :  { %3917 = vmatpush.bf16.msra.mxu3 %v5849_v62  ;;  %v5945_v62 = vor.u32 %v7257_v54, %v5944_v53  ;;  %v6073_v0 = vor.u32 %v7289_v59, %v6072_v58  ;;  %v7283_v53 = vld [vmem:[#allocation5 + $0xb24] sm:$0xf0]  ;;  %v6112_v54 = vld [vmem:[#allocation5 + $0xba0] sm:$0xf]  ;;  %v6280_v47 = vld [vmem:[#allocation5 + $0xcf0] sm:$0xf] }
  0xad   :  { %3879 = vmatpush.bf16.msra.mxu0 %v5649_v7  ;;  %v7271_v7 = vld [vmem:[#allocation5 + $0xac4] sm:$0xf0] }
  0xae   :  { %3892 = vmatpush.bf16.msra.mxu1 %v5713_v12  ;;  %v5937_v12 = vor.u32 %v7255_v2, %v5936_v1  ;;  %v6001_v14 = vor.u32 %v7271_v7, %v6000_v3  ;;  %v6113_v2 = vor.u32 %v7299_v55, %v6112_v54  ;;  %v7265_v3 = vld [vmem:[#allocation5 + $0xa94] sm:$0xf0] }
  0xaf   :  { %3905 = vmatpush.bf16.msra.mxu2 %v5777_v13  ;;  %v5928_v13 = vld [vmem:[#allocation5 + $0xa30] sm:$0xf]  ;;  %v7281_v7 = vld [vmem:[#allocation5 + $0xb14] sm:$0xf0] }
  0xb0   :  { %3918 = vmatpush.bf16.msra.mxu3 %v5841_v18  ;;  %3880 = vmatmul.bf16.vlgmr.msra.gmra.mxu0 %v7694_v37  ;;  %v652_v18 = vld [vmem:[#allocation7] sm:$0x3]  ;;  %v5929_v34 = vor.u32 %v7253_v16, %v5928_v13  ;;  %v7263_v16 = vld [vmem:[#allocation5 + $0xa84] sm:$0xf0] }
  0xb1   :  { %3924 = vmatpush.bf16.msrb.mxu0 %v5961_v19  ;;  %3893 = vmatmul.bf16.vlgmr.msra.gmra.mxu1 %v7698_v46  ;;  %v6129_v19 = vor.u32 %v7303_v11, %v6128_v10  ;;  %v6104_v10 = vld [vmem:[#allocation5 + $0xb90] sm:$0xf]  ;;  %v7297_v11 = vld [vmem:[#allocation5 + $0xb94] sm:$0xf0] }
  0xb2   :  { %3937 = vmatpush.bf16.msrb.mxu1 %v6025_v24  ;;  %3906 = vmatmul.bf16.vlgmr.msra.gmra.mxu2 %v7696_v45  ;;  %v6056_v24 = vld [vmem:[#allocation5 + $0xb30] sm:$0xf]  ;;  %v3686_v59 = vpop.f32.mrf.mxu1 }
  0xb3   :  { %3950 = vmatpush.bf16.msrb.mxu2 %v6089_v26  ;;  %3919 = vmatmul.bf16.vlgmr.msra.gmra.mxu3 %v7700_v49  ;;  %v7285_v26 = vld [vmem:[#allocation5 + $0xb34] sm:$0xf0] }
  0xb4   :  { %3963 = vmatpush.bf16.msrb.mxu3 %v6153_v36  ;;  %v654_v36 = vperm.slane %v652_v18, 0  ;;  %v6057_v40 = vor.u32 %v7285_v26, %v6056_v24  ;;  %v7279_v24 = vld [vmem:[#allocation5 + $0xb04] sm:$0xf0]  ;;  %v68_v26 = vld [vmem:[#allocation2 + $0x50] sm:$0xff] }
  0xb5   :  { %3925 = vmatpush.bf16.msrb.mxu0 %v5953_v50  ;;  %v6121_v50 = vor.u32 %v7301_v32, %v6120_v27  ;;  %v3699_v1 = vpop.f32.mrf.mxu2  ;;  %v6105_v27 = vor.u32 %v7297_v11, %v6104_v10  ;;  %v6096_v32 = vld [vmem:[#allocation5 + $0xb80] sm:$0xf]  ;;  %v696_v54 = vunpack.c.l.b16 %v68_v26 }
  0xb6   :  { %3938 = vmatpush.bf16.msrb.mxu1 %v6017_v51  ;;  %v7267_v51 = vld [vmem:[#allocation5 + $0xaa4] sm:$0xf0]  ;;  %v3712_v9 = vpop.f32.mrf.mxu3 }
  0xb7   :  { %3951 = vmatpush.bf16.msrb.mxu2 %v6081_v52  ;;  %v6048_v52 = vld [vmem:[#allocation5 + $0xb20] sm:$0xf]  ;;  %v5985_v60 = vor.u32 %v7267_v51, %v5984_v48  ;;  %v7341_v51 = vld [vmem:[#allocation5 + $0xcf4] sm:$0xf0]  ;;  %v7708_v11 = vpack.c.b16 %v696_v54, %v696_v54 }
  0xb8   :  { %3964 = vmatpush.bf16.msrb.mxu3 %v6145_v56  ;;  %v3673_v56 = vpop.f32.mrf.mxu0  ;;  %v6049_v61 = vor.u32 %v7283_v53, %v6048_v52  ;;  %v6344_v52 = vld [vmem:[#allocation5 + $0xd70] sm:$0xf]  ;;  %v7357_v53 = vld [vmem:[#allocation5 + $0xd74] sm:$0xf0]  ;;  %v6192_v54 = vld [vmem:[#allocation5 + $0xc40] sm:$0xf] }
  0xb9   :  { %3926 = vmatpush.bf16.msrb.mxu0 %v5945_v62  ;;  %v3674_v58 = vadd.f32 %v3673_v56, %v654_v36  ;;  %v5912_v62 = vld [vmem:[#allocation5 + $0xa10] sm:$0xf]  ;;  %v69_v36 = vld [vmem:[#allocation2 + $0x58] sm:$0xff] }
  0xba   :  { %3939 = vmatpush.bf16.msrb.mxu1 %v6009_v63  ;;  %v7249_v63 = vld [vmem:[#allocation5 + $0xa14] sm:$0xf0]  ;;  %v3688_v55 = vpop.f32.mrf.mxu1 }
  0xbb   :  { %3952 = vmatpush.bf16.msrb.mxu2 %v6073_v0  ;;  %v5976_v0 = vld [vmem:[#allocation5 + $0xa90] sm:$0xf]  ;;  %v3687_v8 = vadd.f32 %v3686_v59, %v3674_v58  ;;  %v5913_v13 = vor.u32 %v7249_v63, %v5912_v62  ;;  %v7373_v59 = vld [vmem:[#allocation5 + $0xdf4] sm:$0xf0]  ;;  %v7319_v55 = vld [vmem:[#allocation5 + $0xc44] sm:$0xf0] }
  0xbc   :  { %3965 = vmatpush.bf16.msrb.mxu3 %v6137_v5  ;;  %v6040_v5 = vld [vmem:[#allocation5 + $0xb10] sm:$0xf]  ;;  %v5977_v18 = vor.u32 %v7265_v3, %v5976_v0  ;;  %v6281_v3 = vor.u32 %v7341_v51, %v6280_v47  ;;  %v7353_v47 = vld [vmem:[#allocation5 + $0xd54] sm:$0xf0] }
  0xbd   :  { %3927 = vmatpush.bf16.msrb.mxu0 %v5937_v12  ;;  %v5904_v12 = vld [vmem:[#allocation5 + $0xa00] sm:$0xf]  ;;  %v3700_v17 = vadd.f32 %v3699_v1, %v3687_v8  ;;  %v6408_v58 = vld [vmem:[#allocation5 + $0xdf0] sm:$0xf]  ;;  %v3701_v62 = vpop.f32.mrf.mxu2  ;;  %v699_v1 = vunpack.c.h.b16 %v69_v36  ;;  %v7323_v8 = vld [vmem:[#allocation5 + $0xc64] sm:$0xf0] }
  0xbe   :  { %3940 = vmatpush.bf16.msrb.mxu1 %v6001_v14  ;;  %v7247_v14 = vld [vmem:[#allocation5 + $0xa04] sm:$0xf0]  ;;  %v6409_v10 = vor.u32 %v7373_v59, %v6408_v58  ;;  %v6320_v59 = vld [vmem:[#allocation5 + $0xd40] sm:$0xf] }
  0xbf   :  { %3953 = vmatpush.bf16.msrb.mxu2 %v6065_v15  ;;  %v5968_v15 = vld [vmem:[#allocation5 + $0xa80] sm:$0xf]  ;;  %v7335_v58 = vld [vmem:[#allocation5 + $0xcc4] sm:$0xf0] }
  0xc0   :  { %3966 = vmatpush.bf16.msrb.mxu3 %v6129_v19  ;;  %v6041_v19 = vor.u32 %v7281_v7, %v6040_v5  ;;  %v3675_v48 = vpop.f32.mrf.mxu0  ;;  %v5969_v56 = vor.u32 %v7263_v16, %v5968_v15  ;;  %v6345_v5 = vor.u32 %v7357_v53, %v6344_v52  ;;  %v6208_v7 = vld [vmem:[#allocation5 + $0xc60] sm:$0xf]  ;;  %v7367_v62 = vld [vmem:[#allocation5 + $0xdc4] sm:$0xf0] }
  0xc1   :  { %3928 = vmatpush.bf16.msrb.mxu0 %v5929_v34  ;;  %v7295_v34 = vld [vmem:[#allocation5 + $0xb84] sm:$0xf0]  ;;  %v6392_v48 = vld [vmem:[#allocation5 + $0xdd0] sm:$0xf] }
  0xc2   :  { %3941 = vmatpush.bf16.msrb.mxu1 %v5993_v39  ;;  %v7706_v39 = vadd.f32 %v3712_v9, %v3700_v17  ;;  %v6097_v63 = vor.u32 %v7295_v34, %v6096_v32  ;;  %v6272_v9 = vld [vmem:[#allocation5 + $0xce0] sm:$0xf]  ;;  %v7321_v32 = vld [vmem:[#allocation5 + $0xc54] sm:$0xf0]  ;;  %v6264_v34 = vld [vmem:[#allocation5 + $0xcd0] sm:$0xf] }
  0xc3   :  { %3954 = vmatpush.bf16.msrb.mxu2 %v6057_v40  ;;  %v6216_v40 = vld [vmem:[#allocation5 + $0xc70] sm:$0xf]  ;;  %v6400_v17 = vld [vmem:[#allocation5 + $0xde0] sm:$0xf] }
  0xc4   :  { %3967 = vmatpush.bf16.msrb.mxu3 %v6121_v50  ;;  %v5905_v50 = vor.u32 %v7247_v14, %v5904_v12  ;;  %v6217_v0 = vor.u32 %v7325_v43, %v6216_v40  ;;  %v7339_v12 = vld [vmem:[#allocation5 + $0xce4] sm:$0xf0]  ;;  %v7337_v40 = vld [vmem:[#allocation5 + $0xcd4] sm:$0xf0]  ;;  %v6328_v43 = vld [vmem:[#allocation5 + $0xd50] sm:$0xf] }
  0xc5   :  { %3929 = vmatpush.bf16.msrb.mxu0 %v5921_v57  ;;  %v6033_v57 = vor.u32 %v7279_v24, %v6032_v22  ;;  %v7355_v14 = vld [vmem:[#allocation5 + $0xd64] sm:$0xf0]  ;;  %v6209_v22 = vor.u32 %v7323_v8, %v6208_v7  ;;  %v6273_v24 = vor.u32 %v7339_v12, %v6272_v9  ;;  %v6265_v52 = vor.u32 %v7337_v40, %v6264_v34  ;;  %v6248_v7 = vld [vmem:[#allocation5 + $0xcb0] sm:$0xf]  ;;  %v7333_v12 = vld [vmem:[#allocation5 + $0xcb4] sm:$0xf0] }
  0xc6   :  { %3942 = vmatpush.bf16.msrb.mxu1 %v5985_v60  ;;  %v698_v60 = vunpack.c.l.b16 %v69_v36  ;;  %v6329_v53 = vor.u32 %v7353_v47, %v6328_v43  ;;  %v7315_v34 = vld [vmem:[#allocation5 + $0xc24] sm:$0xf0]  ;;  %v6304_v47 = vld [vmem:[#allocation5 + $0xd20] sm:$0xf] }
  0xc7   :  { %3955 = vmatpush.bf16.msrb.mxu2 %v6049_v61  ;;  %v697_v61 = vunpack.c.h.b16 %v68_v26  ;;  %v7331_v43 = vld [vmem:[#allocation5 + $0xca4] sm:$0xf0] }
  0xc8   :  { %3968 = vmatpush.bf16.msrb.mxu3 %v6113_v2  ;;  %v3714_v2 = vpop.f32.mrf.mxu3  ;;  %v7710_v15 = vpack.c.b16 %v698_v60, %v698_v60  ;;  %v7351_v60 = vld [vmem:[#allocation5 + $0xd44] sm:$0xf0] }
  0xc9   :  { %3930 = vmatpush.bf16.msrb.mxu0 %v5913_v13  ;;  %v6336_v13 = vld [vmem:[#allocation5 + $0xd60] sm:$0xf]  ;;  %v7712_v16 = vpack.c.b16 %v697_v61, %v697_v61  ;;  %v6321_v2 = vor.u32 %v7351_v60, %v6320_v59  ;;  %v6168_v59 = vld [vmem:[#allocation5 + $0xc10] sm:$0xf]  ;;  %v7313_v60 = vld [vmem:[#allocation5 + $0xc14] sm:$0xf0] }
  0xca   :  { %3943 = vmatpush.bf16.msrb.mxu1 %v5977_v18  ;;  %v7371_v18 = vld [vmem:[#allocation5 + $0xde4] sm:$0xf0]  ;;  %v6337_v26 = vor.u32 %v7355_v14, %v6336_v13  ;;  %v6384_v61 = vld [vmem:[#allocation5 + $0xdc0] sm:$0xf]  ;;  %v6312_v13 = vld [vmem:[#allocation5 + $0xd30] sm:$0xf] }
  0xcb   :  { %3956 = vmatpush.bf16.msrb.mxu2 %v6041_v19  ;;  %v7714_v19 = vpack.c.b16 %v699_v1, %v699_v1  ;;  %v6401_v36 = vor.u32 %v7371_v18, %v6400_v17  ;;  %v7349_v14 = vld [vmem:[#allocation5 + $0xd34] sm:$0xf0]  ;;  %v6376_v17 = vld [vmem:[#allocation5 + $0xdb0] sm:$0xf] }
  0xcc   :  { %3969 = vmatpush.bf16.msrb.mxu3 %v6105_v27  ;;  %v6200_v27 = vld [vmem:[#allocation5 + $0xc50] sm:$0xf]  ;;  %v7365_v18 = vld [vmem:[#allocation5 + $0xdb4] sm:$0xf0] }
  0xcd   :  { %3931 = vmatpush.bf16.msrb.mxu0 %v5905_v50  ;;  %v7369_v50 = vld [vmem:[#allocation5 + $0xdd4] sm:$0xf0]  ;;  %v6201_v51 = vor.u32 %v7321_v32, %v6200_v27  ;;  %v6313_v27 = vor.u32 %v7349_v14, %v6312_v13  ;;  %v6176_v32 = vld [vmem:[#allocation5 + $0xc20] sm:$0xf] }
  0xce   :  { %3944 = vmatpush.bf16.msrb.mxu1 %v5969_v56  ;;  %v6256_v56 = vld [vmem:[#allocation5 + $0xcc0] sm:$0xf]  ;;  %v3738_v9 = vpop.f32.mrf.mxu1 }
  0xcf   :  { %3957 = vmatpush.bf16.msrb.mxu2 %v6033_v57  ;;  %v6393_v57 = vor.u32 %v7369_v50, %v6392_v48  ;;  %v6257_v1 = vor.u32 %v7335_v58, %v6256_v56  ;;  %v7347_v48 = vld [vmem:[#allocation5 + $0xd24] sm:$0xf0] }
  0xd0   :  { %3970 = vmatpush.bf16.msrb.mxu3 %v6097_v63  ;;  %3932 = vmatmul.bf16.vlgmr.msrb.gmra.mxu0 %v7708_v11  ;;  %v6193_v63 = vor.u32 %v7319_v55, %v6192_v54  ;;  %v6177_v54 = vor.u32 %v7315_v34, %v6176_v32  ;;  %v6305_v58 = vor.u32 %v7347_v48, %v6304_v47  ;;  %v7359_v32 = vld [vmem:[#allocation5 + $0xd84] sm:$0xf0]  ;;  %v71_v34 = vld [vmem:[#allocation2 + $0x68] sm:$0xff] }
  0xd1   :  { %3976 = vmatpush.bf16.msra.mxu0 %v6217_v0  ;;  %3945 = vmatmul.bf16.vlgmr.msrb.gmra.mxu1 %v7712_v16  ;;  %v3725_v0 = vpop.f32.mrf.mxu0  ;;  %v7405_v48 = vld [vmem:[#allocation5 + $0xef4] sm:$0xf0] }
  0xd2   :  { %3989 = vmatpush.bf16.msra.mxu1 %v6281_v3  ;;  %3958 = vmatmul.bf16.vlgmr.msrb.gmra.mxu2 %v7710_v15  ;;  %v6184_v3 = vld [vmem:[#allocation5 + $0xc30] sm:$0xf]  ;;  %v3726_v8 = vadd.f32 %v3725_v0, %v7706_v39  ;;  %v6377_v39 = vor.u32 %v7365_v18, %v6376_v17  ;;  %v7329_v0 = vld [vmem:[#allocation5 + $0xc94] sm:$0xf0]  ;;  %v6288_v17 = vld [vmem:[#allocation5 + $0xd00] sm:$0xf] }
  0xd3   :  { %4002 = vmatpush.bf16.msra.mxu2 %v6345_v5  ;;  %3971 = vmatmul.bf16.vlgmr.msrb.gmra.mxu3 %v7714_v19  ;;  %v7317_v5 = vld [vmem:[#allocation5 + $0xc34] sm:$0xf0]  ;;  %v7343_v18 = vld [vmem:[#allocation5 + $0xd04] sm:$0xf0] }
  0xd4   :  { %4015 = vmatpush.bf16.msra.mxu3 %v6409_v10  ;;  %v6385_v10 = vor.u32 %v7367_v62, %v6384_v61  ;;  %v6232_v61 = vld [vmem:[#allocation5 + $0xc90] sm:$0xf] }
  0xd5   :  { %3977 = vmatpush.bf16.msra.mxu0 %v6209_v22  ;;  %v3739_v22 = vadd.f32 %v3738_v9, %v3726_v8  ;;  %v3751_v40 = vpop.f32.mrf.mxu2  ;;  %v6169_v8 = vor.u32 %v7313_v60, %v6168_v59  ;;  %v7311_v9 = vld [vmem:[#allocation5 + $0xc04] sm:$0xf0]  ;;  %v6233_v13 = vor.u32 %v7329_v0, %v6232_v61 }
  0xd6   :  { %3990 = vmatpush.bf16.msra.mxu1 %v6273_v24  ;;  %v6185_v24 = vor.u32 %v7317_v5, %v6184_v3  ;;  %v3740_v62 = vpop.f32.mrf.mxu1  ;;  %v6360_v3 = vld [vmem:[#allocation5 + $0xd90] sm:$0xf]  ;;  %v7361_v5 = vld [vmem:[#allocation5 + $0xd94] sm:$0xf0] }
  0xd7   :  { %4003 = vmatpush.bf16.msra.mxu2 %v6337_v26  ;;  %v6249_v26 = vor.u32 %v7333_v12, %v6248_v7  ;;  %v3752_v50 = vadd.f32 %v3751_v40, %v3739_v22  ;;  %v6160_v7 = vld [vmem:[#allocation5 + $0xc00] sm:$0xf]  ;;  %v7327_v12 = vld [vmem:[#allocation5 + $0xc84] sm:$0xf0]  ;;  %v70_v22 = vld [vmem:[#allocation2 + $0x60] sm:$0xff]  ;;  %v703_v62 = vunpack.c.h.b16 %v71_v34 }
  0xd8   :  { %4016 = vmatpush.bf16.msra.mxu3 %v6401_v36  ;;  %v6240_v36 = vld [vmem:[#allocation5 + $0xca0] sm:$0xf]  ;;  %v6472_v40 = vld [vmem:[#allocation5 + $0xe70] sm:$0xf]  ;;  %v6161_v47 = vor.u32 %v7311_v9, %v6160_v7  ;;  %v701_v59 = vunpack.c.h.b16 %v70_v22 }
  0xd9   :  { %3978 = vmatpush.bf16.msra.mxu0 %v6201_v51  ;;  %v3764_v51 = vpop.f32.mrf.mxu3  ;;  %v3727_v56 = vpop.f32.mrf.mxu0  ;;  %v6592_v9 = vld [vmem:[#allocation5 + $0xf60] sm:$0xf] }
  0xda   :  { %3991 = vmatpush.bf16.msra.mxu1 %v6265_v52  ;;  %v6368_v52 = vld [vmem:[#allocation5 + $0xda0] sm:$0xf]  ;;  %v7721_v55 = vadd.f32 %v3764_v51, %v3752_v50  ;;  %v6600_v50 = vld [vmem:[#allocation5 + $0xf70] sm:$0xf]  ;;  %v7421_v51 = vld [vmem:[#allocation5 + $0xf74] sm:$0xf0] }
  0xdb   :  { %4004 = vmatpush.bf16.msra.mxu2 %v6329_v53  ;;  %v7363_v53 = vld [vmem:[#allocation5 + $0xda4] sm:$0xf0]  ;;  %v6664_v56 = vld [vmem:[#allocation5 + $0xff0] sm:$0xf]  ;;  %v6601_v0 = vor.u32 %v7421_v51, %v6600_v50 }
  0xdc   :  { %4017 = vmatpush.bf16.msra.mxu3 %v6393_v57  ;;  %v6241_v57 = vor.u32 %v7331_v43, %v6240_v36  ;;  %v6536_v43 = vld [vmem:[#allocation5 + $0xef0] sm:$0xf] }
  0xdd   :  { %3979 = vmatpush.bf16.msra.mxu0 %v6193_v63  ;;  %v6369_v63 = vor.u32 %v7363_v53, %v6368_v52  ;;  %v700_v52 = vunpack.c.l.b16 %v70_v22 }
  0xde   :  { %3992 = vmatpush.bf16.msra.mxu1 %v6257_v1  ;;  %v6296_v1 = vld [vmem:[#allocation5 + $0xd10] sm:$0xf] }
  0xdf   :  { %4005 = vmatpush.bf16.msra.mxu2 %v6321_v2  ;;  %v7345_v2 = vld [vmem:[#allocation5 + $0xd14] sm:$0xf0]  ;;  %v7723_v7 = vpack.c.b16 %v700_v52, %v700_v52 }
  0xe0   :  { %4018 = vmatpush.bf16.msra.mxu3 %v6385_v10  ;;  %v6224_v10 = vld [vmem:[#allocation5 + $0xc80] sm:$0xf]  ;;  %v6297_v14 = vor.u32 %v7345_v2, %v6296_v1  ;;  %v7387_v2 = vld [vmem:[#allocation5 + $0xe64] sm:$0xf0] }
  0xe1   :  { %3980 = vmatpush.bf16.msra.mxu0 %v6185_v24  ;;  %v3753_v24 = vpop.f32.mrf.mxu2  ;;  %v3766_v36 = vpop.f32.mrf.mxu3  ;;  %v6225_v53 = vor.u32 %v7327_v12, %v6224_v10  ;;  %v6464_v1 = vld [vmem:[#allocation5 + $0xe60] sm:$0xf]  ;;  %v7419_v10 = vld [vmem:[#allocation5 + $0xf64] sm:$0xf0] }
  0xe2   :  { %3993 = vmatpush.bf16.msra.mxu1 %v6249_v26  ;;  %v6361_v26 = vor.u32 %v7361_v5, %v6360_v3  ;;  %v6528_v3 = vld [vmem:[#allocation5 + $0xee0] sm:$0xf]  ;;  %v6465_v22 = vor.u32 %v7387_v2, %v6464_v1 }
  0xe3   :  { %4006 = vmatpush.bf16.msra.mxu2 %v6313_v27  ;;  %v6352_v27 = vld [vmem:[#allocation5 + $0xd80] sm:$0xf] }
  0xe4   :  { %4019 = vmatpush.bf16.msra.mxu3 %v6377_v39  ;;  %v7389_v39 = vld [vmem:[#allocation5 + $0xe74] sm:$0xf0]  ;;  %v6353_v60 = vor.u32 %v7359_v32, %v6352_v27  ;;  %v6456_v27 = vld [vmem:[#allocation5 + $0xe50] sm:$0xf] }
  0xe5   :  { %3981 = vmatpush.bf16.msra.mxu0 %v6177_v54  ;;  %v6289_v54 = vor.u32 %v7343_v18, %v6288_v17  ;;  %v6473_v61 = vor.u32 %v7389_v39, %v6472_v40  ;;  %v7435_v17 = vld [vmem:[#allocation5 + $0xfe4] sm:$0xf0]  ;;  %v7729_v18 = vpack.c.b16 %v703_v62, %v703_v62  ;;  %v7385_v32 = vld [vmem:[#allocation5 + $0xe54] sm:$0xf0]  ;;  %v6584_v39 = vld [vmem:[#allocation5 + $0xf50] sm:$0xf] }
  0xe6   :  { %3994 = vmatpush.bf16.msra.mxu1 %v6241_v57  ;;  %v7437_v57 = vld [vmem:[#allocation5 + $0xff4] sm:$0xf0]  ;;  %v6457_v50 = vor.u32 %v7385_v32, %v6456_v27  ;;  %v6640_v62 = vld [vmem:[#allocation5 + $0xfc0] sm:$0xf]  ;;  %v6632_v27 = vld [vmem:[#allocation5 + $0xfb0] sm:$0xf] }
  0xe7   :  { %4007 = vmatpush.bf16.msra.mxu2 %v6305_v58  ;;  %v702_v58 = vunpack.c.l.b16 %v71_v34  ;;  %v6665_v5 = vor.u32 %v7437_v57, %v6664_v56  ;;  %v6520_v34 = vld [vmem:[#allocation5 + $0xed0] sm:$0xf]  ;;  %v7401_v40 = vld [vmem:[#allocation5 + $0xed4] sm:$0xf0]  ;;  %v6512_v56 = vld [vmem:[#allocation5 + $0xec0] sm:$0xf] }
  0xe8   :  { %4020 = vmatpush.bf16.msra.mxu3 %v6369_v63  ;;  %v6537_v63 = vor.u32 %v7405_v48, %v6536_v43  ;;  %v7417_v43 = vld [vmem:[#allocation5 + $0xf54] sm:$0xf0]  ;;  %v6521_v51 = vor.u32 %v7401_v40, %v6520_v34  ;;  %v6432_v40 = vld [vmem:[#allocation5 + $0xe20] sm:$0xf] }
  0xe9   :  { %3982 = vmatpush.bf16.msra.mxu0 %v6169_v8  ;;  %v7403_v8 = vld [vmem:[#allocation5 + $0xee4] sm:$0xf0]  ;;  %v7725_v12 = vpack.c.b16 %v702_v58, %v702_v58  ;;  %v7433_v48 = vld [vmem:[#allocation5 + $0xfd4] sm:$0xf0]  ;;  %v6585_v52 = vor.u32 %v7417_v43, %v6584_v39  ;;  %v6496_v43 = vld [vmem:[#allocation5 + $0xea0] sm:$0xf] }
  0xea   :  { %3995 = vmatpush.bf16.msra.mxu1 %v6233_v13  ;;  %v7727_v13 = vpack.c.b16 %v701_v59, %v701_v59  ;;  %v6529_v24 = vor.u32 %v7403_v8, %v6528_v3  ;;  %v7399_v58 = vld [vmem:[#allocation5 + $0xec4] sm:$0xf0]  ;;  %v6576_v59 = vld [vmem:[#allocation5 + $0xf40] sm:$0xf]  ;;  %v6440_v8 = vld [vmem:[#allocation5 + $0xe30] sm:$0xf] }
  0xeb   :  { %4008 = vmatpush.bf16.msra.mxu2 %v6297_v14  ;;  %v6656_v14 = vld [vmem:[#allocation5 + $0xfe0] sm:$0xf]  ;;  %v6513_v3 = vor.u32 %v7399_v58, %v6512_v56  ;;  %v7429_v32 = vld [vmem:[#allocation5 + $0xfb4] sm:$0xf0]  ;;  %v7379_v39 = vld [vmem:[#allocation5 + $0xe24] sm:$0xf0] }
  0xec   :  { %4021 = vmatpush.bf16.msra.mxu3 %v6361_v26  ;;  %v6593_v26 = vor.u32 %v7419_v10, %v6592_v9  ;;  %v6657_v36 = vor.u32 %v7435_v17, %v6656_v14  ;;  %v7381_v9 = vld [vmem:[#allocation5 + $0xe34] sm:$0xf0]  ;;  %v6504_v10 = vld [vmem:[#allocation5 + $0xeb0] sm:$0xf]  ;;  %v6624_v56 = vld [vmem:[#allocation5 + $0xfa0] sm:$0xf] }
  0xed   :  { %3983 = vmatpush.bf16.msra.mxu0 %v6161_v47  ;;  %v6648_v47 = vld [vmem:[#allocation5 + $0xfd0] sm:$0xf]  ;;  %v6441_v34 = vor.u32 %v7381_v9, %v6440_v8  ;;  %v7409_v9 = vld [vmem:[#allocation5 + $0xf14] sm:$0xf0] }
  0xee   :  { %3996 = vmatpush.bf16.msra.mxu1 %v6225_v53  ;;  %v6448_v53 = vld [vmem:[#allocation5 + $0xe40] sm:$0xf]  ;;  %v6649_v57 = vor.u32 %v7433_v48, %v6648_v47  ;;  %v3790_v2 = vpop.f32.mrf.mxu1  ;;  %v6633_v47 = vor.u32 %v7429_v32, %v6632_v27  ;;  %v6552_v8 = vld [vmem:[#allocation5 + $0xf10] sm:$0xf]  ;;  %v7391_v27 = vld [vmem:[#allocation5 + $0xe84] sm:$0xf0] }
  0xef   :  { %4009 = vmatpush.bf16.msra.mxu2 %v6289_v54  ;;  %v7383_v54 = vld [vmem:[#allocation5 + $0xe44] sm:$0xf0] }
  0xf0   :  { %4022 = vmatpush.bf16.msra.mxu3 %v6353_v60  ;;  %3984 = vmatmul.bf16.vlgmr.msra.gmra.mxu0 %v7723_v7  ;;  %v7415_v60 = vld [vmem:[#allocation5 + $0xf44] sm:$0xf0]  ;;  %v6449_v1 = vor.u32 %v7383_v54, %v6448_v53 }
  0xf1   :  { %4028 = vmatpush.bf16.msrb.mxu0 %v6473_v61  ;;  %3997 = vmatmul.bf16.vlgmr.msra.gmra.mxu1 %v7727_v13  ;;  %v3777_v61 = vpop.f32.mrf.mxu0 }
  0xf2   :  { %4041 = vmatpush.bf16.msrb.mxu1 %v6537_v63  ;;  %4010 = vmatmul.bf16.vlgmr.msra.gmra.mxu2 %v7725_v12  ;;  %v7431_v63 = vld [vmem:[#allocation5 + $0xfc4] sm:$0xf0] }
  0xf3   :  { %4054 = vmatpush.bf16.msrb.mxu2 %v6601_v0  ;;  %4023 = vmatmul.bf16.vlgmr.msra.gmra.mxu3 %v7729_v18  ;;  %v3778_v0 = vadd.f32 %v3777_v61, %v7721_v55  ;;  %v6641_v14 = vor.u32 %v7431_v63, %v6640_v62 }
  0xf4   :  { %4067 = vmatpush.bf16.msrb.mxu3 %v6665_v5  ;;  %v6577_v5 = vor.u32 %v7415_v60, %v6576_v59  ;;  %v6433_v59 = vor.u32 %v7379_v39, %v6432_v40  ;;  %v72_v40 = vld [vmem:[#allocation2 + $0x70] sm:$0xff] }
  0xf5   :  { %4029 = vmatpush.bf16.msrb.mxu0 %v6465_v22  ;;  %v3791_v17 = vadd.f32 %v3790_v2, %v3778_v0  ;;  %v7397_v22 = vld [vmem:[#allocation5 + $0xeb4] sm:$0xf0]  ;;  %v3803_v48 = vpop.f32.mrf.mxu2  ;;  %v6424_v0 = vld [vmem:[#allocation5 + $0xe10] sm:$0xf] }
  0xf6   :  { %4042 = vmatpush.bf16.msrb.mxu1 %v6529_v24  ;;  %v6568_v24 = vld [vmem:[#allocation5 + $0xf30] sm:$0xf]  ;;  %v6505_v55 = vor.u32 %v7397_v22, %v6504_v10  ;;  %v3816_v54 = vpop.f32.mrf.mxu3  ;;  %v3792_v60 = vpop.f32.mrf.mxu1 }
  0xf7   :  { %4055 = vmatpush.bf16.msrb.mxu2 %v6593_v26  ;;  %v7413_v26 = vld [vmem:[#allocation5 + $0xf34] sm:$0xf0]  ;;  %v3804_v53 = vadd.f32 %v3803_v48, %v3791_v17  ;;  %v6488_v2 = vld [vmem:[#allocation5 + $0xe90] sm:$0xf]  ;;  %v6416_v17 = vld [vmem:[#allocation5 + $0xe00] sm:$0xf]  ;;  %v704_v60 = vunpack.c.l.b16 %v72_v40 }
  0xf8   :  { %4068 = vmatpush.bf16.msrb.mxu3 %v6657_v36  ;;  %v6569_v36 = vor.u32 %v7413_v26, %v6568_v24  ;;  %v6616_v10 = vld [vmem:[#allocation5 + $0xf90] sm:$0xf]  ;;  %v7375_v24 = vld [vmem:[#allocation5 + $0xe04] sm:$0xf0]  ;;  %v6480_v26 = vld [vmem:[#allocation5 + $0xe80] sm:$0xf] }
  0xf9   :  { %4030 = vmatpush.bf16.msrb.mxu0 %v6457_v50  ;;  %v7395_v50 = vld [vmem:[#allocation5 + $0xea4] sm:$0xf0]  ;;  %v3779_v58 = vpop.f32.mrf.mxu0  ;;  %v7736_v61 = vadd.f32 %v3816_v54, %v3804_v53  ;;  %v6792_v53 = vld [vmem:[#allocation5 + $0x10f0] sm:$0xf] }
  0xfa   :  { %4043 = vmatpush.bf16.msrb.mxu1 %v6521_v51  ;;  %v6560_v51 = vld [vmem:[#allocation5 + $0xf20] sm:$0xf]  ;;  %v6497_v62 = vor.u32 %v7395_v50, %v6496_v43  ;;  %v73_v48 = vld [vmem:[#allocation2 + $0x78] sm:$0xff]  ;;  %v6856_v58 = vld [vmem:[#allocation5 + $0x1170] sm:$0xf] }
  0xfb   :  { %4056 = vmatpush.bf16.msrb.mxu2 %v6585_v52  ;;  %v7411_v52 = vld [vmem:[#allocation5 + $0xf24] sm:$0xf0]  ;;  %v6608_v43 = vld [vmem:[#allocation5 + $0xf80] sm:$0xf] }
  0xfc   :  { %4069 = vmatpush.bf16.msrb.mxu3 %v6649_v57  ;;  %v7427_v57 = vld [vmem:[#allocation5 + $0xfa4] sm:$0xf0]  ;;  %v6561_v63 = vor.u32 %v7411_v52, %v6560_v51  ;;  %v6728_v51 = vld [vmem:[#allocation5 + $0x1070] sm:$0xf]  ;;  %v7453_v52 = vld [vmem:[#allocation5 + $0x1074] sm:$0xf0] }
  0xfd   :  { %4031 = vmatpush.bf16.msrb.mxu0 %v6449_v1  ;;  %v7377_v1 = vld [vmem:[#allocation5 + $0xe14] sm:$0xf0]  ;;  %v3805_v50 = vpop.f32.mrf.mxu2 }
  0xfe   :  { %4044 = vmatpush.bf16.msrb.mxu1 %v6513_v3  ;;  %v6625_v3 = vor.u32 %v7427_v57, %v6624_v56  ;;  %v6425_v22 = vor.u32 %v7377_v1, %v6424_v0  ;;  %v3818_v54 = vpop.f32.mrf.mxu3  ;;  %v6417_v56 = vor.u32 %v7375_v24, %v6416_v17  ;;  %v7469_v57 = vld [vmem:[#allocation5 + $0x10f4] sm:$0xf0]  ;;  %v6920_v0 = vld [vmem:[#allocation5 + $0x11f0] sm:$0xf]  ;;  %v7451_v17 = vld [vmem:[#allocation5 + $0x1064] sm:$0xf0] }
  0xff   :  { %4057 = vmatpush.bf16.msrb.mxu2 %v6577_v5  ;;  %v7393_v5 = vld [vmem:[#allocation5 + $0xe94] sm:$0xf0]  ;;  %v6784_v24 = vld [vmem:[#allocation5 + $0x10e0] sm:$0xf]  ;;  %v7738_v54 = vpack.c.b16 %v704_v60, %v704_v60  ;;  %v6904_v60 = vld [vmem:[#allocation5 + $0x11d0] sm:$0xf] }
 0x100   :  { %4070 = vmatpush.bf16.msrb.mxu3 %v6641_v14  ;;  %v7425_v14 = vld [vmem:[#allocation5 + $0xf94] sm:$0xf0]  ;;  %v6489_v32 = vor.u32 %v7393_v5, %v6488_v2  ;;  %v706_v2 = vunpack.c.l.b16 %v73_v48 }
 0x101   :  { %4032 = vmatpush.bf16.msrb.mxu0 %v6441_v34  ;;  %v6553_v34 = vor.u32 %v7409_v9, %v6552_v8  ;;  %v6617_v39 = vor.u32 %v7425_v14, %v6616_v10  ;;  %v7501_v1 = vld [vmem:[#allocation5 + $0x11f4] sm:$0xf0]  ;;  %v6729_v8 = vor.u32 %v7453_v52, %v6728_v51  ;;  %v707_v9 = vunpack.c.h.b16 %v73_v48  ;;  %7852 = vst [vmem:[#allocation12_spill] sm:$0xff] %v7738_v54  ;;  %v6712_v51 = vld [vmem:[#allocation5 + $0x1050] sm:$0xf] }
 0x102   :  { %4045 = vmatpush.bf16.msrb.mxu1 %v6505_v55  ;;  %v6544_v55 = vld [vmem:[#allocation5 + $0xf00] sm:$0xf]  ;;  %v6793_v10 = vor.u32 %v7469_v57, %v6792_v53  ;;  %v6921_v50 = vor.u32 %v7501_v1, %v6920_v0  ;;  %v7449_v52 = vld [vmem:[#allocation5 + $0x1054] sm:$0xf0]  ;;  %v6776_v53 = vld [vmem:[#allocation5 + $0x10d0] sm:$0xf] }
 0x103   :  { %4058 = vmatpush.bf16.msrb.mxu2 %v6569_v36  ;;  %v7407_v36 = vld [vmem:[#allocation5 + $0xf04] sm:$0xf0]  ;;  %v7465_v57 = vld [vmem:[#allocation5 + $0x10d4] sm:$0xf0] }
 0x104   :  { %4071 = vmatpush.bf16.msrb.mxu3 %v6633_v47  ;;  %v7423_v47 = vld [vmem:[#allocation5 + $0xf84] sm:$0xf0]  ;;  %v6777_v0 = vor.u32 %v7465_v57, %v6776_v53  ;;  %v6824_v53 = vld [vmem:[#allocation5 + $0x1130] sm:$0xf] }
 0x105   :  { %4033 = vmatpush.bf16.msrb.mxu0 %v6433_v59  ;;  %v7485_v59 = vld [vmem:[#allocation5 + $0x1174] sm:$0xf0]  ;;  %v6609_v5 = vor.u32 %v7423_v47, %v6608_v43  ;;  %v6888_v57 = vld [vmem:[#allocation5 + $0x11b0] sm:$0xf] }
 0x106   :  { %4046 = vmatpush.bf16.msrb.mxu1 %v6497_v62  ;;  %v6481_v62 = vor.u32 %v7391_v27, %v6480_v26  ;;  %v6857_v14 = vor.u32 %v7485_v59, %v6856_v58  ;;  %v6848_v26 = vld [vmem:[#allocation5 + $0x1160] sm:$0xf]  ;;  %v7483_v27 = vld [vmem:[#allocation5 + $0x1164] sm:$0xf0]  ;;  %v6840_v58 = vld [vmem:[#allocation5 + $0x1150] sm:$0xf] }
 0x107   :  { %4059 = vmatpush.bf16.msrb.mxu2 %v6561_v63  ;;  %v6545_v63 = vor.u32 %v7407_v36, %v6544_v55  ;;  %v6912_v36 = vld [vmem:[#allocation5 + $0x11e0] sm:$0xf]  ;;  %v6849_v48 = vor.u32 %v7483_v27, %v6848_v26  ;;  %v7481_v59 = vld [vmem:[#allocation5 + $0x1154] sm:$0xf0] }
 0x108   :  { %4072 = vmatpush.bf16.msrb.mxu3 %v6625_v3  ;;  %v705_v3 = vunpack.c.h.b16 %v72_v40  ;;  %v7499_v40 = vld [vmem:[#allocation5 + $0x11e4] sm:$0xf0]  ;;  %v6841_v1 = vor.u32 %v7481_v59, %v6840_v58  ;;  %v7493_v58 = vld [vmem:[#allocation5 + $0x11b4] sm:$0xf0] }
 0x109   :  { %4034 = vmatpush.bf16.msrb.mxu0 %v6425_v22  ;;  %v6720_v22 = vld [vmem:[#allocation5 + $0x1060] sm:$0xf] }
 0x10a   :  { %4047 = vmatpush.bf16.msrb.mxu1 %v6489_v32  ;;  %v7467_v32 = vld [vmem:[#allocation5 + $0x10e4] sm:$0xf0]  ;;  %v7742_v55 = vpack.c.b16 %v705_v3, %v705_v3  ;;  %v6721_v43 = vor.u32 %v7451_v17, %v6720_v22  ;;  %v6896_v17 = vld [vmem:[#allocation5 + $0x11c0] sm:$0xf] }
 0x10b   :  { %4060 = vmatpush.bf16.msrb.mxu2 %v6553_v34  ;;  %v7740_v34 = vpack.c.b16 %v706_v2, %v706_v2  ;;  %v6785_v47 = vor.u32 %v7467_v32, %v6784_v24  ;;  %v6704_v2 = vld [vmem:[#allocation5 + $0x1040] sm:$0xf]  ;;  %v7447_v3 = vld [vmem:[#allocation5 + $0x1044] sm:$0xf0] }
 0x10c   :  { %4073 = vmatpush.bf16.msrb.mxu3 %v6617_v39  ;;  %7854 = vst [vmem:[#allocation14_spill] sm:$0xff] %v7742_v55  ;;  %v7744_v39 = vpack.c.b16 %v707_v9, %v707_v9  ;;  %v7463_v9 = vld [vmem:[#allocation5 + $0x10c4] sm:$0xf0]  ;;  %v6705_v32 = vor.u32 %v7447_v3, %v6704_v2 }
 0x10d   :  { %4035 = vmatpush.bf16.msrb.mxu0 %v6417_v56  ;;  %7853 = vst [vmem:[#allocation13_spill] sm:$0xff] %v7740_v34  ;;  %v6913_v56 = vor.u32 %v7499_v40, %v6912_v36  ;;  %v3829_v22 = vpop.f32.mrf.mxu0  ;;  %v7495_v24 = vld [vmem:[#allocation5 + $0x11c4] sm:$0xf0]  ;;  %v6696_v40 = vld [vmem:[#allocation5 + $0x1030] sm:$0xf] }
 0x10e   :  { %4048 = vmatpush.bf16.msrb.mxu1 %v6481_v62  ;;  %7855 = vst [vmem:[#allocation15_spill] sm:$0xff] %v7744_v39  ;;  %v7497_v62 = vld [vmem:[#allocation5 + $0x11d4] sm:$0xf0]  ;;  %v3842_v26 = vpop.f32.mrf.mxu1  ;;  %v7459_v3 = vld [vmem:[#allocation5 + $0x10a4] sm:$0xf0] }
 0x10f   :  { %4061 = vmatpush.bf16.msrb.mxu2 %v6545_v63  ;;  %v6713_v63 = vor.u32 %v7449_v52, %v6712_v51  ;;  %v7461_v52 = vld [vmem:[#allocation5 + $0x10b4] sm:$0xf0] }
 0x110   :  { %4074 = vmatpush.bf16.msrb.mxu3 %v6609_v5  ;;  %4036 = vmatmul.bf16.vlgmr.msrb.gmra.mxu0 %v7738_v54  ;;  %v6768_v5 = vld [vmem:[#allocation5 + $0x10c0] sm:$0xf] }
 0x111   :  { %4080 = vmatpush.bf16.msra.mxu0 %v6729_v8  ;;  %4049 = vmatmul.bf16.vlgmr.msrb.gmra.mxu1 %v7742_v55  ;;  %v6905_v8 = vor.u32 %v7497_v62, %v6904_v60  ;;  %v6769_v27 = vor.u32 %v7463_v9, %v6768_v5  ;;  %v6688_v62 = vld [vmem:[#allocation5 + $0x1020] sm:$0xf] }
 0x112   :  { %4093 = vmatpush.bf16.msra.mxu1 %v6793_v10  ;;  %4062 = vmatmul.bf16.vlgmr.msrb.gmra.mxu2 %v7740_v34  ;;  %v6832_v10 = vld [vmem:[#allocation5 + $0x1140] sm:$0xf] }
 0x113   :  { %4106 = vmatpush.bf16.msra.mxu2 %v6857_v14  ;;  %4075 = vmatmul.bf16.vlgmr.msrb.gmra.mxu3 %v7744_v39  ;;  %v7479_v14 = vld [vmem:[#allocation5 + $0x1144] sm:$0xf0]  ;;  %v6816_v5 = vld [vmem:[#allocation5 + $0x1120] sm:$0xf] }
 0x114   :  { %4119 = vmatpush.bf16.msra.mxu3 %v6921_v50  ;;  %v3830_v50 = vadd.f32 %v3829_v22, %v7736_v61  ;;  %v6833_v36 = vor.u32 %v7479_v14, %v6832_v10  ;;  %v6880_v14 = vld [vmem:[#allocation5 + $0x11a0] sm:$0xf]  ;;  %v7491_v22 = vld [vmem:[#allocation5 + $0x11a4] sm:$0xf0] }
 0x115   :  { %4081 = vmatpush.bf16.msra.mxu0 %v6721_v43  ;;  %v7445_v43 = vld [vmem:[#allocation5 + $0x1034] sm:$0xf0]  ;;  %v3855_v2 = vpop.f32.mrf.mxu2 }
 0x116   :  { %4094 = vmatpush.bf16.msra.mxu1 %v6785_v47  ;;  %v6760_v47 = vld [vmem:[#allocation5 + $0x10b0] sm:$0xf]  ;;  %v3843_v51 = vadd.f32 %v3842_v26, %v3830_v50  ;;  %v6697_v59 = vor.u32 %v7445_v43, %v6696_v40  ;;  %v3868_v10 = vpop.f32.mrf.mxu3  ;;  %v3844_v50 = vpop.f32.mrf.mxu1  ;;  %v7441_v40 = vld [vmem:[#allocation5 + $0x1014] sm:$0xf0] }
 0x117   :  { %4107 = vmatpush.bf16.msra.mxu2 %v6849_v48  ;;  %v6897_v48 = vor.u32 %v7495_v24, %v6896_v17  ;;  %v6761_v61 = vor.u32 %v7461_v52, %v6760_v47  ;;  %v3831_v17 = vpop.f32.mrf.mxu0  ;;  %v6744_v43 = vld [vmem:[#allocation5 + $0x1090] sm:$0xf]  ;;  %v6881_v47 = vor.u32 %v7491_v22, %v6880_v14  ;;  %v7473_v52 = vld [vmem:[#allocation5 + $0x1114] sm:$0xf0]  ;;  %v6940_v14 = vld [vmem:[#allocation5 + $0x74] sm:$0xf] }
 0x118   :  { %4120 = vmatpush.bf16.msra.mxu3 %v6913_v56  ;;  %v7477_v56 = vld [vmem:[#allocation5 + $0x1134] sm:$0xf0]  ;;  %v3856_v9 = vadd.f32 %v3855_v2, %v3843_v51  ;;  %v6808_v51 = vld [vmem:[#allocation5 + $0x1110] sm:$0xf]  ;;  %v7471_v2 = vld [vmem:[#allocation5 + $0x1104] sm:$0xf0] }
 0x119   :  { %4082 = vmatpush.bf16.msra.mxu0 %v6713_v63  ;;  %v6825_v60 = vor.u32 %v7477_v56, %v6824_v53  ;;  %v7443_v63 = vld [vmem:[#allocation5 + $0x1024] sm:$0xf0]  ;;  %v6872_v53 = vld [vmem:[#allocation5 + $0x1190] sm:$0xf]  ;;  %v7489_v56 = vld [vmem:[#allocation5 + $0x1194] sm:$0xf0] }
 0x11a   :  { %4095 = vmatpush.bf16.msra.mxu1 %v6777_v0  ;;  %v6752_v0 = vld [vmem:[#allocation5 + $0x10a0] sm:$0xf]  ;;  %v6689_v24 = vor.u32 %v7443_v63, %v6688_v62  ;;  %v6809_v63 = vor.u32 %v7473_v52, %v6808_v51  ;;  %v4682_v22 = vld [vmem:[#allocation5 + $0x78] sm:$0xf0]  ;;  %v6956_v17 = vld [vmem:[#allocation5 + $0xf4] sm:$0xf] }
 0x11b   :  { %4108 = vmatpush.bf16.msra.mxu2 %v6841_v1  ;;  %v6889_v1 = vor.u32 %v7493_v58, %v6888_v57  ;;  %v6753_v26 = vor.u32 %v7459_v3, %v6752_v0  ;;  %v6672_v57 = vld [vmem:[#allocation5 + $0x1000] sm:$0xf]  ;;  %v74_v3 = vld [vmem:[#allocation2 + $0x80] sm:$0xff]  ;;  %v4874_v51 = vld [vmem:[#allocation5 + $0x1f8] sm:$0xf0] }
 0x11c   :  { %4121 = vmatpush.bf16.msra.mxu3 %v6905_v8  ;;  %v7475_v8 = vld [vmem:[#allocation5 + $0x1124] sm:$0xf0]  ;;  %v6800_v0 = vld [vmem:[#allocation5 + $0x1100] sm:$0xf] }
 0x11d   :  { %4083 = vmatpush.bf16.msra.mxu0 %v6705_v32  ;;  %v7751_v32 = vadd.f32 %v3868_v10, %v3856_v9  ;;  %v75_v9 = vld [vmem:[#allocation2 + $0x88] sm:$0xff]  ;;  %v3857_v10 = vpop.f32.mrf.mxu2 }
 0x11e   :  { %4096 = vmatpush.bf16.msra.mxu1 %v6769_v27  ;;  %v6817_v27 = vor.u32 %v7475_v8, %v6816_v5  ;;  %v6864_v5 = vld [vmem:[#allocation5 + $0x1180] sm:$0xf]  ;;  %v7487_v8 = vld [vmem:[#allocation5 + $0x1184] sm:$0xf0]  ;;  %v710_v52 = vunpack.c.l.b16 %v75_v9  ;;  %v4685_v10 = vor.u32 %v6940_v14, %v4682_v22  ;;  %v711_v39 = vunpack.c.h.b16 %v75_v9  ;;  %v6936_v14 = vld [vmem:[#allocation5 + $0x54] sm:$0xf] }
 0x11f   :  { %4109 = vmatpush.bf16.msra.mxu2 %v6833_v36  ;;  %v6680_v36 = vld [vmem:[#allocation5 + $0x1010] sm:$0xf]  ;;  %v4666_v22 = vld [vmem:[#allocation5 + $0x58] sm:$0xf0] }
 0x120   :  { %4122 = vmatpush.bf16.msra.mxu3 %v6897_v48  ;;  %v7457_v48 = vld [vmem:[#allocation5 + $0x1094] sm:$0xf0]  ;;  %v6681_v58 = vor.u32 %v7441_v40, %v6680_v36  ;;  %v4746_v36 = vld [vmem:[#allocation5 + $0xf8] sm:$0xf0]  ;;  %v708_v40 = vunpack.c.l.b16 %v74_v3 }
 0x121   :  { %4084 = vmatpush.bf16.msra.mxu0 %v6697_v59  ;;  %v7439_v59 = vld [vmem:[#allocation5 + $0x1004] sm:$0xf0]  ;;  %v6745_v62 = vor.u32 %v7457_v48, %v6744_v43  ;;  %v6801_v48 = vor.u32 %v7471_v2, %v6800_v0  ;;  %v4749_v55 = vor.u32 %v6956_v17, %v4746_v36  ;;  %v6986_v2 = vld [vmem:[#allocation5 + $0x1e4] sm:$0xf]  ;;  %v6952_v17 = vld [vmem:[#allocation5 + $0xd4] sm:$0xf] }
 0x122   :  { %4097 = vmatpush.bf16.msra.mxu1 %v6761_v61  ;;  %v6736_v61 = vld [vmem:[#allocation5 + $0x1080] sm:$0xf]  ;;  %v6673_v50 = vor.u32 %v7439_v59, %v6672_v57  ;;  %v4674_v57 = vld [vmem:[#allocation5 + $0x68] sm:$0xf0]  ;;  %v6954_v59 = vld [vmem:[#allocation5 + $0xe4] sm:$0xf]  ;;  %v7753_v54 = vpack.c.b16 %v708_v40, %v708_v40 }
 0x123   :  { %4110 = vmatpush.bf16.msra.mxu2 %v6825_v60  ;;  %v7455_v60 = vld [vmem:[#allocation5 + $0x1084] sm:$0xf0]  ;;  %v4730_v36 = vld [vmem:[#allocation5 + $0xd8] sm:$0xf0] }
 0x124   :  { %4123 = vmatpush.bf16.msra.mxu3 %v6889_v1  ;;  %v6873_v1 = vor.u32 %v7489_v56, %v6872_v53  ;;  %v6737_v43 = vor.u32 %v7455_v60, %v6736_v61  ;;  %v709_v53 = vunpack.c.h.b16 %v74_v3  ;;  %v6865_v56 = vor.u32 %v7487_v8, %v6864_v5  ;;  %v6970_v61 = vld [vmem:[#allocation5 + $0x164] sm:$0xf]  ;;  %v4802_v60 = vld [vmem:[#allocation5 + $0x168] sm:$0xf0]  ;;  %v4858_v40 = vld [vmem:[#allocation5 + $0x1d8] sm:$0xf0] }
 0x125   :  { %4085 = vmatpush.bf16.msra.mxu0 %v6689_v24  ;;  %v3870_v24 = vpop.f32.mrf.mxu3  ;;  %v4866_v3 = vld [vmem:[#allocation5 + $0x1e8] sm:$0xf0]  ;;  %v4805_v9 = vor.u32 %v6970_v61, %v4802_v60 }
 0x126   :  { %4098 = vmatpush.bf16.msra.mxu1 %v6753_v26  ;;  %v6972_v26 = vld [vmem:[#allocation5 + $0x174] sm:$0xf]  ;;  %v7757_v0 = vpack.c.b16 %v709_v53, %v709_v53  ;;  %v4722_v53 = vld [vmem:[#allocation5 + $0xc8] sm:$0xf0] }
 0x127   :  { %4111 = vmatpush.bf16.msra.mxu2 %v6817_v27  ;;  %v4810_v27 = vld [vmem:[#allocation5 + $0x178] sm:$0xf0] }
 0x128   :  { %4124 = vmatpush.bf16.msra.mxu3 %v6881_v47  ;;  %v6988_v47 = vld [vmem:[#allocation5 + $0x1f4] sm:$0xf]  ;;  %v4813_v24 = vor.u32 %v6972_v26, %v4810_v27  ;;  %v4794_v27 = vld [vmem:[#allocation5 + $0x158] sm:$0xf0] }
 0x129   :  { %4086 = vmatpush.bf16.msra.mxu0 %v6681_v58  ;;  %v6938_v58 = vld [vmem:[#allocation5 + $0x64] sm:$0xf]  ;;  %v4877_v34 = vor.u32 %v6988_v47, %v4874_v51  ;;  %v6968_v26 = vld [vmem:[#allocation5 + $0x154] sm:$0xf]  ;;  %v4658_v47 = vld [vmem:[#allocation5 + $0x48] sm:$0xf0] }
 0x12a   :  { %4099 = vmatpush.bf16.msra.mxu1 %v6745_v62  ;;  %v4738_v62 = vld [vmem:[#allocation5 + $0xe8] sm:$0xf0]  ;;  %v4677_v5 = vor.u32 %v6938_v58, %v4674_v57  ;;  %v6950_v51 = vld [vmem:[#allocation5 + $0xc4] sm:$0xf] }
 0x12b   :  { %4112 = vmatpush.bf16.msra.mxu2 %v6809_v63  ;;  %v7755_v63 = vpack.c.b16 %v710_v52, %v710_v52  ;;  %v4741_v8 = vor.u32 %v6954_v59, %v4738_v62  ;;  %v6982_v58 = vld [vmem:[#allocation5 + $0x1c4] sm:$0xf]  ;;  %v4850_v57 = vld [vmem:[#allocation5 + $0x1c8] sm:$0xf0]  ;;  %v4725_v60 = vor.u32 %v6950_v51, %v4722_v53 }
 0x12c   :  { %4125 = vmatpush.bf16.msra.mxu3 %v6873_v1  ;;  %v7759_v1 = vpack.c.b16 %v711_v39, %v711_v39  ;;  %v6984_v39 = vld [vmem:[#allocation5 + $0x1d4] sm:$0xf]  ;;  %v6962_v51 = vld [vmem:[#allocation5 + $0x124] sm:$0xf] }
 0x12d   :  { %4087 = vmatpush.bf16.msra.mxu0 %v6673_v50  ;;  %v4869_v50 = vor.u32 %v6986_v2, %v4866_v3  ;;  %v4861_v52 = vor.u32 %v6984_v39, %v4858_v40  ;;  %v6932_v3 = vld [vmem:[#allocation5 + $0x34] sm:$0xf]  ;;  %v6930_v40 = vld [vmem:[#allocation5 + $0x24] sm:$0xf] }
 0x12e   :  { %4100 = vmatpush.bf16.msra.mxu1 %v6737_v43  ;;  %v4733_v43 = vor.u32 %v6952_v17, %v4730_v36  ;;  %v3894_v61 = vpop.f32.mrf.mxu1  ;;  %v6964_v17 = vld [vmem:[#allocation5 + $0x134] sm:$0xf] }
 0x12f   :  { %4113 = vmatpush.bf16.msra.mxu2 %v6801_v48  ;;  %v6934_v48 = vld [vmem:[#allocation5 + $0x44] sm:$0xf]  ;;  %v6980_v36 = vld [vmem:[#allocation5 + $0x1b4] sm:$0xf] }
 0x130   :  { %4126 = vmatpush.bf16.msra.mxu3 %v6865_v56  ;;  %4088 = vmatmul.bf16.vlgmr.msra.gmra.mxu0 %v7753_v54  ;;  %v6966_v56 = vld [vmem:[#allocation5 + $0x144] sm:$0xf]  ;;  %v4661_v62 = vor.u32 %v6934_v48, %v4658_v47  ;;  %v4706_v47 = vld [vmem:[#allocation5 + $0xa8] sm:$0xf0] }
 0x131   :  { %4132 = vmatpush.bf16.msrb.mxu0 %v4685_v10  ;;  %4101 = vmatmul.bf16.vlgmr.msra.gmra.mxu1 %v7757_v0  ;;  %v4786_v10 = vld [vmem:[#allocation5 + $0x148] sm:$0xf0] }
 0x132   :  { %4145 = vmatpush.bf16.msrb.mxu1 %v4749_v55  ;;  %4114 = vmatmul.bf16.vlgmr.msra.gmra.mxu2 %v7755_v63  ;;  %v4669_v55 = vor.u32 %v6936_v14, %v4666_v22  ;;  %v4789_v2 = vor.u32 %v6966_v56, %v4786_v10  ;;  %v4714_v22 = vld [vmem:[#allocation5 + $0xb8] sm:$0xf0]  ;;  %v6978_v10 = vld [vmem:[#allocation5 + $0x1a4] sm:$0xf] }
 0x133   :  { %4158 = vmatpush.bf16.msrb.mxu2 %v4813_v24  ;;  %4127 = vmatmul.bf16.vlgmr.msra.gmra.mxu3 %v7759_v1  ;;  %v3881_v24 = vpop.f32.mrf.mxu0 }
 0x134   :  { %4171 = vmatpush.bf16.msrb.mxu3 %v4877_v34  ;;  %v4797_v34 = vor.u32 %v6968_v26, %v4794_v27  ;;  %v3882_v59 = vadd.f32 %v3881_v24, %v7751_v32  ;;  %v4842_v26 = vld [vmem:[#allocation5 + $0x1b8] sm:$0xf0]  ;;  %v4834_v24 = vld [vmem:[#allocation5 + $0x1a8] sm:$0xf0] }
 0x135   :  { %4133 = vmatpush.bf16.msrb.mxu0 %v4677_v5  ;;  %v4650_v5 = vld [vmem:[#allocation5 + $0x38] sm:$0xf0]  ;;  %v3907_v48 = vpop.f32.mrf.mxu2 }
 0x136   :  { %4146 = vmatpush.bf16.msrb.mxu1 %v4741_v8  ;;  %v6948_v8 = vld [vmem:[#allocation5 + $0xb4] sm:$0xf]  ;;  %v3895_v14 = vadd.f32 %v3894_v61, %v3882_v59  ;;  %v4653_v27 = vor.u32 %v6932_v3, %v4650_v5  ;;  %v3920_v56 = vpop.f32.mrf.mxu3  ;;  %v3896_v59 = vpop.f32.mrf.mxu1  ;;  %v4634_v3 = vld [vmem:[#allocation5 + $0x18] sm:$0xf0] }
 0x137   :  { %4159 = vmatpush.bf16.msrb.mxu2 %v4805_v9  ;;  %v4853_v9 = vor.u32 %v6982_v58, %v4850_v57  ;;  %v4717_v32 = vor.u32 %v6948_v8, %v4714_v22  ;;  %v6944_v5 = vld [vmem:[#allocation5 + $0x94] sm:$0xf]  ;;  %v4837_v8 = vor.u32 %v6978_v10, %v4834_v24  ;;  %v4762_v22 = vld [vmem:[#allocation5 + $0x118] sm:$0xf0] }
 0x138   :  { %4172 = vmatpush.bf16.msrb.mxu3 %v4869_v50  ;;  %v4778_v50 = vld [vmem:[#allocation5 + $0x138] sm:$0xf0]  ;;  %v3908_v53 = vadd.f32 %v3907_v48, %v3895_v14  ;;  %v6960_v14 = vld [vmem:[#allocation5 + $0x114] sm:$0xf] }
 0x139   :  { %4134 = vmatpush.bf16.msrb.mxu0 %v4669_v55  ;;  %v4781_v39 = vor.u32 %v6964_v17, %v4778_v50  ;;  %v4642_v55 = vld [vmem:[#allocation5 + $0x28] sm:$0xf0]  ;;  %v6976_v17 = vld [vmem:[#allocation5 + $0x194] sm:$0xf]  ;;  %v4826_v50 = vld [vmem:[#allocation5 + $0x198] sm:$0xf0] }
 0x13a   :  { %4147 = vmatpush.bf16.msrb.mxu1 %v4733_v43  ;;  %v6946_v43 = vld [vmem:[#allocation5 + $0xa4] sm:$0xf]  ;;  %v4645_v57 = vor.u32 %v6930_v40, %v4642_v55  ;;  %v4690_v55 = vld [vmem:[#allocation5 + $0x88] sm:$0xf0]  ;;  %v4829_v48 = vor.u32 %v6976_v17, %v4826_v50  ;;  %v7020_v10 = vld [vmem:[#allocation5 + $0x2f4] sm:$0xf] }
 0x13b   :  { %4160 = vmatpush.bf16.msrb.mxu2 %v4797_v34  ;;  %v4845_v34 = vor.u32 %v6980_v36, %v4842_v26  ;;  %v3883_v58 = vpop.f32.mrf.mxu0  ;;  %v4709_v61 = vor.u32 %v6946_v43, %v4706_v47  ;;  %v6926_v26 = vld [vmem:[#allocation5 + $0x4] sm:$0xf]  ;;  %v7036_v59 = vld [vmem:[#allocation5 + $0x374] sm:$0xf]  ;;  %v4930_v50 = vld [vmem:[#allocation5 + $0x268] sm:$0xf0] }
 0x13c   :  { %4173 = vmatpush.bf16.msrb.mxu3 %v4861_v52  ;;  %v4770_v52 = vld [vmem:[#allocation5 + $0x128] sm:$0xf0]  ;;  %v6942_v40 = vld [vmem:[#allocation5 + $0x84] sm:$0xf] }
 0x13d   :  { %4135 = vmatpush.bf16.msrb.mxu0 %v4661_v62  ;;  %v7766_v62 = vadd.f32 %v3920_v56, %v3908_v53  ;;  %v6958_v43 = vld [vmem:[#allocation5 + $0x104] sm:$0xf]  ;;  %v7004_v53 = vld [vmem:[#allocation5 + $0x274] sm:$0xf]  ;;  %v4938_v56 = vld [vmem:[#allocation5 + $0x278] sm:$0xf0] }
 0x13e   :  { %4148 = vmatpush.bf16.msrb.mxu1 %v4725_v60  ;;  %v4773_v60 = vor.u32 %v6962_v51, %v4770_v52  ;;  %v6974_v47 = vld [vmem:[#allocation5 + $0x184] sm:$0xf]  ;;  %v4818_v51 = vld [vmem:[#allocation5 + $0x188] sm:$0xf0]  ;;  %v3909_v52 = vpop.f32.mrf.mxu2  ;;  %v3922_v24 = vpop.f32.mrf.mxu3 }
 0x13f   :  { %4161 = vmatpush.bf16.msrb.mxu2 %v4789_v2  ;;  %v6928_v2 = vld [vmem:[#allocation5 + $0x14] sm:$0xf]  ;;  %v7002_v17 = vld [vmem:[#allocation5 + $0x264] sm:$0xf]  ;;  %v5058_v24 = vld [vmem:[#allocation5 + $0x368] sm:$0xf0] }
 0x140   :  { %4174 = vmatpush.bf16.msrb.mxu3 %v4853_v9  ;;  %v4698_v9 = vld [vmem:[#allocation5 + $0x98] sm:$0xf0]  ;;  %v4637_v36 = vor.u32 %v6928_v2, %v4634_v3  ;;  %v7052_v3 = vld [vmem:[#allocation5 + $0x3f4] sm:$0xf]  ;;  %v7018_v52 = vld [vmem:[#allocation5 + $0x2e4] sm:$0xf] }
 0x141   :  { %4136 = vmatpush.bf16.msrb.mxu0 %v4653_v27  ;;  %v4626_v27 = vld [vmem:[#allocation5 + $0x8] sm:$0xf0] }
 0x142   :  { %4149 = vmatpush.bf16.msrb.mxu1 %v4717_v32  ;;  %v4701_v32 = vor.u32 %v6944_v5, %v4698_v9  ;;  %v4629_v58 = vor.u32 %v6926_v26, %v4626_v27  ;;  %v5130_v5 = vld [vmem:[#allocation5 + $0x3f8] sm:$0xf0]  ;;  %v4941_v9 = vor.u32 %v7004_v53, %v4938_v56  ;;  %v4994_v26 = vld [vmem:[#allocation5 + $0x2e8] sm:$0xf0]  ;;  %v7034_v27 = vld [vmem:[#allocation5 + $0x364] sm:$0xf] }
 0x143   :  { %4162 = vmatpush.bf16.msrb.mxu2 %v4781_v39  ;;  %v4765_v39 = vor.u32 %v6960_v14, %v4762_v22  ;;  %v4986_v53 = vld [vmem:[#allocation5 + $0x2d8] sm:$0xf0]  ;;  %v7032_v56 = vld [vmem:[#allocation5 + $0x354] sm:$0xf] }
 0x144   :  { %4175 = vmatpush.bf16.msrb.mxu3 %v4845_v34  ;;  %v4754_v34 = vld [vmem:[#allocation5 + $0x108] sm:$0xf0] }
 0x145   :  { %4137 = vmatpush.bf16.msrb.mxu0 %v4645_v57  ;;  %v5002_v57 = vld [vmem:[#allocation5 + $0x2f8] sm:$0xf0]  ;;  %v4757_v2 = vor.u32 %v6958_v43, %v4754_v34  ;;  %v5061_v43 = vor.u32 %v7034_v27, %v5058_v24  ;;  %v7012_v24 = vld [vmem:[#allocation5 + $0x2b4] sm:$0xf] }
 0x146   :  { %4150 = vmatpush.bf16.msrb.mxu1 %v4709_v61  ;;  %v5066_v61 = vld [vmem:[#allocation5 + $0x378] sm:$0xf0]  ;;  %v5005_v14 = vor.u32 %v7020_v10, %v5002_v57 }
 0x147   :  { %4163 = vmatpush.bf16.msrb.mxu2 %v4773_v60  ;;  %v4693_v60 = vor.u32 %v6942_v40, %v4690_v55  ;;  %v5069_v22 = vor.u32 %v7036_v59, %v5066_v61  ;;  %v4933_v40 = vor.u32 %v7002_v17, %v4930_v50  ;;  %v4997_v55 = vor.u32 %v7018_v52, %v4994_v26  ;;  %v4922_v34 = vld [vmem:[#allocation5 + $0x258] sm:$0xf0]  ;;  %v5106_v17 = vld [vmem:[#allocation5 + $0x3c8] sm:$0xf0]  ;;  %v6996_v26 = vld [vmem:[#allocation5 + $0x234] sm:$0xf] }
 0x148   :  { %4176 = vmatpush.bf16.msrb.mxu3 %v4837_v8  ;;  %v4821_v8 = vor.u32 %v6974_v47, %v4818_v51  ;;  %v7016_v47 = vld [vmem:[#allocation5 + $0x2d4] sm:$0xf]  ;;  %v5050_v10 = vld [vmem:[#allocation5 + $0x358] sm:$0xf0] }
 0x149   :  { %4138 = vmatpush.bf16.msrb.mxu0 %v4637_v36  ;;  %v5133_v36 = vor.u32 %v7052_v3, %v5130_v5  ;;  %v5114_v57 = vld [vmem:[#allocation5 + $0x3d8] sm:$0xf0]  ;;  %v4989_v61 = vor.u32 %v7016_v47, %v4986_v53  ;;  %v4914_v3 = vld [vmem:[#allocation5 + $0x248] sm:$0xf0]  ;;  %v7014_v5 = vld [vmem:[#allocation5 + $0x2c4] sm:$0xf] }
 0x14a   :  { %4151 = vmatpush.bf16.msrb.mxu1 %v4701_v32  ;;  %v7050_v32 = vld [vmem:[#allocation5 + $0x3e4] sm:$0xf]  ;;  %v4906_v27 = vld [vmem:[#allocation5 + $0x238] sm:$0xf0] }
 0x14b   :  { %4164 = vmatpush.bf16.msrb.mxu2 %v4765_v39  ;;  %v5122_v39 = vld [vmem:[#allocation5 + $0x3e8] sm:$0xf0]  ;;  %v4909_v47 = vor.u32 %v6996_v26, %v4906_v27  ;;  %v6994_v53 = vld [vmem:[#allocation5 + $0x224] sm:$0xf]  ;;  %v7024_v26 = vld [vmem:[#allocation5 + $0x314] sm:$0xf] }
 0x14c   :  { %4177 = vmatpush.bf16.msrb.mxu3 %v4829_v48  ;;  %v7000_v48 = vld [vmem:[#allocation5 + $0x254] sm:$0xf]  ;;  %v5125_v51 = vor.u32 %v7050_v32, %v5122_v39  ;;  %v5018_v27 = vld [vmem:[#allocation5 + $0x318] sm:$0xf0] }
 0x14d   :  { %4139 = vmatpush.bf16.msrb.mxu0 %v4629_v58  ;;  %v7048_v58 = vld [vmem:[#allocation5 + $0x3d4] sm:$0xf]  ;;  %v4925_v59 = vor.u32 %v7000_v48, %v4922_v34  ;;  %v5098_v34 = vld [vmem:[#allocation5 + $0x3b8] sm:$0xf0] }
 0x14e   :  { %4152 = vmatpush.bf16.msrb.mxu1 %v4693_v60  ;;  %v5053_v60 = vor.u32 %v7032_v56, %v5050_v10  ;;  %v7044_v48 = vld [vmem:[#allocation5 + $0x3b4] sm:$0xf]  ;;  %v4898_v56 = vld [vmem:[#allocation5 + $0x228] sm:$0xf0]  ;;  %v7010_v10 = vld [vmem:[#allocation5 + $0x2a4] sm:$0xf] }
 0x14f   :  { %4165 = vmatpush.bf16.msrb.mxu2 %v4757_v2  ;;  %v6998_v2 = vld [vmem:[#allocation5 + $0x244] sm:$0xf] }
 0x150   :  { %4178 = vmatpush.bf16.msrb.mxu3 %v4821_v8  ;;  %4140 = vmatmul.bf16.vlgmr.msrb.gmra.mxu0 %v7651_v20  ;;  %v5117_v8 = vor.u32 %v7048_v58, %v5114_v57  ;;  %v7046_v20 = vld [vmem:[#allocation5 + $0x3c4] sm:$0xf]  ;;  %v4917_v50 = vor.u32 %v6998_v2, %v4914_v3  ;;  %v5101_v58 = vor.u32 %v7044_v48, %v5098_v34 }
 0x151   :  { %4184 = vmatpush.bf16.msra.mxu0 %v4941_v9  ;;  %4153 = vmatmul.bf16.vlgmr.msrb.gmra.mxu1 %v7654_v21  ;;  %v7030_v9 = vld [vmem:[#allocation5 + $0x344] sm:$0xf]  ;;  %v3946_v21 = vpop.f32.mrf.mxu1  ;;  %v5109_v32 = vor.u32 %v7046_v20, %v5106_v17  ;;  %v5021_v48 = vor.u32 %v7024_v26, %v5018_v27 }
 0x152   :  { %4197 = vmatpush.bf16.msra.mxu1 %v5005_v14  ;;  %4166 = vmatmul.bf16.vlgmr.msrb.gmra.mxu2 %v7646_v4  ;;  %v4978_v4 = vld [vmem:[#allocation5 + $0x2c8] sm:$0xf0]  ;;  %v7006_v34 = vld [vmem:[#allocation5 + $0x284] sm:$0xf] }
 0x153   :  { %4210 = vmatpush.bf16.msra.mxu2 %v5069_v22  ;;  %4179 = vmatmul.bf16.vlgmr.msrb.gmra.mxu3 %v7648_v6  ;;  %v5042_v14 = vld [vmem:[#allocation5 + $0x348] sm:$0xf0]  ;;  %v3933_v22 = vpop.f32.mrf.mxu0  ;;  %v4981_v52 = vor.u32 %v7014_v5, %v4978_v4  ;;  %v7042_v5 = vld [vmem:[#allocation5 + $0x3a4] sm:$0xf] }
 0x154   :  { %4223 = vmatpush.bf16.msra.mxu3 %v5133_v36  ;;  %v3934_v6 = vadd.f32 %v3933_v22, %v7766_v62  ;;  %v5045_v36 = vor.u32 %v7030_v9, %v5042_v14  ;;  %v4901_v9 = vor.u32 %v6994_v53, %v4898_v56  ;;  %v5010_v53 = vld [vmem:[#allocation5 + $0x308] sm:$0xf0]  ;;  %v7038_v56 = vld [vmem:[#allocation5 + $0x384] sm:$0xf] }
 0x155   :  { %4185 = vmatpush.bf16.msra.mxu0 %v4933_v40  ;;  %v4970_v40 = vld [vmem:[#allocation5 + $0x2b8] sm:$0xf0]  ;;  %v3959_v57 = vpop.f32.mrf.mxu2  ;;  %v7082_v26 = vld [vmem:[#allocation5 + $0x4e4] sm:$0xf] }
 0x156   :  { %4198 = vmatpush.bf16.msra.mxu1 %v4997_v55  ;;  %v3947_v39 = vadd.f32 %v3946_v21, %v3934_v6  ;;  %v7028_v55 = vld [vmem:[#allocation5 + $0x334] sm:$0xf]  ;;  %v4973_v62 = vor.u32 %v7012_v24, %v4970_v40  ;;  %v3972_v3 = vpop.f32.mrf.mxu3  ;;  %v6990_v40 = vld [vmem:[#allocation5 + $0x204] sm:$0xf] }
 0x157   :  { %4211 = vmatpush.bf16.msra.mxu2 %v5061_v43  ;;  %v5034_v43 = vld [vmem:[#allocation5 + $0x338] sm:$0xf0]  ;;  %v6992_v6 = vld [vmem:[#allocation5 + $0x214] sm:$0xf] }
 0x158   :  { %4224 = vmatpush.bf16.msra.mxu3 %v5125_v51  ;;  %v5037_v51 = vor.u32 %v7028_v55, %v5034_v43  ;;  %v3960_v2 = vadd.f32 %v3959_v57, %v3947_v39  ;;  %v7008_v21 = vld [vmem:[#allocation5 + $0x294] sm:$0xf]  ;;  %v4882_v55 = vld [vmem:[#allocation5 + $0x208] sm:$0xf0] }
 0x159   :  { %4186 = vmatpush.bf16.msra.mxu0 %v4925_v59  ;;  %v4962_v59 = vld [vmem:[#allocation5 + $0x2a8] sm:$0xf0]  ;;  %v3948_v14 = vpop.f32.mrf.mxu1  ;;  %v7040_v24 = vld [vmem:[#allocation5 + $0x394] sm:$0xf] }
 0x15a   :  { %4199 = vmatpush.bf16.msra.mxu1 %v4989_v61  ;;  %v7026_v61 = vld [vmem:[#allocation5 + $0x324] sm:$0xf]  ;;  %v7773_v22 = vadd.f32 %v3972_v3, %v3960_v2  ;;  %v4965_v20 = vor.u32 %v7010_v10, %v4962_v59  ;;  %v5074_v10 = vld [vmem:[#allocation5 + $0x388] sm:$0xf0]  ;;  %v7068_v57 = vld [vmem:[#allocation5 + $0x474] sm:$0xf]  ;;  %v4885_v2 = vor.u32 %v6990_v40, %v4882_v55 }
 0x15b   :  { %4212 = vmatpush.bf16.msra.mxu2 %v5053_v60  ;;  %v5026_v60 = vld [vmem:[#allocation5 + $0x328] sm:$0xf0]  ;;  %v3935_v4 = vpop.f32.mrf.mxu0  ;;  %v5194_v59 = vld [vmem:[#allocation5 + $0x478] sm:$0xf0]  ;;  %v7116_v14 = vld [vmem:[#allocation5 + $0x5f4] sm:$0xf] }
 0x15c   :  { %4225 = vmatpush.bf16.msra.mxu3 %v5117_v8  ;;  %v5090_v8 = vld [vmem:[#allocation5 + $0x3a8] sm:$0xf0]  ;;  %v5029_v17 = vor.u32 %v7026_v61, %v5026_v60  ;;  %v7084_v61 = vld [vmem:[#allocation5 + $0x4f4] sm:$0xf]  ;;  %v5258_v3 = vld [vmem:[#allocation5 + $0x4f8] sm:$0xf0] }
 0x15d   :  { %4187 = vmatpush.bf16.msra.mxu0 %v4917_v50  ;;  %v4890_v50 = vld [vmem:[#allocation5 + $0x218] sm:$0xf0]  ;;  %v7114_v40 = vld [vmem:[#allocation5 + $0x5e4] sm:$0xf]  ;;  %v5378_v55 = vld [vmem:[#allocation5 + $0x5e8] sm:$0xf0] }
 0x15e   :  { %4200 = vmatpush.bf16.msra.mxu1 %v4981_v52  ;;  %v5093_v52 = vor.u32 %v7042_v5, %v5090_v8  ;;  %v4893_v39 = vor.u32 %v6992_v6, %v4890_v50  ;;  %v3974_v60 = vpop.f32.mrf.mxu3  ;;  %v7100_v5 = vld [vmem:[#allocation5 + $0x574] sm:$0xf]  ;;  %v5322_v8 = vld [vmem:[#allocation5 + $0x578] sm:$0xf0]  ;;  %v5197_v6 = vor.u32 %v7068_v57, %v5194_v59  ;;  %v5261_v50 = vor.u32 %v7084_v61, %v5258_v3  ;;  %v7062_v3 = vld [vmem:[#allocation5 + $0x444] sm:$0xf] }
 0x15f   :  { %4213 = vmatpush.bf16.msra.mxu2 %v5045_v36  ;;  %v4954_v36 = vld [vmem:[#allocation5 + $0x298] sm:$0xf0]  ;;  %v7112_v57 = vld [vmem:[#allocation5 + $0x5d4] sm:$0xf] }
 0x160   :  { %4226 = vmatpush.bf16.msra.mxu3 %v5109_v32  ;;  %v5082_v32 = vld [vmem:[#allocation5 + $0x398] sm:$0xf0]  ;;  %v4957_v43 = vor.u32 %v7008_v21, %v4954_v36  ;;  %v5325_v21 = vor.u32 %v7100_v5, %v5322_v8  ;;  %v5186_v36 = vld [vmem:[#allocation5 + $0x468] sm:$0xf0] }
 0x161   :  { %4188 = vmatpush.bf16.msra.mxu0 %v4909_v47  ;;  %v4946_v47 = vld [vmem:[#allocation5 + $0x288] sm:$0xf0]  ;;  %v5370_v59 = vld [vmem:[#allocation5 + $0x5d8] sm:$0xf0] }
 0x162   :  { %4201 = vmatpush.bf16.msra.mxu1 %v4973_v62  ;;  %v7022_v62 = vld [vmem:[#allocation5 + $0x304] sm:$0xf]  ;;  %v4949_v4 = vor.u32 %v7006_v34, %v4946_v47  ;;  %v7064_v47 = vld [vmem:[#allocation5 + $0x454] sm:$0xf]  ;;  %v5170_v5 = vld [vmem:[#allocation5 + $0x448] sm:$0xf0]  ;;  %v5373_v8 = vor.u32 %v7112_v57, %v5370_v59 }
 0x163   :  { %4214 = vmatpush.bf16.msra.mxu2 %v5037_v51  ;;  %v5085_v51 = vor.u32 %v7040_v24, %v5082_v32  ;;  %v5250_v24 = vld [vmem:[#allocation5 + $0x4e8] sm:$0xf0]  ;;  %v7098_v32 = vld [vmem:[#allocation5 + $0x564] sm:$0xf] }
 0x164   :  { %4227 = vmatpush.bf16.msra.mxu3 %v5101_v58  ;;  %v3961_v58 = vpop.f32.mrf.mxu2  ;;  %v7106_v59 = vld [vmem:[#allocation5 + $0x5a4] sm:$0xf] }
 0x165   :  { %4189 = vmatpush.bf16.msra.mxu0 %v4901_v9  ;;  %v5013_v9 = vor.u32 %v7022_v62, %v5010_v53  ;;  %v5178_v62 = vld [vmem:[#allocation5 + $0x458] sm:$0xf0]  ;;  %v5381_v53 = vor.u32 %v7114_v40, %v5378_v55 }
 0x166   :  { %4202 = vmatpush.bf16.msra.mxu1 %v4965_v20  ;;  %v5386_v20 = vld [vmem:[#allocation5 + $0x5f8] sm:$0xf0]  ;;  %v5181_v61 = vor.u32 %v7064_v47, %v5178_v62  ;;  %v5154_v47 = vld [vmem:[#allocation5 + $0x428] sm:$0xf0]  ;;  %v7074_v62 = vld [vmem:[#allocation5 + $0x4a4] sm:$0xf] }
 0x167   :  { %4215 = vmatpush.bf16.msra.mxu2 %v5029_v17  ;;  %v5077_v17 = vor.u32 %v7038_v56, %v5074_v10  ;;  %v5389_v27 = vor.u32 %v7116_v14, %v5386_v20  ;;  %v5242_v56 = vld [vmem:[#allocation5 + $0x4d8] sm:$0xf0]  ;;  %v7096_v10 = vld [vmem:[#allocation5 + $0x554] sm:$0xf]  ;;  %v5362_v20 = vld [vmem:[#allocation5 + $0x5c8] sm:$0xf0] }
 0x168   :  { %4228 = vmatpush.bf16.msra.mxu3 %v5093_v52  ;;  %v7066_v52 = vld [vmem:[#allocation5 + $0x464] sm:$0xf]  ;;  %v5306_v58 = vld [vmem:[#allocation5 + $0x558] sm:$0xf0] }
 0x169   :  { %4190 = vmatpush.bf16.msra.mxu0 %v4893_v39  ;;  %v5314_v39 = vld [vmem:[#allocation5 + $0x568] sm:$0xf0]  ;;  %v5354_v40 = vld [vmem:[#allocation5 + $0x5b8] sm:$0xf0] }
 0x16a   :  { %4203 = vmatpush.bf16.msra.mxu1 %v4957_v43  ;;  %v5189_v43 = vor.u32 %v7066_v52, %v5186_v36  ;;  %v5317_v34 = vor.u32 %v7098_v32, %v5314_v39  ;;  %v5162_v52 = vld [vmem:[#allocation5 + $0x438] sm:$0xf0]  ;;  %v7076_v36 = vld [vmem:[#allocation5 + $0x4b4] sm:$0xf] }
 0x16b   :  { %4216 = vmatpush.bf16.msra.mxu2 %v5021_v48  ;;  %v5253_v48 = vor.u32 %v7082_v26, %v5250_v24  ;;  %v7092_v24 = vld [vmem:[#allocation5 + $0x534] sm:$0xf]  ;;  %v5290_v32 = vld [vmem:[#allocation5 + $0x538] sm:$0xf0] }
 0x16c   :  { %4229 = vmatpush.bf16.msra.mxu3 %v5085_v51  ;;  %v7080_v51 = vld [vmem:[#allocation5 + $0x4d4] sm:$0xf] }
 0x16d   :  { %4191 = vmatpush.bf16.msra.mxu0 %v4885_v2  ;;  %v5245_v60 = vor.u32 %v7080_v51, %v5242_v56  ;;  %v5309_v2 = vor.u32 %v7096_v10, %v5306_v58  ;;  %v7779_v14 = vpop.f32.mrf.mxu0  ;;  %v7108_v39 = vld [vmem:[#allocation5 + $0x5b4] sm:$0xf]  ;;  %v5218_v56 = vld [vmem:[#allocation5 + $0x4a8] sm:$0xf0]  ;;  %v7090_v10 = vld [vmem:[#allocation5 + $0x524] sm:$0xf] }
 0x16e   :  { %4204 = vmatpush.bf16.msra.mxu1 %v4949_v4  ;;  %v5234_v4 = vld [vmem:[#allocation5 + $0x4c8] sm:$0xf0]  ;;  %v5357_v51 = vor.u32 %v7108_v39, %v5354_v40  ;;  %v7086_v39 = vld [vmem:[#allocation5 + $0x504] sm:$0xf] }
 0x16f   :  { %4217 = vmatpush.bf16.msra.mxu2 %v5013_v9  ;;  %v7094_v9 = vld [vmem:[#allocation5 + $0x544] sm:$0xf]  ;;  %v5282_v58 = vld [vmem:[#allocation5 + $0x528] sm:$0xf0] }
 0x170   :  { %4230 = vmatpush.bf16.msra.mxu3 %v5077_v17  ;;  %4192 = vmatmul.bf16.vlgmr.msra.gmra.mxu0 %v7660_v41  ;;  %v5298_v41 = vld [vmem:[#allocation5 + $0x548] sm:$0xf0]  ;;  %v5173_v17 = vor.u32 %v7062_v3, %v5170_v5  ;;  %v5221_v5 = vor.u32 %v7074_v62, %v5218_v56  ;;  %v5450_v62 = vld [vmem:[#allocation5 + $0x678] sm:$0xf0] }
 0x171   :  { %4236 = vmatpush.bf16.msrb.mxu0 %v5197_v6  ;;  %4205 = vmatmul.bf16.vlgmr.msra.gmra.mxu1 %v7664_v44  ;;  %v7781_v6 = vpop.f32.mrf.mxu1 }
 0x172   :  { %4249 = vmatpush.bf16.msrb.mxu1 %v5261_v50  ;;  %4218 = vmatmul.bf16.vlgmr.msra.gmra.mxu2 %v7658_v38  ;;  %v7078_v38 = vld [vmem:[#allocation5 + $0x4c4] sm:$0xf]  ;;  %v5301_v50 = vor.u32 %v7094_v9, %v5298_v41  ;;  %v7072_v9 = vld [vmem:[#allocation5 + $0x494] sm:$0xf] }
 0x173   :  { %4262 = vmatpush.bf16.msrb.mxu2 %v5325_v21  ;;  %4231 = vmatmul.bf16.vlgmr.msra.gmra.mxu3 %v7662_v42  ;;  %v7110_v42 = vld [vmem:[#allocation5 + $0x5c4] sm:$0xf]  ;;  %v5237_v44 = vor.u32 %v7078_v38, %v5234_v4  ;;  %v7060_v21 = vld [vmem:[#allocation5 + $0x434] sm:$0xf]  ;;  %v5285_v38 = vor.u32 %v7090_v10, %v5282_v58  ;;  %v5146_v4 = vld [vmem:[#allocation5 + $0x418] sm:$0xf0] }
 0x174   :  { %4275 = vmatpush.bf16.msrb.mxu3 %v5389_v27  ;;  %v5365_v26 = vor.u32 %v7110_v42, %v5362_v20  ;;  %v5226_v27 = vld [vmem:[#allocation5 + $0x4b8] sm:$0xf0]  ;;  %v5165_v55 = vor.u32 %v7060_v21, %v5162_v52  ;;  %v7088_v20 = vld [vmem:[#allocation5 + $0x514] sm:$0xf]  ;;  %v7054_v52 = vld [vmem:[#allocation5 + $0x404] sm:$0xf] }
 0x175   :  { %4237 = vmatpush.bf16.msrb.mxu0 %v5189_v43  ;;  %v5229_v43 = vor.u32 %v7076_v36, %v5226_v27  ;;  %v5210_v42 = vld [vmem:[#allocation5 + $0x498] sm:$0xf0]  ;;  %v5138_v36 = vld [vmem:[#allocation5 + $0x408] sm:$0xf0] }
 0x176   :  { %4250 = vmatpush.bf16.msrb.mxu1 %v5253_v48  ;;  %v5293_v48 = vor.u32 %v7092_v24, %v5290_v32  ;;  %v7785_v57 = vpop.f32.mrf.mxu3  ;;  %v7070_v24 = vld [vmem:[#allocation5 + $0x484] sm:$0xf]  ;;  %v5202_v32 = vld [vmem:[#allocation5 + $0x488] sm:$0xf0]  ;;  %v5141_v10 = vor.u32 %v7054_v52, %v5138_v36  ;;  %v5514_v58 = vld [vmem:[#allocation5 + $0x6f8] sm:$0xf0] }
 0x177   :  { %4263 = vmatpush.bf16.msrb.mxu2 %v5317_v34  ;;  %v7058_v34 = vld [vmem:[#allocation5 + $0x424] sm:$0xf]  ;;  %v5634_v36 = vld [vmem:[#allocation5 + $0x7e8] sm:$0xf0] }
 0x178   :  { %4276 = vmatpush.bf16.msrb.mxu3 %v5381_v53  ;;  %v7783_v53 = vpop.f32.mrf.mxu2  ;;  %v7178_v52 = vld [vmem:[#allocation5 + $0x7e4] sm:$0xf] }
 0x179   :  { %4238 = vmatpush.bf16.msrb.mxu0 %v5181_v61  ;;  %v5346_v61 = vld [vmem:[#allocation5 + $0x5a8] sm:$0xf0]  ;;  %v4000_v3 = vpop.f32.mrf.mxu1 }
 0x17a   :  { %4251 = vmatpush.bf16.msrb.mxu1 %v5245_v60  ;;  %v3987_v60 = vpop.f32.mrf.mxu0  ;;  %v5349_v41 = vor.u32 %v7106_v59, %v5346_v61  ;;  %v7164_v59 = vld [vmem:[#allocation5 + $0x774] sm:$0xf]  ;;  %v5578_v61 = vld [vmem:[#allocation5 + $0x778] sm:$0xf0] }
 0x17b   :  { %4264 = vmatpush.bf16.msrb.mxu2 %v5309_v2  ;;  %v5157_v2 = vor.u32 %v7058_v34, %v5154_v47  ;;  %v7132_v47 = vld [vmem:[#allocation5 + $0x674] sm:$0xf]  ;;  %v5205_v60 = vor.u32 %v7070_v24, %v5202_v32 }
 0x17c   :  { %4277 = vmatpush.bf16.msrb.mxu3 %v5373_v8  ;;  %v7056_v8 = vld [vmem:[#allocation5 + $0x414] sm:$0xf] }
 0x17d   :  { %4239 = vmatpush.bf16.msrb.mxu0 %v5173_v17  ;;  %v5274_v17 = vld [vmem:[#allocation5 + $0x518] sm:$0xf0]  ;;  %v5149_v21 = vor.u32 %v7056_v8, %v5146_v4  ;;  %v7180_v3 = vld [vmem:[#allocation5 + $0x7f4] sm:$0xf]  ;;  %v5453_v8 = vor.u32 %v7132_v47, %v5450_v62 }
 0x17e   :  { %4252 = vmatpush.bf16.msrb.mxu1 %v5237_v44  ;;  %v7104_v44 = vld [vmem:[#allocation5 + $0x594] sm:$0xf]  ;;  %v5277_v27 = vor.u32 %v7088_v20, %v5274_v17  ;;  %v4026_v56 = vpop.f32.mrf.mxu3  ;;  %v7146_v20 = vld [vmem:[#allocation5 + $0x6e4] sm:$0xf]  ;;  %v5626_v62 = vld [vmem:[#allocation5 + $0x7d8] sm:$0xf0] }
 0x17f   :  { %4265 = vmatpush.bf16.msrb.mxu2 %v5301_v50  ;;  %v5338_v50 = vld [vmem:[#allocation5 + $0x598] sm:$0xf0]  ;;  %v7128_v32 = vld [vmem:[#allocation5 + $0x654] sm:$0xf] }
 0x180   :  { %4278 = vmatpush.bf16.msrb.mxu3 %v5365_v26  ;;  %v5213_v26 = vor.u32 %v7072_v9, %v5210_v42  ;;  %v5341_v40 = vor.u32 %v7104_v44, %v5338_v50  ;;  %v4013_v34 = vpop.f32.mrf.mxu2  ;;  %v5581_v9 = vor.u32 %v7164_v59, %v5578_v61  ;;  %v5442_v42 = vld [vmem:[#allocation5 + $0x668] sm:$0xf0]  ;;  %v7162_v50 = vld [vmem:[#allocation5 + $0x764] sm:$0xf]  ;;  %v7176_v47 = vld [vmem:[#allocation5 + $0x7d4] sm:$0xf] }
 0x181   :  { %4240 = vmatpush.bf16.msrb.mxu0 %v5165_v55  ;;  %v5266_v55 = vld [vmem:[#allocation5 + $0x508] sm:$0xf0]  ;;  %v5562_v34 = vld [vmem:[#allocation5 + $0x758] sm:$0xf0]  ;;  %v7142_v59 = vld [vmem:[#allocation5 + $0x6c4] sm:$0xf]  ;;  %v5629_v61 = vor.u32 %v7176_v47, %v5626_v62  ;;  %v3986_v47 = vadd.f32 %v7779_v14, %v7773_v22 }
 0x182   :  { %4253 = vmatpush.bf16.msrb.mxu1 %v5229_v43  ;;  %v7102_v43 = vld [vmem:[#allocation5 + $0x584] sm:$0xf]  ;;  %v5506_v44 = vld [vmem:[#allocation5 + $0x6e8] sm:$0xf0]  ;;  %v5530_v22 = vld [vmem:[#allocation5 + $0x718] sm:$0xf0] }
 0x183   :  { %4266 = vmatpush.bf16.msrb.mxu2 %v5293_v48  ;;  %v5330_v48 = vld [vmem:[#allocation5 + $0x588] sm:$0xf0]  ;;  %v3999_v14 = vadd.f32 %v7781_v6, %v3986_v47  ;;  %v5834_v47 = vld [vmem:[#allocation5 + $0x978] sm:$0xf0] }
 0x184   :  { %4279 = vmatpush.bf16.msrb.mxu3 %v5357_v51  ;;  %v7148_v51 = vld [vmem:[#allocation5 + $0x6f4] sm:$0xf]  ;;  %v5586_v6 = vld [vmem:[#allocation5 + $0x788] sm:$0xf0] }
 0x185   :  { %4241 = vmatpush.bf16.msrb.mxu0 %v5157_v2  ;;  %v5269_v2 = vor.u32 %v7086_v39, %v5266_v55  ;;  %v5517_v4 = vor.u32 %v7148_v51, %v5514_v58  ;;  %v5434_v39 = vld [vmem:[#allocation5 + $0x658] sm:$0xf0]  ;;  %v5637_v55 = vor.u32 %v7178_v52, %v5634_v36  ;;  %v7126_v58 = vld [vmem:[#allocation5 + $0x644] sm:$0xf] }
 0x186   :  { %4254 = vmatpush.bf16.msrb.mxu1 %v5221_v5  ;;  %v5642_v5 = vld [vmem:[#allocation5 + $0x7f8] sm:$0xf0]  ;;  %v5437_v51 = vor.u32 %v7128_v32, %v5434_v39  ;;  %v5410_v32 = vld [vmem:[#allocation5 + $0x628] sm:$0xf0]  ;;  %v7138_v39 = vld [vmem:[#allocation5 + $0x6a4] sm:$0xf] }
 0x187   :  { %4267 = vmatpush.bf16.msrb.mxu2 %v5285_v38  ;;  %v5333_v38 = vor.u32 %v7102_v43, %v5330_v48  ;;  %v5645_v17 = vor.u32 %v7180_v3, %v5642_v5  ;;  %v5498_v43 = vld [vmem:[#allocation5 + $0x6d8] sm:$0xf0]  ;;  %v7160_v48 = vld [vmem:[#allocation5 + $0x754] sm:$0xf]  ;;  %v5618_v5 = vld [vmem:[#allocation5 + $0x7c8] sm:$0xf0] }
 0x188   :  { %4280 = vmatpush.bf16.msrb.mxu3 %v5349_v41  ;;  %v7130_v41 = vld [vmem:[#allocation5 + $0x664] sm:$0xf]  ;;  %v5610_v52 = vld [vmem:[#allocation5 + $0x7b8] sm:$0xf0] }
 0x189   :  { %4242 = vmatpush.bf16.msrb.mxu0 %v5149_v21  ;;  %v5570_v21 = vld [vmem:[#allocation5 + $0x768] sm:$0xf0] }
 0x18a   :  { %4255 = vmatpush.bf16.msrb.mxu1 %v5213_v26  ;;  %v5445_v26 = vor.u32 %v7130_v41, %v5442_v42  ;;  %v5573_v24 = vor.u32 %v7162_v50, %v5570_v21  ;;  %v5418_v41 = vld [vmem:[#allocation5 + $0x638] sm:$0xf0]  ;;  %v7140_v42 = vld [vmem:[#allocation5 + $0x6b4] sm:$0xf] }
 0x18b   :  { %4268 = vmatpush.bf16.msrb.mxu2 %v5277_v27  ;;  %v5509_v27 = vor.u32 %v7146_v20, %v5506_v44  ;;  %v7156_v44 = vld [vmem:[#allocation5 + $0x734] sm:$0xf]  ;;  %v5546_v50 = vld [vmem:[#allocation5 + $0x738] sm:$0xf0] }
 0x18c   :  { %4281 = vmatpush.bf16.msrb.mxu3 %v5341_v40  ;;  %v7144_v40 = vld [vmem:[#allocation5 + $0x6d4] sm:$0xf] }
 0x18d   :  { %4243 = vmatpush.bf16.msrb.mxu0 %v5141_v10  ;;  %v5501_v56 = vor.u32 %v7144_v40, %v5498_v43  ;;  %v5565_v10 = vor.u32 %v7160_v48, %v5562_v34  ;;  %v7791_v3 = vpop.f32.mrf.mxu0  ;;  %v7172_v21 = vld [vmem:[#allocation5 + $0x7b4] sm:$0xf]  ;;  %v5474_v43 = vld [vmem:[#allocation5 + $0x6a8] sm:$0xf0]  ;;  %v7154_v48 = vld [vmem:[#allocation5 + $0x724] sm:$0xf] }
 0x18e   :  { %4256 = vmatpush.bf16.msrb.mxu1 %v5205_v60  ;;  %v5490_v60 = vld [vmem:[#allocation5 + $0x6c8] sm:$0xf0]  ;;  %v5613_v40 = vor.u32 %v7172_v21, %v5610_v52  ;;  %v7150_v52 = vld [vmem:[#allocation5 + $0x704] sm:$0xf] }
 0x18f   :  { %4269 = vmatpush.bf16.msrb.mxu2 %v5269_v2  ;;  %v7158_v2 = vld [vmem:[#allocation5 + $0x744] sm:$0xf]  ;;  %v5538_v34 = vld [vmem:[#allocation5 + $0x728] sm:$0xf0] }
 0x190   :  { %4282 = vmatpush.bf16.msrb.mxu3 %v5333_v38  ;;  %4244 = vmatmul.bf16.vlgmr.msrb.gmra.mxu0 %v7670_v25  ;;  %v5426_v25 = vld [vmem:[#allocation5 + $0x648] sm:$0xf0]  ;;  %v7793_v38 = vpop.f32.mrf.mxu1 }
 0x191   :  { %4288 = vmatpush.bf16.msra.mxu0 %v5453_v8  ;;  %4257 = vmatmul.bf16.vlgmr.msrb.gmra.mxu1 %v7674_v30  ;;  %v7174_v30 = vld [vmem:[#allocation5 + $0x7c4] sm:$0xf]  ;;  %v5493_v8 = vor.u32 %v7142_v59, %v5490_v60  ;;  %v5477_v59 = vor.u32 %v7138_v39, %v5474_v43  ;;  %v7120_v60 = vld [vmem:[#allocation5 + $0x614] sm:$0xf]  ;;  %v5458_v21 = vld [vmem:[#allocation5 + $0x688] sm:$0xf0] }
 0x192   :  { %4301 = vmatpush.bf16.msra.mxu1 %v5517_v4  ;;  %4270 = vmatmul.bf16.vlgmr.msrb.gmra.mxu2 %v7672_v29  ;;  %v5554_v29 = vld [vmem:[#allocation5 + $0x748] sm:$0xf0]  ;;  %v5621_v20 = vor.u32 %v7174_v30, %v5618_v5  ;;  %v5466_v5 = vld [vmem:[#allocation5 + $0x698] sm:$0xf0] }
 0x193   :  { %4314 = vmatpush.bf16.msra.mxu2 %v5581_v9  ;;  %4283 = vmatmul.bf16.vlgmr.msrb.gmra.mxu3 %v7676_v33  ;;  %v5429_v33 = vor.u32 %v7126_v58, %v5426_v25  ;;  %v5557_v4 = vor.u32 %v7158_v2, %v5554_v29  ;;  %v7124_v9 = vld [vmem:[#allocation5 + $0x634] sm:$0xf]  ;;  %v5402_v2 = vld [vmem:[#allocation5 + $0x618] sm:$0xf0] }
 0x194   :  { %4327 = vmatpush.bf16.msra.mxu3 %v5645_v17  ;;  %v5482_v17 = vld [vmem:[#allocation5 + $0x6b8] sm:$0xf0]  ;;  %v5421_v36 = vor.u32 %v7124_v9, %v5418_v41  ;;  %v7136_v29 = vld [vmem:[#allocation5 + $0x694] sm:$0xf]  ;;  %v5405_v9 = vor.u32 %v7120_v60, %v5402_v2  ;;  %v7118_v41 = vld [vmem:[#allocation5 + $0x604] sm:$0xf] }
 0x195   :  { %4289 = vmatpush.bf16.msra.mxu0 %v5445_v26  ;;  %v5485_v26 = vor.u32 %v7140_v42, %v5482_v17  ;;  %v5394_v42 = vld [vmem:[#allocation5 + $0x608] sm:$0xf0]  ;;  %v5469_v17 = vor.u32 %v7136_v29, %v5466_v5  ;;  %v5706_v39 = vld [vmem:[#allocation5 + $0x878] sm:$0xf0] }
 0x196   :  { %4302 = vmatpush.bf16.msra.mxu1 %v5509_v27  ;;  %v5549_v27 = vor.u32 %v7156_v44, %v5546_v50  ;;  %v7799_v62 = vpop.f32.mrf.mxu3  ;;  %v7134_v50 = vld [vmem:[#allocation5 + $0x684] sm:$0xf]  ;;  %v5698_v5 = vld [vmem:[#allocation5 + $0x868] sm:$0xf0] }
 0x197   :  { %4315 = vmatpush.bf16.msra.mxu2 %v5573_v24  ;;  %v7122_v24 = vld [vmem:[#allocation5 + $0x624] sm:$0xf] }
 0x198   :  { %4328 = vmatpush.bf16.msra.mxu3 %v5637_v55  ;;  %v7795_v55 = vpop.f32.mrf.mxu2  ;;  %v5413_v58 = vor.u32 %v7122_v24, %v5410_v32  ;;  %v4052_v25 = vpop.f32.mrf.mxu1  ;;  %v7196_v32 = vld [vmem:[#allocation5 + $0x874] sm:$0xf] }
 0x199   :  { %4290 = vmatpush.bf16.msra.mxu0 %v5437_v51  ;;  %v7170_v51 = vld [vmem:[#allocation5 + $0x7a4] sm:$0xf]  ;;  %v5898_v25 = vld [vmem:[#allocation5 + $0x9f8] sm:$0xf0] }
 0x19a   :  { %4303 = vmatpush.bf16.msra.mxu1 %v5501_v56  ;;  %v5602_v56 = vld [vmem:[#allocation5 + $0x7a8] sm:$0xf0] }
 0x19b   :  { %4316 = vmatpush.bf16.msra.mxu2 %v5565_v10  ;;  %v4039_v10 = vpop.f32.mrf.mxu0  ;;  %v5605_v30 = vor.u32 %v7170_v51, %v5602_v56  ;;  %v5461_v56 = vor.u32 %v7134_v50, %v5458_v21  ;;  %v7208_v50 = vld [vmem:[#allocation5 + $0x8d4] sm:$0xf] }
 0x19c   :  { %4329 = vmatpush.bf16.msra.mxu3 %v5629_v61  ;;  %v5541_v61 = vor.u32 %v7154_v48, %v5538_v34  ;;  %v5397_v48 = vor.u32 %v7118_v41, %v5394_v42  ;;  %v7228_v34 = vld [vmem:[#allocation5 + $0x974] sm:$0xf] }
 0x19d   :  { %4291 = vmatpush.bf16.msra.mxu0 %v5429_v33  ;;  %v7152_v33 = vld [vmem:[#allocation5 + $0x714] sm:$0xf]  ;;  %v5837_v29 = vor.u32 %v7228_v34, %v5834_v47  ;;  %v7238_v47 = vld [vmem:[#allocation5 + $0x9c4] sm:$0xf] }
 0x19e   :  { %4304 = vmatpush.bf16.msra.mxu1 %v5493_v8  ;;  %v7168_v8 = vld [vmem:[#allocation5 + $0x794] sm:$0xf]  ;;  %v5533_v44 = vor.u32 %v7152_v33, %v5530_v22  ;;  %v4078_v43 = vpop.f32.mrf.mxu3  ;;  %v7210_v33 = vld [vmem:[#allocation5 + $0x8e4] sm:$0xf] }
 0x19f   :  { %4317 = vmatpush.bf16.msra.mxu2 %v5557_v4  ;;  %v5594_v4 = vld [vmem:[#allocation5 + $0x798] sm:$0xf0]  ;;  %v7206_v43 = vld [vmem:[#allocation5 + $0x8c4] sm:$0xf] }
 0x1a0   :  { %4330 = vmatpush.bf16.msra.mxu3 %v5621_v20  ;;  %v4012_v20 = vadd.f32 %v7783_v53, %v3999_v14  ;;  %v4065_v24 = vpop.f32.mrf.mxu2  ;;  %v5770_v53 = vld [vmem:[#allocation5 + $0x8f8] sm:$0xf0]  ;;  %v5762_v14 = vld [vmem:[#allocation5 + $0x8e8] sm:$0xf0] }
 0x1a1   :  { %4292 = vmatpush.bf16.msra.mxu0 %v5421_v36  ;;  %v5597_v36 = vor.u32 %v7168_v8, %v5594_v4  ;;  %v5826_v8 = vld [vmem:[#allocation5 + $0x968] sm:$0xf0]  ;;  %v7242_v4 = vld [vmem:[#allocation5 + $0x9e4] sm:$0xf] }
 0x1a2   :  { %4305 = vmatpush.bf16.msra.mxu1 %v5485_v26  ;;  %v5522_v26 = vld [vmem:[#allocation5 + $0x708] sm:$0xf0]  ;;  %v4025_v51 = vadd.f32 %v7785_v57, %v4012_v20  ;;  %v7226_v57 = vld [vmem:[#allocation5 + $0x964] sm:$0xf] }
 0x1a3   :  { %4318 = vmatpush.bf16.msra.mxu2 %v5549_v27  ;;  %v7166_v27 = vld [vmem:[#allocation5 + $0x784] sm:$0xf]  ;;  %v5525_v10 = vor.u32 %v7150_v52, %v5522_v26  ;;  %v5829_v20 = vor.u32 %v7226_v57, %v5826_v8  ;;  %v5754_v52 = vld [vmem:[#allocation5 + $0x8d8] sm:$0xf0] }
 0x1a4   :  { %4331 = vmatpush.bf16.msra.mxu3 %v5613_v40  ;;  %v7212_v40 = vld [vmem:[#allocation5 + $0x8f4] sm:$0xf]  ;;  %v4038_v60 = vadd.f32 %v7791_v3, %v4025_v51  ;;  %v5765_v3 = vor.u32 %v7210_v33, %v5762_v14  ;;  %v5818_v26 = vld [vmem:[#allocation5 + $0x958] sm:$0xf0]  ;;  %v5874_v51 = vld [vmem:[#allocation5 + $0x9c8] sm:$0xf0] }
 0x1a5   :  { %4293 = vmatpush.bf16.msra.mxu0 %v5413_v58  ;;  %v7244_v58 = vld [vmem:[#allocation5 + $0x9f4] sm:$0xf]  ;;  %v5773_v2 = vor.u32 %v7212_v40, %v5770_v53  ;;  %v5682_v40 = vld [vmem:[#allocation5 + $0x848] sm:$0xf0]  ;;  %v7222_v53 = vld [vmem:[#allocation5 + $0x944] sm:$0xf] }
 0x1a6   :  { %4306 = vmatpush.bf16.msra.mxu1 %v5477_v59  ;;  %v5589_v59 = vor.u32 %v7166_v27, %v5586_v6  ;;  %v5901_v22 = vor.u32 %v7244_v58, %v5898_v25  ;;  %v4051_v42 = vadd.f32 %v7793_v38, %v4038_v60  ;;  %v7240_v38 = vld [vmem:[#allocation5 + $0x9d4] sm:$0xf]  ;;  %v5882_v6 = vld [vmem:[#allocation5 + $0x9d8] sm:$0xf0] }
 0x1a7   :  { %4319 = vmatpush.bf16.msra.mxu2 %v5541_v61  ;;  %v5709_v61 = vor.u32 %v7196_v32, %v5706_v39  ;;  %v5757_v32 = vor.u32 %v7208_v50, %v5754_v52  ;;  %v7190_v39 = vld [vmem:[#allocation5 + $0x844] sm:$0xf]  ;;  %v7204_v60 = vld [vmem:[#allocation5 + $0x8b4] sm:$0xf]  ;;  %v5866_v33 = vld [vmem:[#allocation5 + $0x9b8] sm:$0xf0] }
 0x1a8   :  { %4332 = vmatpush.bf16.msra.mxu3 %v5605_v30  ;;  %v7194_v30 = vld [vmem:[#allocation5 + $0x864] sm:$0xf]  ;;  %v4064_v27 = vadd.f32 %v7795_v55, %v4051_v42  ;;  %v5746_v55 = vld [vmem:[#allocation5 + $0x8c8] sm:$0xf0] }
 0x1a9   :  { %4294 = vmatpush.bf16.msra.mxu0 %v5405_v9  ;;  %v5890_v9 = vld [vmem:[#allocation5 + $0x9e8] sm:$0xf0]  ;;  %v5701_v41 = vor.u32 %v7194_v30, %v5698_v5  ;;  %v5749_v58 = vor.u32 %v7206_v43, %v5746_v55  ;;  %v7220_v30 = vld [vmem:[#allocation5 + $0x934] sm:$0xf]  ;;  %v5802_v5 = vld [vmem:[#allocation5 + $0x938] sm:$0xf0] }
 0x1aa   :  { %4307 = vmatpush.bf16.msra.mxu1 %v5469_v17  ;;  %v7192_v17 = vld [vmem:[#allocation5 + $0x854] sm:$0xf]  ;;  %v5893_v21 = vor.u32 %v7242_v4, %v5890_v9  ;;  %v5805_v8 = vor.u32 %v7220_v30, %v5802_v5  ;;  %v7186_v4 = vld [vmem:[#allocation5 + $0x824] sm:$0xf]  ;;  %v5666_v9 = vld [vmem:[#allocation5 + $0x828] sm:$0xf0] }
 0x1ab   :  { %4320 = vmatpush.bf16.msra.mxu2 %v5533_v44  ;;  %v5690_v44 = vld [vmem:[#allocation5 + $0x858] sm:$0xf0]  ;;  %v7234_v52 = vld [vmem:[#allocation5 + $0x9a4] sm:$0xf]  ;;  %v7216_v55 = vld [vmem:[#allocation5 + $0x914] sm:$0xf] }
 0x1ac   :  { %4333 = vmatpush.bf16.msra.mxu3 %v5597_v36  ;;  %v7224_v36 = vld [vmem:[#allocation5 + $0x954] sm:$0xf]  ;;  %v5693_v24 = vor.u32 %v7192_v17, %v5690_v44  ;;  %v7218_v17 = vld [vmem:[#allocation5 + $0x924] sm:$0xf]  ;;  %v5794_v44 = vld [vmem:[#allocation5 + $0x928] sm:$0xf0] }
 0x1ad   :  { %4295 = vmatpush.bf16.msra.mxu0 %v5397_v48  ;;  %v5885_v48 = vor.u32 %v7240_v38, %v5882_v6  ;;  %v4089_v34 = vpop.f32.mrf.mxu0  ;;  %v7260_v5 = vld [vmem:[#allocation5 + $0xa74] sm:$0xf] }
 0x1ae   :  { %4308 = vmatpush.bf16.msra.mxu1 %v5461_v56  ;;  %v4102_v56 = vpop.f32.mrf.mxu1 }
 0x1af   :  { %4321 = vmatpush.bf16.msra.mxu2 %v5525_v10 }
 0x1b0   :  { %4334 = vmatpush.bf16.msra.mxu3 %v5589_v59  ;;  %4296 = vmatmul.bf16.vlgmr.msra.gmra.mxu0 %v7682_v23  ;;  %v5821_v23 = vor.u32 %v7224_v36, %v5818_v26  ;;  %v7188_v59 = vld [vmem:[#allocation5 + $0x834] sm:$0xf]  ;;  %v5858_v36 = vld [vmem:[#allocation5 + $0x9a8] sm:$0xf0] }
 0x1b1   :  { %4340 = vmatpush.bf16.msrb.mxu0 %v5709_v61  ;;  %4309 = vmatmul.bf16.vlgmr.msra.gmra.mxu1 %v7686_v31  ;;  %v4077_v31 = vadd.f32 %v7799_v62, %v4064_v27  ;;  %v5674_v61 = vld [vmem:[#allocation5 + $0x838] sm:$0xf0]  ;;  %v7236_v62 = vld [vmem:[#allocation5 + $0x9b4] sm:$0xf]  ;;  %v5669_v27 = vor.u32 %v7186_v4, %v5666_v9  ;;  %v5861_v43 = vor.u32 %v7234_v52, %v5858_v36  ;;  %v5954_v52 = vld [vmem:[#allocation5 + $0xa68] sm:$0xf0] }
 0x1b2   :  { %4353 = vmatpush.bf16.msrb.mxu1 %v5773_v2  ;;  %4322 = vmatmul.bf16.vlgmr.msra.gmra.mxu2 %v7684_v28  ;;  %v5810_v28 = vld [vmem:[#allocation5 + $0x948] sm:$0xf0]  ;;  %v5877_v2 = vor.u32 %v7238_v47, %v5874_v51  ;;  %v5869_v42 = vor.u32 %v7236_v62, %v5866_v33  ;;  %v7182_v51 = vld [vmem:[#allocation5 + $0x804] sm:$0xf]  ;;  %v5962_v62 = vld [vmem:[#allocation5 + $0xa78] sm:$0xf0] }
 0x1b3   :  { %4366 = vmatpush.bf16.msrb.mxu2 %v5837_v29  ;;  %4335 = vmatmul.bf16.vlgmr.msra.gmra.mxu3 %v7688_v35  ;;  %v5685_v35 = vor.u32 %v7190_v39, %v5682_v40  ;;  %v4090_v10 = vadd.f32 %v4089_v34, %v4077_v31  ;;  %v5813_v25 = vor.u32 %v7222_v53, %v5810_v28  ;;  %v5738_v29 = vld [vmem:[#allocation5 + $0x8b8] sm:$0xf0]  ;;  %v7200_v40 = vld [vmem:[#allocation5 + $0x894] sm:$0xf]  ;;  %v7274_v36 = vld [vmem:[#allocation5 + $0xae4] sm:$0xf] }
 0x1b4   :  { %4379 = vmatpush.bf16.msrb.mxu3 %v5901_v22  ;;  %v5677_v22 = vor.u32 %v7188_v59, %v5674_v61  ;;  %v5741_v57 = vor.u32 %v7204_v60, %v5738_v29  ;;  %v5658_v39 = vld [vmem:[#allocation5 + $0x818] sm:$0xf0]  ;;  %v7232_v31 = vld [vmem:[#allocation5 + $0x994] sm:$0xf]  ;;  %v7214_v59 = vld [vmem:[#allocation5 + $0x904] sm:$0xf] }
 0x1b5   :  { %4341 = vmatpush.bf16.msrb.mxu0 %v5701_v41  ;;  %v4103_v14 = vadd.f32 %v4102_v56, %v4090_v10  ;;  %v7202_v41 = vld [vmem:[#allocation5 + $0x8a4] sm:$0xf]  ;;  %v4091_v26 = vpop.f32.mrf.mxu0  ;;  %v5786_v53 = vld [vmem:[#allocation5 + $0x918] sm:$0xf0]  ;;  %v5778_v60 = vld [vmem:[#allocation5 + $0x908] sm:$0xf0] }
 0x1b6   :  { %4354 = vmatpush.bf16.msrb.mxu1 %v5765_v3  ;;  %v4115_v3 = vpop.f32.mrf.mxu2  ;;  %v4104_v38 = vpop.f32.mrf.mxu1  ;;  %v5850_v34 = vld [vmem:[#allocation5 + $0x998] sm:$0xf0]  ;;  %v7198_v56 = vld [vmem:[#allocation5 + $0x884] sm:$0xf]  ;;  %v5842_v29 = vld [vmem:[#allocation5 + $0x988] sm:$0xf0] }
 0x1b7   :  { %4367 = vmatpush.bf16.msrb.mxu2 %v5829_v20  ;;  %v5730_v20 = vld [vmem:[#allocation5 + $0x8a8] sm:$0xf0]  ;;  %v4116_v50 = vadd.f32 %v4115_v3, %v4103_v14  ;;  %v5853_v61 = vor.u32 %v7232_v31, %v5850_v34  ;;  %v7276_v33 = vld [vmem:[#allocation5 + $0xaf4] sm:$0xf]  ;;  %v6090_v4 = vld [vmem:[#allocation5 + $0xb78] sm:$0xf0] }
 0x1b8   :  { %4380 = vmatpush.bf16.msrb.mxu3 %v5893_v21  ;;  %v4128_v21 = vpop.f32.mrf.mxu3  ;;  %v6154_v3 = vld [vmem:[#allocation5 + $0xbf8] sm:$0xf0]  ;;  %v7290_v38 = vld [vmem:[#allocation5 + $0xb64] sm:$0xf]  ;;  %v7288_v31 = vld [vmem:[#allocation5 + $0xb54] sm:$0xf] }
 0x1b9   :  { %4342 = vmatpush.bf16.msrb.mxu0 %v5693_v24  ;;  %v4129_v6 = vadd.f32 %v4128_v21, %v4116_v50  ;;  %v5733_v24 = vor.u32 %v7202_v41, %v5730_v20  ;;  %v5781_v41 = vor.u32 %v7214_v59, %v5778_v60  ;;  %v7258_v21 = vld [vmem:[#allocation5 + $0xa64] sm:$0xf]  ;;  %v6074_v34 = vld [vmem:[#allocation5 + $0xb58] sm:$0xf0]  ;;  %v7508_v59 = vld [vmem:[#allocation7] sm:$0x3] }
 0x1ba   :  { %4355 = vmatpush.bf16.msrb.mxu1 %v5757_v32  ;;  %v5797_v32 = vor.u32 %v7218_v17, %v5794_v44  ;;  %v5965_v17 = vor.u32 %v7260_v5, %v5962_v62 }
 0x1bb   :  { %4368 = vmatpush.bf16.msrb.mxu2 %v5821_v23  ;;  %v7184_v23 = vld [vmem:[#allocation5 + $0x814] sm:$0xf]  ;;  %v4600_v28 = vmax.f32 %v4129_v6, 0.0  ;;  %v6082_v6 = vld [vmem:[#allocation5 + $0xb68] sm:$0xf0] }
 0x1bc   :  { %4381 = vmatpush.bf16.msrb.mxu3 %v5885_v48  ;;  %v5722_v48 = vld [vmem:[#allocation5 + $0x898] sm:$0xf0]  ;;  %v5661_v47 = vor.u32 %v7184_v23, %v5658_v39  ;;  %v5957_v23 = vor.u32 %v7258_v21, %v5954_v52 }
 0x1bd   :  { %4343 = vmatpush.bf16.msrb.mxu0 %v5685_v35  ;;  %v5650_v35 = vld [vmem:[#allocation5 + $0x808] sm:$0xf0]  ;;  %4602 = vst [vmem:[#allocation8] sm:$0xff] %v4600_v28  ;;  %v5725_v10 = vor.u32 %v7200_v40, %v5722_v48  ;;  %v6085_v40 = vor.u32 %v7290_v38, %v6082_v6  ;;  %v5946_v48 = vld [vmem:[#allocation5 + $0xa58] sm:$0xf0] }
 0x1be   :  { %4356 = vmatpush.bf16.msrb.mxu1 %v5749_v58  ;;  %v5789_v58 = vor.u32 %v7216_v55, %v5786_v53  ;;  %v4117_v30 = vpop.f32.mrf.mxu2  ;;  %v5653_v14 = vor.u32 %v7182_v51, %v5650_v35  ;;  %v7272_v55 = vld [vmem:[#allocation5 + $0xad4] sm:$0xf]  ;;  %v6010_v28 = vld [vmem:[#allocation5 + $0xad8] sm:$0xf0] }
 0x1bf   :  { %4369 = vmatpush.bf16.msrb.mxu2 %v5813_v25  ;;  %v5714_v25 = vld [vmem:[#allocation5 + $0x888] sm:$0xf0]  ;;  %v6138_v51 = vld [vmem:[#allocation5 + $0xbd8] sm:$0xf0] }
 0x1c0   :  { %4382 = vmatpush.bf16.msrb.mxu3 %v5877_v2  ;;  %v7230_v2 = vld [vmem:[#allocation5 + $0x984] sm:$0xf]  ;;  %v5717_v9 = vor.u32 %v7198_v56, %v5714_v25  ;;  %v6130_v30 = vld [vmem:[#allocation5 + $0xbc8] sm:$0xf0] }
 0x1c1   :  { %4344 = vmatpush.bf16.msrb.mxu0 %v5677_v22  ;;  %v4130_v22 = vpop.f32.mrf.mxu3  ;;  %v5845_v20 = vor.u32 %v7230_v2, %v5842_v29  ;;  %v7254_v56 = vld [vmem:[#allocation5 + $0xa44] sm:$0xf] }
 0x1c2   :  { %4357 = vmatpush.bf16.msrb.mxu1 %v5741_v57  ;;  %v6026_v57 = vld [vmem:[#allocation5 + $0xaf8] sm:$0xf0]  ;;  %v7270_v25 = vld [vmem:[#allocation5 + $0xac4] sm:$0xf]  ;;  %v7252_v22 = vld [vmem:[#allocation5 + $0xa34] sm:$0xf] }
 0x1c3   :  { %4370 = vmatpush.bf16.msrb.mxu2 %v5805_v8  ;;  %v7292_v8 = vld [vmem:[#allocation5 + $0xb74] sm:$0xf]  ;;  %v6029_v44 = vor.u32 %v7276_v33, %v6026_v57  ;;  %v7286_v2 = vld [vmem:[#allocation5 + $0xb44] sm:$0xf] }
 0x1c4   :  { %4383 = vmatpush.bf16.msrb.mxu3 %v5869_v42  ;;  %v7308_v42 = vld [vmem:[#allocation5 + $0xbf4] sm:$0xf]  ;;  %v6093_v50 = vor.u32 %v7292_v8, %v6090_v4  ;;  %v7302_v29 = vld [vmem:[#allocation5 + $0xbc4] sm:$0xf] }
 0x1c5   :  { %4345 = vmatpush.bf16.msrb.mxu0 %v5669_v27  ;;  %v6157_v26 = vor.u32 %v7308_v42, %v6154_v3  ;;  %v6018_v27 = vld [vmem:[#allocation5 + $0xae8] sm:$0xf0]  ;;  %v7268_v57 = vld [vmem:[#allocation5 + $0xab4] sm:$0xf]  ;;  %v6058_v3 = vld [vmem:[#allocation5 + $0xb38] sm:$0xf0] }
 0x1c6   :  { %4358 = vmatpush.bf16.msrb.mxu1 %v5733_v24  ;;  %v7306_v24 = vld [vmem:[#allocation5 + $0xbe4] sm:$0xf]  ;;  %v6021_v39 = vor.u32 %v7274_v36, %v6018_v27  ;;  %v7284_v42 = vld [vmem:[#allocation5 + $0xb34] sm:$0xf] }
 0x1c7   :  { %4371 = vmatpush.bf16.msrb.mxu2 %v5797_v32  ;;  %v6146_v32 = vld [vmem:[#allocation5 + $0xbe8] sm:$0xf0]  ;;  %v6061_v52 = vor.u32 %v7284_v42, %v6058_v3  ;;  %v7250_v36 = vld [vmem:[#allocation5 + $0xa24] sm:$0xf]  ;;  %v6282_v3 = vld [vmem:[#allocation5 + $0xcf8] sm:$0xf0] }
 0x1c8   :  { %4384 = vmatpush.bf16.msrb.mxu3 %v5861_v43  ;;  %v7256_v43 = vld [vmem:[#allocation5 + $0xa54] sm:$0xf]  ;;  %v6149_v53 = vor.u32 %v7306_v24, %v6146_v32  ;;  %v7266_v27 = vld [vmem:[#allocation5 + $0xaa4] sm:$0xf]  ;;  %v5986_v24 = vld [vmem:[#allocation5 + $0xaa8] sm:$0xf0] }
 0x1c9   :  { %4346 = vmatpush.bf16.msrb.mxu0 %v5661_v47  ;;  %v7304_v47 = vld [vmem:[#allocation5 + $0xbd4] sm:$0xf]  ;;  %v5949_v35 = vor.u32 %v7256_v43, %v5946_v48  ;;  %v7282_v32 = vld [vmem:[#allocation5 + $0xb24] sm:$0xf]  ;;  %v6114_v48 = vld [vmem:[#allocation5 + $0xba8] sm:$0xf0] }
 0x1ca   :  { %4359 = vmatpush.bf16.msrb.mxu1 %v5725_v10  ;;  %v6013_v10 = vor.u32 %v7272_v55, %v6010_v28  ;;  %v6141_v60 = vor.u32 %v7304_v47, %v6138_v51  ;;  %v7298_v43 = vld [vmem:[#allocation5 + $0xba4] sm:$0xf]  ;;  %v7248_v47 = vld [vmem:[#allocation5 + $0xa14] sm:$0xf]  ;;  %v5914_v51 = vld [vmem:[#allocation5 + $0xa18] sm:$0xf0] }
 0x1cb   :  { %4372 = vmatpush.bf16.msrb.mxu2 %v5789_v58  ;;  %v6077_v58 = vor.u32 %v7288_v31, %v6074_v34  ;;  %v5989_v31 = vor.u32 %v7266_v27, %v5986_v24  ;;  %v6210_v24 = vld [vmem:[#allocation5 + $0xc68] sm:$0xf0] }
 0x1cc   :  { %4385 = vmatpush.bf16.msrb.mxu3 %v5853_v61  ;;  %v655_v61 = vperm.slane %v7508_v59, 1  ;;  %v7296_v59 = vld [vmem:[#allocation5 + $0xb94] sm:$0xf] }
 0x1cd   :  { %4347 = vmatpush.bf16.msrb.mxu0 %v5653_v14  ;;  %v4141_v5 = vpop.f32.mrf.mxu0  ;;  %v5930_v14 = vld [vmem:[#allocation5 + $0xa38] sm:$0xf0] }
 0x1ce   :  { %4360 = vmatpush.bf16.msrb.mxu1 %v5717_v9  ;;  %v4142_v8 = vadd.f32 %v4141_v5, %v655_v61  ;;  %v4154_v4 = vpop.f32.mrf.mxu1  ;;  %v6133_v9 = vor.u32 %v7302_v29, %v6130_v30  ;;  %v6106_v61 = vld [vmem:[#allocation5 + $0xb98] sm:$0xf0]  ;;  %v7262_v30 = vld [vmem:[#allocation5 + $0xa84] sm:$0xf] }
 0x1cf   :  { %4373 = vmatpush.bf16.msrb.mxu2 %v5781_v41  ;;  %v5994_v41 = vld [vmem:[#allocation5 + $0xab8] sm:$0xf0]  ;;  %v7278_v5 = vld [vmem:[#allocation5 + $0xb04] sm:$0xf] }
 0x1d0   :  { %4386 = vmatpush.bf16.msrb.mxu3 %v5845_v20  ;;  %4348 = vmatmul.bf16.vlgmr.msrb.gmra.mxu0 %v7694_v37  ;;  %v5938_v37 = vld [vmem:[#allocation5 + $0xa48] sm:$0xf0]  ;;  %v7300_v20 = vld [vmem:[#allocation5 + $0xbb4] sm:$0xf]  ;;  %v5997_v21 = vor.u32 %v7268_v57, %v5994_v41 }
 0x1d1   :  { %4392 = vmatpush.bf16.msra.mxu0 %v5965_v17  ;;  %4361 = vmatmul.bf16.vlgmr.msrb.gmra.mxu1 %v7698_v46  ;;  %v6066_v46 = vld [vmem:[#allocation5 + $0xb48] sm:$0xf0]  ;;  %v6122_v17 = vld [vmem:[#allocation5 + $0xbb8] sm:$0xf0]  ;;  %v7340_v41 = vld [vmem:[#allocation5 + $0xcf4] sm:$0xf] }
 0x1d2   :  { %4405 = vmatpush.bf16.msra.mxu1 %v6029_v44  ;;  %4374 = vmatmul.bf16.vlgmr.msrb.gmra.mxu2 %v7696_v45  ;;  %v6002_v45 = vld [vmem:[#allocation5 + $0xac8] sm:$0xf0]  ;;  %v6069_v33 = vor.u32 %v7286_v2, %v6066_v46  ;;  %v4155_v44 = vadd.f32 %v4154_v4, %v4142_v8  ;;  %v6125_v6 = vor.u32 %v7300_v20, %v6122_v17  ;;  %v7324_v4 = vld [vmem:[#allocation5 + $0xc74] sm:$0xf]  ;;  %v6346_v17 = vld [vmem:[#allocation5 + $0xd78] sm:$0xf0] }
 0x1d3   :  { %4418 = vmatpush.bf16.msra.mxu2 %v6093_v50  ;;  %4387 = vmatmul.bf16.vlgmr.msrb.gmra.mxu3 %v7700_v49  ;;  %v5941_v49 = vor.u32 %v7254_v56, %v5938_v37  ;;  %v6005_v62 = vor.u32 %v7270_v25, %v6002_v45  ;;  %v5933_v50 = vor.u32 %v7252_v22, %v5930_v14  ;;  %v7280_v37 = vld [vmem:[#allocation5 + $0xb14] sm:$0xf]  ;;  %v6042_v25 = vld [vmem:[#allocation5 + $0xb18] sm:$0xf0]  ;;  %v7246_v45 = vld [vmem:[#allocation5 + $0xa04] sm:$0xf] }
 0x1d4   :  { %4431 = vmatpush.bf16.msra.mxu3 %v6157_v26  ;;  %v5922_v26 = vld [vmem:[#allocation5 + $0xa28] sm:$0xf0]  ;;  %v6045_v29 = vor.u32 %v7280_v37, %v6042_v25  ;;  %v7294_v14 = vld [vmem:[#allocation5 + $0xb84] sm:$0xf]  ;;  %v7356_v20 = vld [vmem:[#allocation5 + $0xd74] sm:$0xf]  ;;  %v6285_v27 = vor.u32 %v7340_v41, %v6282_v3 }
 0x1d5   :  { %4393 = vmatpush.bf16.msra.mxu0 %v5957_v23  ;;  %v4167_v38 = vpop.f32.mrf.mxu2  ;;  %v6050_v23 = vld [vmem:[#allocation5 + $0xb28] sm:$0xf0]  ;;  %v5925_v55 = vor.u32 %v7250_v36, %v5922_v26  ;;  %v4143_v28 = vpop.f32.mrf.mxu0  ;;  %v6330_v37 = vld [vmem:[#allocation5 + $0xd58] sm:$0xf0]  ;;  %v7368_v25 = vld [vmem:[#allocation5 + $0xdd4] sm:$0xf] }
 0x1d6   :  { %4406 = vmatpush.bf16.msra.mxu1 %v6021_v39  ;;  %v4168_v39 = vadd.f32 %v4167_v38, %v4155_v44  ;;  %v6053_v34 = vor.u32 %v7282_v32, %v6050_v23  ;;  %v4156_v56 = vpop.f32.mrf.mxu1  ;;  %v5906_v2 = vld [vmem:[#allocation5 + $0xa08] sm:$0xf0]  ;;  %v6349_v38 = vor.u32 %v7356_v20, %v6346_v17  ;;  %v7338_v32 = vld [vmem:[#allocation5 + $0xce4] sm:$0xf]  ;;  %v7348_v3 = vld [vmem:[#allocation5 + $0xd34] sm:$0xf] }
 0x1d7   :  { %4419 = vmatpush.bf16.msra.mxu2 %v6085_v40  ;;  %v4180_v40 = vpop.f32.mrf.mxu3  ;;  %v6034_v22 = vld [vmem:[#allocation5 + $0xb08] sm:$0xf0]  ;;  %v5909_v42 = vor.u32 %v7246_v45, %v5906_v2  ;;  %v7318_v2 = vld [vmem:[#allocation5 + $0xc44] sm:$0xf]  ;;  %v6314_v20 = vld [vmem:[#allocation5 + $0xd38] sm:$0xf0] }
 0x1d8   :  { %4432 = vmatpush.bf16.msra.mxu3 %v6149_v53  ;;  %v7816_v53 = vadd.f32 %v4180_v40, %v4168_v39  ;;  %v6098_v57 = vld [vmem:[#allocation5 + $0xb88] sm:$0xf0]  ;;  %v7354_v40 = vld [vmem:[#allocation5 + $0xd64] sm:$0xf]  ;;  %v7364_v17 = vld [vmem:[#allocation5 + $0xdb4] sm:$0xf] }
 0x1d9   :  { %4394 = vmatpush.bf16.msra.mxu0 %v5949_v35  ;;  %v7264_v35 = vld [vmem:[#allocation5 + $0xa94] sm:$0xf]  ;;  %v6101_v36 = vor.u32 %v7294_v14, %v6098_v57  ;;  %v6274_v39 = vld [vmem:[#allocation5 + $0xce8] sm:$0xf0]  ;;  %v6186_v57 = vld [vmem:[#allocation5 + $0xc38] sm:$0xf0] }
 0x1da   :  { %4407 = vmatpush.bf16.msra.mxu1 %v6013_v10  ;;  %v6117_v10 = vor.u32 %v7298_v43, %v6114_v48  ;;  %v6338_v43 = vld [vmem:[#allocation5 + $0xd68] sm:$0xf0]  ;;  %v7370_v48 = vld [vmem:[#allocation5 + $0xde4] sm:$0xf]  ;;  %v7316_v14 = vld [vmem:[#allocation5 + $0xc34] sm:$0xf] }
 0x1db   :  { %4420 = vmatpush.bf16.msra.mxu2 %v6077_v58  ;;  %v5978_v58 = vld [vmem:[#allocation5 + $0xa98] sm:$0xf0] }
 0x1dc   :  { %4433 = vmatpush.bf16.msra.mxu3 %v6141_v60  ;;  %v5917_v60 = vor.u32 %v7248_v47, %v5914_v51  ;;  %v5981_v46 = vor.u32 %v7264_v35, %v5978_v58  ;;  %v7320_v47 = vld [vmem:[#allocation5 + $0xc54] sm:$0xf]  ;;  %v6202_v51 = vld [vmem:[#allocation5 + $0xc58] sm:$0xf0] }
 0x1dd   :  { %4395 = vmatpush.bf16.msra.mxu0 %v5941_v49  ;;  %v5970_v49 = vld [vmem:[#allocation5 + $0xa88] sm:$0xf0]  ;;  %v7336_v35 = vld [vmem:[#allocation5 + $0xcd4] sm:$0xf] }
 0x1de   :  { %4408 = vmatpush.bf16.msra.mxu1 %v6005_v62  ;;  %v4169_v62 = vpop.f32.mrf.mxu2  ;;  %v5973_v44 = vor.u32 %v7262_v30, %v5970_v49  ;;  %v7352_v58 = vld [vmem:[#allocation5 + $0xd54] sm:$0xf]  ;;  %v6258_v30 = vld [vmem:[#allocation5 + $0xcc8] sm:$0xf0]  ;;  %v7350_v49 = vld [vmem:[#allocation5 + $0xd44] sm:$0xf] }
 0x1df   :  { %4421 = vmatpush.bf16.msra.mxu2 %v6069_v33  ;;  %v6109_v33 = vor.u32 %v7296_v59, %v6106_v61  ;;  %v4182_v8 = vpop.f32.mrf.mxu3  ;;  %v6394_v59 = vld [vmem:[#allocation5 + $0xdd8] sm:$0xf0]  ;;  %v6205_v61 = vor.u32 %v7320_v47, %v6202_v51  ;;  %v6333_v45 = vor.u32 %v7352_v58, %v6330_v37  ;;  %v7312_v51 = vld [vmem:[#allocation5 + $0xc14] sm:$0xf] }
 0x1e0   :  { %4434 = vmatpush.bf16.msra.mxu3 %v6133_v9  ;;  %v6218_v9 = vld [vmem:[#allocation5 + $0xc78] sm:$0xf0]  ;;  %v7332_v8 = vld [vmem:[#allocation5 + $0xcb4] sm:$0xf] }
 0x1e1   :  { %4396 = vmatpush.bf16.msra.mxu0 %v5933_v50  ;;  %v6037_v50 = vor.u32 %v7278_v5, %v6034_v22  ;;  %v6221_v26 = vor.u32 %v7324_v4, %v6218_v9  ;;  %v7366_v5 = vld [vmem:[#allocation5 + $0xdc4] sm:$0xf]  ;;  %v6234_v37 = vld [vmem:[#allocation5 + $0xc98] sm:$0xf0] }
 0x1e2   :  { %4409 = vmatpush.bf16.msra.mxu1 %v5997_v21  ;;  %v7372_v21 = vld [vmem:[#allocation5 + $0xdf4] sm:$0xf] }
 0x1e3   :  { %4422 = vmatpush.bf16.msra.mxu2 %v6061_v52  ;;  %v6410_v52 = vld [vmem:[#allocation5 + $0xdf8] sm:$0xf0] }
 0x1e4   :  { %4435 = vmatpush.bf16.msra.mxu3 %v6125_v6  ;;  %v7322_v6 = vld [vmem:[#allocation5 + $0xc64] sm:$0xf]  ;;  %v6413_v23 = vor.u32 %v7372_v21, %v6410_v52  ;;  %v6189_v21 = vor.u32 %v7316_v14, %v6186_v57  ;;  %v7388_v14 = vld [vmem:[#allocation5 + $0xe74] sm:$0xf]  ;;  %v6474_v57 = vld [vmem:[#allocation5 + $0xe78] sm:$0xf0] }
 0x1e5   :  { %4397 = vmatpush.bf16.msra.mxu0 %v5925_v55  ;;  %v6402_v55 = vld [vmem:[#allocation5 + $0xde8] sm:$0xf0]  ;;  %v6213_v28 = vor.u32 %v7322_v6, %v6210_v24 }
 0x1e6   :  { %4410 = vmatpush.bf16.msra.mxu1 %v5989_v31  ;;  %v6277_v31 = vor.u32 %v7338_v32, %v6274_v39  ;;  %v6405_v56 = vor.u32 %v7370_v48, %v6402_v55  ;;  %v6242_v24 = vld [vmem:[#allocation5 + $0xca8] sm:$0xf0]  ;;  %v7346_v32 = vld [vmem:[#allocation5 + $0xd24] sm:$0xf] }
 0x1e7   :  { %4423 = vmatpush.bf16.msra.mxu2 %v6053_v34  ;;  %v6341_v34 = vor.u32 %v7354_v40, %v6338_v43  ;;  %v7362_v43 = vld [vmem:[#allocation5 + $0xda4] sm:$0xf]  ;;  %v6370_v48 = vld [vmem:[#allocation5 + $0xda8] sm:$0xf0] }
 0x1e8   :  { %4436 = vmatpush.bf16.msra.mxu3 %v6117_v10  ;;  %v6266_v10 = vld [vmem:[#allocation5 + $0xcd8] sm:$0xf0]  ;;  %v6373_v58 = vor.u32 %v7362_v43, %v6370_v48 }
 0x1e9   :  { %4398 = vmatpush.bf16.msra.mxu0 %v5917_v60  ;;  %v6269_v60 = vor.u32 %v7336_v35, %v6266_v10  ;;  %v6170_v35 = vld [vmem:[#allocation5 + $0xc18] sm:$0xf0] }
 0x1ea   :  { %4411 = vmatpush.bf16.msra.mxu1 %v5981_v46  ;;  %v7334_v46 = vld [vmem:[#allocation5 + $0xcc4] sm:$0xf] }
 0x1eb   :  { %4424 = vmatpush.bf16.msra.mxu2 %v6045_v29  ;;  %v6397_v29 = vor.u32 %v7368_v25, %v6394_v59  ;;  %v7344_v25 = vld [vmem:[#allocation5 + $0xd14] sm:$0xf]  ;;  %v6298_v59 = vld [vmem:[#allocation5 + $0xd18] sm:$0xf0] }
 0x1ec   :  { %4437 = vmatpush.bf16.msra.mxu3 %v6109_v33 }
 0x1ed   :  { %4399 = vmatpush.bf16.msra.mxu0 %v5909_v42  ;;  %v4193_v33 = vpop.f32.mrf.mxu0  ;;  %v6250_v42 = vld [vmem:[#allocation5 + $0xcb8] sm:$0xf0] }
 0x1ee   :  { %4412 = vmatpush.bf16.msra.mxu1 %v5973_v44  ;;  %v4194_v4 = vadd.f32 %v4193_v33, %v7816_v53  ;;  %v4206_v9 = vpop.f32.mrf.mxu1  ;;  %v6378_v44 = vld [vmem:[#allocation5 + $0xdb8] sm:$0xf0]  ;;  %v6253_v52 = vor.u32 %v7332_v8, %v6250_v42  ;;  %v7358_v33 = vld [vmem:[#allocation5 + $0xd84] sm:$0xf]  ;;  %v7404_v8 = vld [vmem:[#allocation5 + $0xef4] sm:$0xf] }
 0x1ef   :  { %4425 = vmatpush.bf16.msra.mxu2 %v6037_v50  ;;  %v6381_v53 = vor.u32 %v7364_v17, %v6378_v44  ;;  %v6602_v42 = vld [vmem:[#allocation5 + $0xf78] sm:$0xf0]  ;;  %v7436_v17 = vld [vmem:[#allocation5 + $0xff4] sm:$0xf] }
 0x1f0   :  { %4438 = vmatpush.bf16.msra.mxu3 %v6101_v36  ;;  %4400 = vmatmul.bf16.vlgmr.msra.gmra.mxu0 %v7708_v11  ;;  %v6194_v11 = vld [vmem:[#allocation5 + $0xc48] sm:$0xf0]  ;;  %v4207_v50 = vadd.f32 %v4206_v9, %v4194_v4  ;;  %v6317_v36 = vor.u32 %v7348_v3, %v6314_v20  ;;  %v6538_v9 = vld [vmem:[#allocation5 + $0xef8] sm:$0xf0] }
 0x1f1   :  { %4444 = vmatpush.bf16.msrb.mxu0 %v6221_v26  ;;  %4413 = vmatmul.bf16.vlgmr.msra.gmra.mxu1 %v7712_v16  ;;  %v6386_v16 = vld [vmem:[#allocation5 + $0xdc8] sm:$0xf0]  ;;  %v6197_v62 = vor.u32 %v7318_v2, %v6194_v11  ;;  %v7314_v26 = vld [vmem:[#allocation5 + $0xc24] sm:$0xf]  ;;  %v6666_v44 = vld [vmem:[#allocation5 + $0xff8] sm:$0xf0] }
 0x1f2   :  { %4457 = vmatpush.bf16.msrb.mxu1 %v6285_v27  ;;  %4426 = vmatmul.bf16.vlgmr.msra.gmra.mxu2 %v7710_v15  ;;  %v6322_v15 = vld [vmem:[#allocation5 + $0xd48] sm:$0xf0]  ;;  %v6389_v41 = vor.u32 %v7366_v5, %v6386_v16  ;;  %v7310_v2 = vld [vmem:[#allocation5 + $0xc04] sm:$0xf] }
 0x1f3   :  { %4470 = vmatpush.bf16.msrb.mxu2 %v6349_v38  ;;  %4439 = vmatmul.bf16.vlgmr.msra.gmra.mxu3 %v7714_v19  ;;  %v6261_v19 = vor.u32 %v7334_v46, %v6258_v30  ;;  %v6325_v22 = vor.u32 %v7350_v49, %v6322_v15  ;;  %v6178_v27 = vld [vmem:[#allocation5 + $0xc28] sm:$0xf0]  ;;  %v7330_v38 = vld [vmem:[#allocation5 + $0xca4] sm:$0xf] }
 0x1f4   :  { %4483 = vmatpush.bf16.msrb.mxu3 %v6413_v23  ;;  %v6306_v23 = vld [vmem:[#allocation5 + $0xd28] sm:$0xf0]  ;;  %v6181_v55 = vor.u32 %v7314_v26, %v6178_v27  ;;  %v7326_v30 = vld [vmem:[#allocation5 + $0xc84] sm:$0xf] }
 0x1f5   :  { %4445 = vmatpush.bf16.msrb.mxu0 %v6213_v28  ;;  %v4219_v6 = vpop.f32.mrf.mxu2  ;;  %v6309_v47 = vor.u32 %v7346_v32, %v6306_v23  ;;  %v6162_v11 = vld [vmem:[#allocation5 + $0xc08] sm:$0xf0]  ;;  %v7342_v15 = vld [vmem:[#allocation5 + $0xd04] sm:$0xf] }
 0x1f6   :  { %4458 = vmatpush.bf16.msrb.mxu1 %v6277_v31  ;;  %v4220_v39 = vadd.f32 %v4219_v6, %v4207_v50  ;;  %v4232_v40 = vpop.f32.mrf.mxu3  ;;  %v4195_v31 = vpop.f32.mrf.mxu0  ;;  %v6226_v49 = vld [vmem:[#allocation5 + $0xc88] sm:$0xf0]  ;;  %v6165_v4 = vor.u32 %v7310_v2, %v6162_v11  ;;  %v7386_v26 = vld [vmem:[#allocation5 + $0xe64] sm:$0xf]  ;;  %v6669_v6 = vor.u32 %v7436_v17, %v6666_v44 }
 0x1f7   :  { %4471 = vmatpush.bf16.msrb.mxu2 %v6341_v34  ;;  %v6245_v34 = vor.u32 %v7330_v38, %v6242_v24  ;;  %v4208_v10 = vpop.f32.mrf.mxu1  ;;  %v6229_v3 = vor.u32 %v7326_v30, %v6226_v49  ;;  %v6466_v27 = vld [vmem:[#allocation5 + $0xe68] sm:$0xf0]  ;;  %v7402_v38 = vld [vmem:[#allocation5 + $0xee4] sm:$0xf]  ;;  %v6458_v31 = vld [vmem:[#allocation5 + $0xe58] sm:$0xf0] }
 0x1f8   :  { %4484 = vmatpush.bf16.msrb.mxu3 %v6405_v56  ;;  %v7823_v28 = vadd.f32 %v4232_v40, %v4220_v39  ;;  %v7328_v56 = vld [vmem:[#allocation5 + $0xc94] sm:$0xf]  ;;  %v7418_v24 = vld [vmem:[#allocation5 + $0xf64] sm:$0xf]  ;;  %v6594_v32 = vld [vmem:[#allocation5 + $0xf68] sm:$0xf0]  ;;  %v6469_v40 = vor.u32 %v7386_v26, %v6466_v27 }
 0x1f9   :  { %4446 = vmatpush.bf16.msrb.mxu0 %v6205_v61  ;;  %v7360_v61 = vld [vmem:[#allocation5 + $0xd94] sm:$0xf]  ;;  %v6237_v46 = vor.u32 %v7328_v56, %v6234_v37  ;;  %v7434_v23 = vld [vmem:[#allocation5 + $0xfe4] sm:$0xf]  ;;  %v6658_v39 = vld [vmem:[#allocation5 + $0xfe8] sm:$0xf0]  ;;  %v6597_v48 = vor.u32 %v7418_v24, %v6594_v32 }
 0x1fa   :  { %4459 = vmatpush.bf16.msrb.mxu1 %v6269_v60  ;;  %v6362_v60 = vld [vmem:[#allocation5 + $0xd98] sm:$0xf0]  ;;  %v7432_v10 = vld [vmem:[#allocation5 + $0xfd4] sm:$0xf]  ;;  %v6514_v2 = vld [vmem:[#allocation5 + $0xec8] sm:$0xf0] }
 0x1fb   :  { %4472 = vmatpush.bf16.msrb.mxu2 %v6333_v45  ;;  %v6173_v45 = vor.u32 %v7312_v51, %v6170_v35  ;;  %v6365_v16 = vor.u32 %v7360_v61, %v6362_v60  ;;  %v6522_v51 = vld [vmem:[#allocation5 + $0xed8] sm:$0xf0]  ;;  %v7416_v35 = vld [vmem:[#allocation5 + $0xf54] sm:$0xf]  ;;  %v7382_v61 = vld [vmem:[#allocation5 + $0xe44] sm:$0xf] }
 0x1fc   :  { %4485 = vmatpush.bf16.msrb.mxu3 %v6397_v29  ;;  %v6301_v29 = vor.u32 %v7344_v25, %v6298_v59  ;;  %v6586_v56 = vld [vmem:[#allocation5 + $0xf58] sm:$0xf0]  ;;  %v7398_v60 = vld [vmem:[#allocation5 + $0xec4] sm:$0xf] }
 0x1fd   :  { %4447 = vmatpush.bf16.msrb.mxu0 %v6197_v62  ;;  %v4221_v5 = vpop.f32.mrf.mxu2  ;;  %v6290_v62 = vld [vmem:[#allocation5 + $0xd08] sm:$0xf0]  ;;  %v6589_v59 = vor.u32 %v7416_v35, %v6586_v56  ;;  %v7414_v11 = vld [vmem:[#allocation5 + $0xf44] sm:$0xf]  ;;  %v7424_v35 = vld [vmem:[#allocation5 + $0xf94] sm:$0xf] }
 0x1fe   :  { %4460 = vmatpush.bf16.msrb.mxu1 %v6261_v19  ;;  %v6354_v19 = vld [vmem:[#allocation5 + $0xd88] sm:$0xf0]  ;;  %v6293_v20 = vor.u32 %v7342_v15, %v6290_v62  ;;  %v6517_v15 = vor.u32 %v7398_v60, %v6514_v2  ;;  %v6442_v62 = vld [vmem:[#allocation5 + $0xe38] sm:$0xf0]  ;;  %v7394_v17 = vld [vmem:[#allocation5 + $0xea4] sm:$0xf] }
 0x1ff   :  { %4473 = vmatpush.bf16.msrb.mxu2 %v6325_v22  ;;  %v4234_v22 = vpop.f32.mrf.mxu3  ;;  %v6357_v50 = vor.u32 %v7358_v33, %v6354_v19  ;;  %v7396_v33 = vld [vmem:[#allocation5 + $0xeb4] sm:$0xf]  ;;  %v6618_v56 = vld [vmem:[#allocation5 + $0xf98] sm:$0xf0]  ;;  %v7406_v60 = vld [vmem:[#allocation5 + $0xf04] sm:$0xf] }
 0x200   :  { %4486 = vmatpush.bf16.msrb.mxu3 %v6389_v41  ;;  %v7420_v41 = vld [vmem:[#allocation5 + $0xf74] sm:$0xf]  ;;  %v6546_v2 = vld [vmem:[#allocation5 + $0xf08] sm:$0xf0] }
 0x201   :  { %4448 = vmatpush.bf16.msrb.mxu0 %v6189_v21  ;;  %v6477_v21 = vor.u32 %v7388_v14, %v6474_v57  ;;  %v6506_v14 = vld [vmem:[#allocation5 + $0xeb8] sm:$0xf0]  ;;  %v7412_v57 = vld [vmem:[#allocation5 + $0xf34] sm:$0xf] }
 0x202   :  { %4461 = vmatpush.bf16.msrb.mxu1 %v6253_v52  ;;  %v6541_v52 = vor.u32 %v7404_v8, %v6538_v9  ;;  %v6570_v8 = vld [vmem:[#allocation5 + $0xf38] sm:$0xf0] }
 0x203   :  { %4474 = vmatpush.bf16.msrb.mxu2 %v6317_v36  ;;  %v6605_v36 = vor.u32 %v7420_v41, %v6602_v42  ;;  %v6634_v9 = vld [vmem:[#allocation5 + $0xfb8] sm:$0xf0]  ;;  %v6573_v42 = vor.u32 %v7412_v57, %v6570_v8 }
 0x204   :  { %4487 = vmatpush.bf16.msrb.mxu3 %v6381_v53  ;;  %v6530_v53 = vld [vmem:[#allocation5 + $0xee8] sm:$0xf0] }
 0x205   :  { %4449 = vmatpush.bf16.msrb.mxu0 %v6181_v55  ;;  %v6533_v43 = vor.u32 %v7402_v38, %v6530_v53  ;;  %v7384_v55 = vld [vmem:[#allocation5 + $0xe54] sm:$0xf]  ;;  %v7426_v38 = vld [vmem:[#allocation5 + $0xfa4] sm:$0xf] }
 0x206   :  { %4462 = vmatpush.bf16.msrb.mxu1 %v6245_v34  ;;  %v7400_v34 = vld [vmem:[#allocation5 + $0xed4] sm:$0xf]  ;;  %v6461_v37 = vor.u32 %v7384_v55, %v6458_v31 }
 0x207   :  { %4475 = vmatpush.bf16.msrb.mxu2 %v6309_v47  ;;  %v6661_v47 = vor.u32 %v7434_v23, %v6658_v39  ;;  %v6525_v25 = vor.u32 %v7400_v34, %v6522_v51  ;;  %v7392_v55 = vld [vmem:[#allocation5 + $0xe94] sm:$0xf]  ;;  %v6490_v34 = vld [vmem:[#allocation5 + $0xe98] sm:$0xf0] }
 0x208   :  { %4488 = vmatpush.bf16.msrb.mxu3 %v6373_v58  ;;  %v6650_v58 = vld [vmem:[#allocation5 + $0xfd8] sm:$0xf0] }
 0x209   :  { %4450 = vmatpush.bf16.msrb.mxu0 %v6173_v45  ;;  %v6653_v45 = vor.u32 %v7432_v10, %v6650_v58  ;;  %v6554_v51 = vld [vmem:[#allocation5 + $0xf18] sm:$0xf0]  ;;  %v7374_v58 = vld [vmem:[#allocation5 + $0xe04] sm:$0xf] }
 0x20a   :  { %4463 = vmatpush.bf16.msrb.mxu1 %v6237_v46 }
 0x20b   :  { %4476 = vmatpush.bf16.msrb.mxu2 %v6301_v29  ;;  %v6642_v29 = vld [vmem:[#allocation5 + $0xfc8] sm:$0xf0] }
 0x20c   :  { %4489 = vmatpush.bf16.msrb.mxu3 %v6365_v16  ;;  %v7380_v16 = vld [vmem:[#allocation5 + $0xe34] sm:$0xf] }
 0x20d   :  { %4451 = vmatpush.bf16.msrb.mxu0 %v6165_v4  ;;  %v4245_v46 = vpop.f32.mrf.mxu0  ;;  %v7428_v4 = vld [vmem:[#allocation5 + $0xfb4] sm:$0xf]  ;;  %v6445_v41 = vor.u32 %v7380_v16, %v6442_v62  ;;  %v6858_v16 = vld [vmem:[#allocation5 + $0x1178] sm:$0xf0] }
 0x20e   :  { %4464 = vmatpush.bf16.msrb.mxu1 %v6229_v3  ;;  %v4258_v49 = vpop.f32.mrf.mxu1  ;;  %v7378_v3 = vld [vmem:[#allocation5 + $0xe24] sm:$0xf]  ;;  %v6637_v44 = vor.u32 %v7428_v4, %v6634_v9 }
 0x20f   :  { %4477 = vmatpush.bf16.msrb.mxu2 %v6293_v20  ;;  %v6434_v20 = vld [vmem:[#allocation5 + $0xe28] sm:$0xf0]  ;;  %v7450_v9 = vld [vmem:[#allocation5 + $0x1064] sm:$0xf] }
 0x210   :  { %4490 = vmatpush.bf16.msrb.mxu3 %v6357_v50  ;;  %4452 = vmatmul.bf16.vlgmr.msrb.gmra.mxu0 %v7723_v7  ;;  %v6450_v7 = vld [vmem:[#allocation5 + $0xe48] sm:$0xf0]  ;;  %v6437_v24 = vor.u32 %v7378_v3, %v6434_v20  ;;  %v7482_v20 = vld [vmem:[#allocation5 + $0x1164] sm:$0xf] }
 0x211   :  { %4496 = vmatpush.bf16.msra.mxu0 %v6477_v21  ;;  %4465 = vmatmul.bf16.vlgmr.msrb.gmra.mxu1 %v7727_v13  ;;  %v7430_v13 = vld [vmem:[#allocation5 + $0xfc4] sm:$0xf]  ;;  %v6453_v30 = vor.u32 %v7382_v61, %v6450_v7  ;;  %v6498_v21 = vld [vmem:[#allocation5 + $0xea8] sm:$0xf0] }
 0x212   :  { %4509 = vmatpush.bf16.msra.mxu1 %v6541_v52  ;;  %4478 = vmatmul.bf16.vlgmr.msrb.gmra.mxu2 %v7725_v12  ;;  %v6578_v12 = vld [vmem:[#allocation5 + $0xf48] sm:$0xf0]  ;;  %v6645_v19 = vor.u32 %v7430_v13, %v6642_v29  ;;  %v7410_v52 = vld [vmem:[#allocation5 + $0xf24] sm:$0xf]  ;;  %v6501_v39 = vor.u32 %v7394_v17, %v6498_v21  ;;  %v7452_v13 = vld [vmem:[#allocation5 + $0x1074] sm:$0xf] }
 0x213   :  { %4522 = vmatpush.bf16.msra.mxu2 %v6605_v36  ;;  %4491 = vmatmul.bf16.vlgmr.msrb.gmra.mxu3 %v7729_v18  ;;  %v4246_v18 = vadd.f32 %v4245_v46, %v7823_v28  ;;  %v6581_v5 = vor.u32 %v7414_v11, %v6578_v12  ;;  %v6509_v28 = vor.u32 %v7396_v33, %v6506_v14  ;;  %v6562_v36 = vld [vmem:[#allocation5 + $0xf28] sm:$0xf0]  ;;  %v7390_v61 = vld [vmem:[#allocation5 + $0xe84] sm:$0xf]  ;;  %v6730_v29 = vld [vmem:[#allocation5 + $0x1078] sm:$0xf0] }
 0x214   :  { %4535 = vmatpush.bf16.msra.mxu3 %v6669_v6  ;;  %v6626_v6 = vld [vmem:[#allocation5 + $0xfa8] sm:$0xf0]  ;;  %v7422_v11 = vld [vmem:[#allocation5 + $0xf84] sm:$0xf]  ;;  %v6549_v33 = vor.u32 %v7406_v60, %v6546_v2  ;;  %v6733_v57 = vor.u32 %v7452_v13, %v6730_v29  ;;  %v7444_v13 = vld [vmem:[#allocation5 + $0x1034] sm:$0xf] }
 0x215   :  { %4497 = vmatpush.bf16.msra.mxu0 %v6469_v40  ;;  %v4259_v22 = vadd.f32 %v4258_v49, %v4246_v18  ;;  %v4271_v50 = vpop.f32.mrf.mxu2  ;;  %v4247_v53 = vpop.f32.mrf.mxu0  ;;  %v6565_v40 = vor.u32 %v7410_v52, %v6562_v36  ;;  %v6629_v31 = vor.u32 %v7426_v38, %v6626_v6  ;;  %v6482_v7 = vld [vmem:[#allocation5 + $0xe88] sm:$0xf0]  ;;  %v7468_v18 = vld [vmem:[#allocation5 + $0x10f4] sm:$0xf]  ;;  %v6698_v29 = vld [vmem:[#allocation5 + $0x1038] sm:$0xf0] }
 0x216   :  { %4510 = vmatpush.bf16.msra.mxu1 %v6533_v43  ;;  %v4284_v27 = vpop.f32.mrf.mxu3  ;;  %v4260_v32 = vpop.f32.mrf.mxu1  ;;  %v7376_v43 = vld [vmem:[#allocation5 + $0xe14] sm:$0xf]  ;;  %v6610_v12 = vld [vmem:[#allocation5 + $0xf88] sm:$0xf0]  ;;  %v6485_v62 = vor.u32 %v7390_v61, %v6482_v7  ;;  %v7494_v7 = vld [vmem:[#allocation5 + $0x11c4] sm:$0xf] }
 0x217   :  { %4523 = vmatpush.bf16.msra.mxu2 %v6597_v48  ;;  %v4272_v26 = vadd.f32 %v4271_v50, %v4259_v22  ;;  %v6426_v48 = vld [vmem:[#allocation5 + $0xe18] sm:$0xf0]  ;;  %v6613_v14 = vor.u32 %v7422_v11, %v6610_v12  ;;  %v6786_v3 = vld [vmem:[#allocation5 + $0x10e8] sm:$0xf0]  ;;  %v7464_v38 = vld [vmem:[#allocation5 + $0x10d4] sm:$0xf] }
 0x218   :  { %4536 = vmatpush.bf16.msra.mxu3 %v6661_v47  ;;  %v7408_v47 = vld [vmem:[#allocation5 + $0xf14] sm:$0xf]  ;;  %v6429_v10 = vor.u32 %v7376_v43, %v6426_v48  ;;  %v6922_v22 = vld [vmem:[#allocation5 + $0x11f8] sm:$0xf0]  ;;  %v6850_v17 = vld [vmem:[#allocation5 + $0x1168] sm:$0xf0] }
 0x219   :  { %4498 = vmatpush.bf16.msra.mxu0 %v6461_v37  ;;  %v7830_v23 = vadd.f32 %v4284_v27, %v4272_v26  ;;  %v6418_v37 = vld [vmem:[#allocation5 + $0xe08] sm:$0xf0]  ;;  %v6853_v36 = vor.u32 %v7482_v20, %v6850_v17  ;;  %v7448_v26 = vld [vmem:[#allocation5 + $0x1054] sm:$0xf]  ;;  %v6714_v27 = vld [vmem:[#allocation5 + $0x1058] sm:$0xf0] }
 0x21a   :  { %4511 = vmatpush.bf16.msra.mxu1 %v6525_v25  ;;  %v6493_v25 = vor.u32 %v7392_v55, %v6490_v34  ;;  %v6421_v49 = vor.u32 %v7374_v58, %v6418_v37  ;;  %v6914_v50 = vld [vmem:[#allocation5 + $0x11e8] sm:$0xf0]  ;;  %v7856_v6 = vld [vmem:[#allocation12_spill] sm:$0xff]  ;;  %v7858_v43 = vld [vmem:[#allocation14_spill] sm:$0xff]  ;;  %v6717_v34 = vor.u32 %v7448_v26, %v6714_v27 }
 0x21b   :  { %4524 = vmatpush.bf16.msra.mxu2 %v6589_v59  ;;  %v6557_v59 = vor.u32 %v7408_v47, %v6554_v51  ;;  %v7480_v32 = vld [vmem:[#allocation5 + $0x1154] sm:$0xf]  ;;  %v6906_v55 = vld [vmem:[#allocation5 + $0x11d8] sm:$0xf0]  ;;  %v6770_v37 = vld [vmem:[#allocation5 + $0x10c8] sm:$0xf0] }
 0x21c   :  { %4537 = vmatpush.bf16.msra.mxu3 %v6653_v45  ;;  %v6621_v45 = vor.u32 %v7424_v35, %v6618_v56  ;;  %v7496_v48 = vld [vmem:[#allocation5 + $0x11d4] sm:$0xf]  ;;  %v7446_v35 = vld [vmem:[#allocation5 + $0x1044] sm:$0xf]  ;;  %v6706_v56 = vld [vmem:[#allocation5 + $0x1048] sm:$0xf0] }
 0x21d   :  { %4499 = vmatpush.bf16.msra.mxu0 %v6453_v30  ;;  %v4273_v46 = vpop.f32.mrf.mxu2  ;;  %v6909_v58 = vor.u32 %v7496_v48, %v6906_v55  ;;  %v6898_v60 = vld [vmem:[#allocation5 + $0x11c8] sm:$0xf0]  ;;  %v6709_v2 = vor.u32 %v7446_v35, %v6706_v56  ;;  %v7490_v17 = vld [vmem:[#allocation5 + $0x11a4] sm:$0xf]  ;;  %v6874_v48 = vld [vmem:[#allocation5 + $0x1198] sm:$0xf0] }
 0x21e   :  { %4512 = vmatpush.bf16.msra.mxu1 %v6517_v15  ;;  %v4286_v30 = vpop.f32.mrf.mxu3  ;;  %v6794_v15 = vld [vmem:[#allocation5 + $0x10f8] sm:$0xf0]  ;;  %v7454_v35 = vld [vmem:[#allocation5 + $0x1084] sm:$0xf] }
 0x21f   :  { %4525 = vmatpush.bf16.msra.mxu2 %v6581_v5  ;;  %v7484_v5 = vld [vmem:[#allocation5 + $0x1174] sm:$0xf]  ;;  %v6797_v8 = vor.u32 %v7468_v18, %v6794_v15  ;;  %v6901_v30 = vor.u32 %v7494_v7, %v6898_v60  ;;  %v6762_v15 = vld [vmem:[#allocation5 + $0x10b8] sm:$0xf0] }
 0x220   :  { %4538 = vmatpush.bf16.msra.mxu3 %v6645_v19  ;;  %v7500_v19 = vld [vmem:[#allocation5 + $0x11f4] sm:$0xf]  ;;  %v6861_v4 = vor.u32 %v7484_v5, %v6858_v16  ;;  %v6826_v16 = vld [vmem:[#allocation5 + $0x1138] sm:$0xf0] }
 0x221   :  { %4500 = vmatpush.bf16.msra.mxu0 %v6445_v41  ;;  %v6722_v41 = vld [vmem:[#allocation5 + $0x1068] sm:$0xf0]  ;;  %v7460_v18 = vld [vmem:[#allocation5 + $0x10b4] sm:$0xf] }
 0x222   :  { %4513 = vmatpush.bf16.msra.mxu1 %v6509_v28  ;;  %v7466_v28 = vld [vmem:[#allocation5 + $0x10e4] sm:$0xf]  ;;  %v6725_v21 = vor.u32 %v7450_v9, %v6722_v41  ;;  %v7476_v5 = vld [vmem:[#allocation5 + $0x1134] sm:$0xf]  ;;  %v6754_v41 = vld [vmem:[#allocation5 + $0x10a8] sm:$0xf0] }
 0x223   :  { %4526 = vmatpush.bf16.msra.mxu2 %v6573_v42  ;;  %v6925_v42 = vor.u32 %v7500_v19, %v6922_v22  ;;  %v6789_v52 = vor.u32 %v7466_v28, %v6786_v3  ;;  %v6701_v19 = vor.u32 %v7444_v13, %v6698_v29  ;;  %v6829_v22 = vor.u32 %v7476_v5, %v6826_v16  ;;  %v7474_v28 = vld [vmem:[#allocation5 + $0x1124] sm:$0xf] }
 0x224   :  { %4539 = vmatpush.bf16.msra.mxu3 %v6637_v44  ;;  %v7498_v44 = vld [vmem:[#allocation5 + $0x11e4] sm:$0xf] }
 0x225   :  { %4501 = vmatpush.bf16.msra.mxu0 %v6437_v24  ;;  %v6917_v53 = vor.u32 %v7498_v44, %v6914_v50  ;;  %v6778_v24 = vld [vmem:[#allocation5 + $0x10d8] sm:$0xf0]  ;;  %v6882_v44 = vld [vmem:[#allocation5 + $0x11a8] sm:$0xf0] }
 0x226   :  { %4514 = vmatpush.bf16.msra.mxu1 %v6501_v39  ;;  %v6842_v39 = vld [vmem:[#allocation5 + $0x1158] sm:$0xf0]  ;;  %v6781_v47 = vor.u32 %v7464_v38, %v6778_v24  ;;  %v7440_v38 = vld [vmem:[#allocation5 + $0x1014] sm:$0xf]  ;;  %v6885_v24 = vor.u32 %v7490_v17, %v6882_v44 }
 0x227   :  { %4527 = vmatpush.bf16.msra.mxu2 %v6565_v40  ;;  %v7857_v40 = vld [vmem:[#allocation13_spill] sm:$0xff]  ;;  %v6845_v51 = vor.u32 %v7480_v32, %v6842_v39  ;;  %v7472_v39 = vld [vmem:[#allocation5 + $0x1114] sm:$0xf] }
 0x228   :  { %4540 = vmatpush.bf16.msra.mxu3 %v6629_v31  ;;  %v7859_v31 = vld [vmem:[#allocation15_spill] sm:$0xff]  ;;  %v6746_v32 = vld [vmem:[#allocation5 + $0x1098] sm:$0xf0] }
 0x229   :  { %4502 = vmatpush.bf16.msra.mxu0 %v6429_v10  ;;  %v7462_v10 = vld [vmem:[#allocation5 + $0x10c4] sm:$0xf] }
 0x22a   :  { %4515 = vmatpush.bf16.msra.mxu1 %v6493_v25  ;;  %v7478_v25 = vld [vmem:[#allocation5 + $0x1144] sm:$0xf]  ;;  %v6773_v12 = vor.u32 %v7462_v10, %v6770_v37  ;;  %v6738_v10 = vld [vmem:[#allocation5 + $0x1088] sm:$0xf0] }
 0x22b   :  { %4528 = vmatpush.bf16.msra.mxu2 %v6557_v59  ;;  %v6834_v59 = vld [vmem:[#allocation5 + $0x1148] sm:$0xf0] }
 0x22c   :  { %4541 = vmatpush.bf16.msra.mxu3 %v6621_v45  ;;  %v6837_v46 = vor.u32 %v7478_v25, %v6834_v59  ;;  %v6802_v37 = vld [vmem:[#allocation5 + $0x1108] sm:$0xf0]  ;;  %v7486_v59 = vld [vmem:[#allocation5 + $0x1184] sm:$0xf] }
 0x22d   :  { %4503 = vmatpush.bf16.msra.mxu0 %v6421_v49  ;;  %v4297_v61 = vpop.f32.mrf.mxu0 }
 0x22e   :  { %4516 = vmatpush.bf16.msra.mxu1 %v6485_v62  ;;  %v4298_v45 = vadd.f32 %v4297_v61, %v7830_v23  ;;  %v4310_v11 = vpop.f32.mrf.mxu1  ;;  %v7492_v62 = vld [vmem:[#allocation5 + $0x11b4] sm:$0xf]  ;;  %v6765_v23 = vor.u32 %v7460_v18, %v6762_v15  ;;  %v6866_v61 = vld [vmem:[#allocation5 + $0x1188] sm:$0xf0] }
 0x22f   :  { %4529 = vmatpush.bf16.msra.mxu2 %v6549_v33  ;;  %v6890_v33 = vld [vmem:[#allocation5 + $0x11b8] sm:$0xf0] }
 0x230   :  { %4542 = vmatpush.bf16.msra.mxu3 %v6613_v14  ;;  %4504 = vmatmul.bf16.vlgmr.msra.gmra.mxu0 %v7856_v6  ;;  %v4311_v49 = vadd.f32 %v4310_v11, %v4298_v45  ;;  %v7442_v14 = vld [vmem:[#allocation5 + $0x1024] sm:$0xf]  ;;  %v6682_v6 = vld [vmem:[#allocation5 + $0x1018] sm:$0xf0]  ;;  %v6741_v45 = vor.u32 %v7454_v35, %v6738_v10  ;;  %v6869_v11 = vor.u32 %v7486_v59, %v6866_v61 }
 0x231   :  { %4548 = vmatpush.bf16.msrb.mxu0 %v6733_v57  ;;  %4517 = vmatmul.bf16.vlgmr.msra.gmra.mxu1 %v7858_v43  ;;  %v6690_v57 = vld [vmem:[#allocation5 + $0x1028] sm:$0xf0]  ;;  %v7488_v43 = vld [vmem:[#allocation5 + $0x1194] sm:$0xf]  ;;  %v6685_v55 = vor.u32 %v7440_v38, %v6682_v6 }
 0x232   :  { %4561 = vmatpush.bf16.msrb.mxu1 %v6797_v8  ;;  %4530 = vmatmul.bf16.vlgmr.msra.gmra.mxu2 %v7857_v40  ;;  %v7458_v8 = vld [vmem:[#allocation5 + $0x10a4] sm:$0xf]  ;;  %v6810_v40 = vld [vmem:[#allocation5 + $0x1118] sm:$0xf0]  ;;  %v6877_v56 = vor.u32 %v7488_v43, %v6874_v48 }
 0x233   :  { %4574 = vmatpush.bf16.msrb.mxu2 %v6861_v4  ;;  %4543 = vmatmul.bf16.vlgmr.msra.gmra.mxu3 %v7859_v31  ;;  %v6893_v4 = vor.u32 %v7492_v62, %v6890_v33  ;;  %v6757_v26 = vor.u32 %v7458_v8, %v6754_v41 }
 0x234   :  { %4587 = vmatpush.bf16.msrb.mxu3 %v6925_v42  ;;  %v6818_v42 = vld [vmem:[#allocation5 + $0x1128] sm:$0xf0] }
 0x235   :  { %4549 = vmatpush.bf16.msrb.mxu0 %v6725_v21  ;;  %v4323_v9 = vpop.f32.mrf.mxu2  ;;  %v4299_v50 = vpop.f32.mrf.mxu0  ;;  %v6693_v21 = vor.u32 %v7442_v14, %v6690_v57  ;;  %v6821_v27 = vor.u32 %v7474_v28, %v6818_v42 }
 0x236   :  { %4562 = vmatpush.bf16.msrb.mxu1 %v6789_v52  ;;  %v4324_v3 = vadd.f32 %v4323_v9, %v4311_v49  ;;  %v4336_v20 = vpop.f32.mrf.mxu3  ;;  %v4312_v52 = vpop.f32.mrf.mxu1 }
 0x237   :  { %4575 = vmatpush.bf16.msrb.mxu2 %v6853_v36 }
 0x238   :  { %4588 = vmatpush.bf16.msrb.mxu3 %v6917_v53  ;;  %v4337_v36 = vadd.f32 %v4336_v20, %v4324_v3  ;;  %v7456_v53 = vld [vmem:[#allocation5 + $0x1094] sm:$0xf] }
 0x239   :  { %4550 = vmatpush.bf16.msrb.mxu0 %v6717_v34  ;;  %v6749_v31 = vor.u32 %v7456_v53, %v6746_v32  ;;  %v6813_v34 = vor.u32 %v7472_v39, %v6810_v40 }
 0x23a   :  { %4563 = vmatpush.bf16.msrb.mxu1 %v6781_v47  ;;  %v7438_v47 = vld [vmem:[#allocation5 + $0x1004] sm:$0xf] }
 0x23b   :  { %4576 = vmatpush.bf16.msrb.mxu2 %v6845_v51  ;;  %v6674_v51 = vld [vmem:[#allocation5 + $0x1008] sm:$0xf0] }
 0x23c   :  { %4589 = vmatpush.bf16.msrb.mxu3 %v6909_v58  ;;  %v7470_v58 = vld [vmem:[#allocation5 + $0x1104] sm:$0xf]  ;;  %v6677_v60 = vor.u32 %v7438_v47, %v6674_v51 }
 0x23d   :  { %4551 = vmatpush.bf16.msrb.mxu0 %v6709_v2  ;;  %v4325_v25 = vpop.f32.mrf.mxu2  ;;  %v6805_v2 = vor.u32 %v7470_v58, %v6802_v37 }
 0x23e   :  { %4564 = vmatpush.bf16.msrb.mxu1 %v6773_v12  ;;  %v4338_v7 = vpop.f32.mrf.mxu3 }
 0x23f   :  { %4577 = vmatpush.bf16.msrb.mxu2 %v6837_v46 }
 0x240   :  { %4590 = vmatpush.bf16.msrb.mxu3 %v6901_v30 }
 0x241   :  { %4552 = vmatpush.bf16.msrb.mxu0 %v6701_v19 }
 0x242   :  { %4565 = vmatpush.bf16.msrb.mxu1 %v6765_v23 }
 0x243   :  { %4578 = vmatpush.bf16.msrb.mxu2 %v6829_v22 }
 0x244   :  { %4591 = vmatpush.bf16.msrb.mxu3 %v6893_v4 }
 0x245   :  { %4553 = vmatpush.bf16.msrb.mxu0 %v6693_v21 }
 0x246   :  { %4566 = vmatpush.bf16.msrb.mxu1 %v6757_v26 }
 0x247   :  { %4579 = vmatpush.bf16.msrb.mxu2 %v6821_v27 }
 0x248   :  { %4592 = vmatpush.bf16.msrb.mxu3 %v6885_v24 }
 0x249   :  { %4554 = vmatpush.bf16.msrb.mxu0 %v6685_v55 }
 0x24a   :  { %4567 = vmatpush.bf16.msrb.mxu1 %v6749_v31 }
 0x24b   :  { %4580 = vmatpush.bf16.msrb.mxu2 %v6813_v34 }
 0x24c   :  { %4593 = vmatpush.bf16.msrb.mxu3 %v6877_v56 }
 0x24d   :  { %4555 = vmatpush.bf16.msrb.mxu0 %v6677_v60  ;;  %v4349_v12 = vpop.f32.mrf.mxu0 }
 0x24e   :  { %4568 = vmatpush.bf16.msrb.mxu1 %v6741_v45  ;;  %v4350_v46 = vadd.f32 %v4349_v12, %v4337_v36  ;;  %v4362_v13 = vpop.f32.mrf.mxu1 }
 0x24f   :  { %4581 = vmatpush.bf16.msrb.mxu2 %v6805_v2 }
 0x250   :  { %4594 = vmatpush.bf16.msrb.mxu3 %v6869_v11  ;;  %4556 = vmatmul.bf16.vlgmr.msrb.gmra.mxu0 %v7753_v54  ;;  %v4363_v29 = vadd.f32 %v4362_v13, %v4350_v46 }
 0x251   :  { %4569 = vmatmul.bf16.vlgmr.msrb.gmra.mxu1 %v7757_v0 }
 0x252   :  { %4582 = vmatmul.bf16.vlgmr.msrb.gmra.mxu2 %v7755_v63 }
 0x253   :  { %4595 = vmatmul.bf16.vlgmr.msrb.gmra.mxu3 %v7759_v1 }
 0x255   :  { %v4375_v18 = vpop.f32.mrf.mxu2  ;;  %v4351_v15 = vpop.f32.mrf.mxu0 }
 0x256   :  { %v4376_v30 = vadd.f32 %v4375_v18, %v4363_v29  ;;  %v4388_v49 = vpop.f32.mrf.mxu3  ;;  %v4364_v5 = vpop.f32.mrf.mxu1 }
 0x258   :  { %v4389_v16 = vadd.f32 %v4388_v49, %v4376_v30 }
 0x25d   :  { %v4377_v62 = vpop.f32.mrf.mxu2 }
 0x25e   :  { %v4390_v33 = vpop.f32.mrf.mxu3 }
 0x26d   :  { %v4401_v19 = vpop.f32.mrf.mxu0 }
 0x26e   :  { %v4402_v54 = vadd.f32 %v4401_v19, %v4389_v16  ;;  %v4414_v23 = vpop.f32.mrf.mxu1 }
 0x270   :  { %v4415_v0 = vadd.f32 %v4414_v23, %v4402_v54 }
 0x275   :  { %v4427_v22 = vpop.f32.mrf.mxu2  ;;  %v4403_v1 = vpop.f32.mrf.mxu0 }
 0x276   :  { %v4428_v63 = vadd.f32 %v4427_v22, %v4415_v0  ;;  %v4440_v14 = vpop.f32.mrf.mxu3  ;;  %v4416_v57 = vpop.f32.mrf.mxu1 }
 0x278   :  { %v4441_v8 = vadd.f32 %v4440_v14, %v4428_v63 }
 0x27d   :  { %v4429_v4 = vpop.f32.mrf.mxu2 }
 0x27e   :  { %v4442_v9 = vpop.f32.mrf.mxu3 }
 0x28d   :  { %v4453_v41 = vpop.f32.mrf.mxu0 }
 0x28e   :  { %v4466_v28 = vpop.f32.mrf.mxu1  ;;  %v4454_v36 = vadd.f32 %v4453_v41, %v4441_v8 }
 0x290   :  { %v4467_v53 = vadd.f32 %v4466_v28, %v4454_v36 }
 0x295   :  { %v4479_v42 = vpop.f32.mrf.mxu2  ;;  %v4455_v20 = vpop.f32.mrf.mxu0 }
 0x296   :  { %v4492_v3 = vpop.f32.mrf.mxu3  ;;  %v4468_v17 = vpop.f32.mrf.mxu1  ;;  %v4480_v24 = vadd.f32 %v4479_v42, %v4467_v53 }
 0x298   :  { %v4493_v40 = vadd.f32 %v4492_v3, %v4480_v24 }
 0x29d   :  { %v4481_v44 = vpop.f32.mrf.mxu2 }
 0x29e   :  { %v4494_v50 = vpop.f32.mrf.mxu3 }
 0x2ad   :  { %v4505_v21 = vpop.f32.mrf.mxu0 }
 0x2ae   :  { %v4518_v52 = vpop.f32.mrf.mxu1  ;;  %v4506_v43 = vadd.f32 %v4505_v21, %v4493_v40 }
 0x2b0   :  { %v4519_v48 = vadd.f32 %v4518_v52, %v4506_v43 }
 0x2b5   :  { %v4531_v26 = vpop.f32.mrf.mxu2  ;;  %v4507_v38 = vpop.f32.mrf.mxu0 }
 0x2b6   :  { %v4544_v27 = vpop.f32.mrf.mxu3  ;;  %v4520_v6 = vpop.f32.mrf.mxu1  ;;  %v4532_v55 = vadd.f32 %v4531_v26, %v4519_v48 }
 0x2b8   :  { %v4545_v31 = vadd.f32 %v4544_v27, %v4532_v55 }
 0x2bd   :  { %v4533_v32 = vpop.f32.mrf.mxu2 }
 0x2be   :  { %v4546_v39 = vpop.f32.mrf.mxu3 }
 0x2cd   :  { %v4557_v34 = vpop.f32.mrf.mxu0 }
 0x2ce   :  { %v4570_v47 = vpop.f32.mrf.mxu1  ;;  %v4558_v51 = vadd.f32 %v4557_v34, %v4545_v31 }
 0x2d0   :  { %v4571_v35 = vadd.f32 %v4570_v47, %v4558_v51 }
 0x2d5   :  { %v4583_v56 = vpop.f32.mrf.mxu2  ;;  %v4559_v37 = vpop.f32.mrf.mxu0 }
 0x2d6   :  { %v4584_v10 = vadd.f32 %v4583_v56, %v4571_v35  ;;  %v4596_v58 = vpop.f32.mrf.mxu3  ;;  %v4572_v25 = vpop.f32.mrf.mxu1 }
 0x2d8   :  { %v4597_v59 = vadd.f32 %v4596_v58, %v4584_v10 }
 0x2da   :  { %v4601_v61 = vmax.f32 %v4597_v59, 0.0 }
 0x2dc   :  { %4603 = vst [vmem:[#allocation8 + $0x8] sm:$0xff] %v4601_v61 }
 0x2dd   :  { %v4585_v7 = vpop.f32.mrf.mxu2  ;;  %4614 = dma.vmem_to_hbm [thread:$0]  %s4610_s2, 256, %s4612_s30, [#allocation4]  }
 0x2de   :  { %v4598_v60 = vpop.f32.mrf.mxu3 }
 0x2df   :  { %7609 = dma.done.wait [#allocation4], 256  }
 0x2e0   :  { %7610 = vsyncadd [#allocation4], 4294967040 }
 0x2e1   :  { %4619 = vsyncpa [#allocation3], 1 }
 0x2e2   :  { %4620 = vsyncpa [#allocation6], 1 }
 0x2e3   :  { %4621 = vsyncpa [#allocation4], 1 }

</bundles_post_ra>
